<compile_context>
chip_gen: v7x
topology: tpu7x:2x2x1
jax: 0.10.0
libtpu: 0.0.40
codegen_flags: <defaults>
</compile_context>

<pallas_src>
import numpy as np
import jax
import jax.numpy as jnp
from jax import lax
from jax.experimental import pallas as pl
from jax.experimental.pallas import tpu as pltpu

CP = 128        # lane width of activations / weight output dim
SUB = 16        # bf16 sublane granule: every row count / row offset is a multiple
BN_EPS = 1e-5   # PyTorch BatchNorm2d default eps


def _round_up(n, m):
    return ((n + m - 1) // m) * m


# --------------------------- one-time preparation -------------------------- #

def _make_gather_np(h_in, w_in, s_in_padded):
    """0/1 matrix turning im2col into a GEMM for a 3x3 / stride-2 / pad-1 conv.

    Row (t, out_pos) selects the input spatial row feeding tap t of out_pos.
    Columns for padded (non-real) input rows stay zero, so relu(bias) garbage
    living in padded activation rows can never propagate (correctness relies
    on this invariant)."""
    k, stride, pad = 3, 2, 1
    h_out = (h_in + 2 * pad - k) // stride + 1
    w_out = (w_in + 2 * pad - k) // stride + 1
    s_out_p = _round_up(h_out * w_out, SUB)
    assert h_in * w_in <= s_in_padded
    G = np.zeros((k * k * s_out_p, s_in_padded), np.float32)
    for kh in range(k):
        for kw in range(k):
            t = kh * k + kw
            for oy in range(h_out):
                for ox in range(w_out):
                    iy = oy * stride + kh - pad
                    ix = ox * stride + kw - pad
                    if 0 <= iy < h_in and 0 <= ix < w_in:
                        G[t * s_out_p + oy * w_out + ox, iy * w_in + ix] = 1.0
    return G, h_out, w_out, s_out_p


def _fold_bn(w, b, bn_params):
    """Fold eval-mode BatchNorm into the conv weight / bias (f32)."""
    gamma, beta, mean, var = bn_params
    s = gamma / jnp.sqrt(var + BN_EPS)
    return w * s, s * (b - mean) + beta


def _pack_weight(w, tap_stride, total_rows):
    """(3,3,cin,cout) -> (total_rows, CP), row index = t*tap_stride + ci."""
    kh, kw, cin, cout = w.shape
    taps = kh * kw
    assert cin <= tap_stride and cout <= CP and taps * tap_stride <= total_rows
    wt = jnp.zeros((taps, tap_stride, CP), jnp.float32)
    wt = wt.at[:, :cin, :cout].set(w.reshape(taps, cin, cout))
    wt = wt.reshape(taps * tap_stride, CP)
    if total_rows > taps * tap_stride:
        wt = jnp.pad(wt, ((0, total_rows - taps * tap_stride), (0, 0)))
    return wt.astype(jnp.bfloat16)


def _pack_bias(b):
    return jnp.zeros((1, CP), jnp.float32).at[0, :b.shape[0]].set(b)


def prepare_fused(params, H, W):
    """One-time prep: BN fold, merged-K weight packing, gather matrices for
    layers 2-4, padding bookkeeping.  Everything outside the hot path."""
    # TODO(synk): BatchNorm is folded in eval mode (running stats); train-mode
    #             batch statistics are not implemented.
    cin = params["w1"].shape[2]
    k1p = _round_up(9 * cin, CP)                   # layer-1 merged-K lane width

    h1 = (H + 2 - 3) // 2 + 1
    w1o = (W + 2 - 3) // 2 + 1
    sp_list = [_round_up(h1 * w1o, SUB)]
    gathers = []
    h, w = h1, w1o
    for _ in range(3):                             # layers 2..4 (in-kernel im2col)
        G, h, w, s_out_p = _make_gather_np(h, w, sp_list[-1])
        gathers.append(jnp.asarray(G, jnp.bfloat16))
        sp_list.append(s_out_p)

    # fold BN and pack weights in merged-K layout
    w1f, b1f = _fold_bn(params["w1"], params["b1"], params["bn1"])
    weights = [_pack_weight(w1f, cin, k1p)]        # (k1p, CP)
    biases = [_pack_bias(b1f)]
    for idx in (2, 3, 4):
        wf, bf = _fold_bn(params[f"w{idx}"], params[f"b{idx}"], params[f"bn{idx}"])
        weights.append(_pack_weight(wf, CP, 9 * CP))   # (1152, CP)
        biases.append(_pack_bias(bf))
    w5 = params["w5"][0, 0]                        # (cin5, cout5)
    cout5 = w5.shape[1]
    weights.append(jnp.zeros((CP, CP), jnp.float32)
                   .at[:w5.shape[0], :cout5].set(w5).astype(jnp.bfloat16))
    biases.append(_pack_bias(params["b5"]))

    return dict(weights=weights, gathers=gathers, bias=jnp.stack(biases, 0),
                sp=sp_list, k1p=k1p, h1w1=(h1, w1o), h4w4=(h, w),
                cout=cout5, hw=(H, W))


# ------------------------------ forward pass ------------------------------- #

def _full_spec(arr):
    """Full-array block with constant index map -> loaded into VMEM once."""
    zeros = (0,) * arr.ndim
    return pl.BlockSpec(arr.shape, lambda i: zeros)


def encoder_block_forward(x_nchw, prep):
    """Matches EncoderBlock.forward (eval mode).  Input/output NCHW."""
    B, C, H, W = x_nchw.shape
    assert (H, W) == prep["hw"], "prep built for a different input size"
    h1, w1o = prep["h1w1"]
    h4, w4o = prep["h4w4"]
    sp1, sp2, sp3, sp4 = prep["sp"]
    k1p, cout = prep["k1p"], prep["cout"]

    # Host-side (XLA) im2col for layer 1 only: removes the big gather matrix
    # and the largest in-kernel gather GEMM.  Lane index = t*C + ci.
    x = jnp.transpose(x_nchw, (0, 2, 3, 1))                       # NHWC
    xp = jnp.pad(x, ((0, 0), (1, 1), (1, 1), (0, 0)))
    taps = [xp[:, kh:kh + 2 * h1:2, kw:kw + 2 * w1o:2, :]
            for kh in range(3) for kw in range(3)]
    p1 = jnp.concatenate(taps, axis=-1).reshape(B, h1 * w1o, 9 * C)
    p1 = jnp.pad(p1, ((0, 0), (0, sp1 - h1 * w1o), (0, k1p - 9 * C)))
    p1 = p1.reshape(B * sp1, k1p).astype(jnp.bfloat16)

    w1, w2, w3, w4, w5 = prep["weights"]
    g2, g3, g4 = prep["gathers"]
    bias = prep["bias"]

    def kernel(p1_ref, w1_ref, g2_ref, w2_ref, g3_ref, w3_ref, g4_ref, w4_ref,
               w5_ref, b_ref, o_ref, pcol_ref):
        # ---- layer 1: patches are pre-gathered -> one merged-K GEMM ----
        a = jnp.dot(p1_ref[...], w1_ref[...], preferred_element_type=jnp.float32)
        a = jnp.maximum(a + b_ref[0], 0.0).astype(jnp.bfloat16)   # (B*sp1, CP)

        # ---- layers 2..4: per-element gather GEMM -> tap blocks written into
        # adjacent 128-lane groups of the pcol scratch -> ONE long-K GEMM ----
        sp_in = sp1
        for li, (g_ref, w_ref, sp_out) in enumerate(
                ((g2_ref, w2_ref, sp2), (g3_ref, w3_ref, sp3),
                 (g4_ref, w4_ref, sp4)), start=1):
            for b in range(B):
                # exact 0/1 gather of bf16 activations (f32 acc -> exact)
                p_all = jnp.dot(g_ref[...], a[b * sp_in:(b + 1) * sp_in, :],
                                preferred_element_type=jnp.float32
                                ).astype(jnp.bfloat16)            # (9*sp_out, CP)
                for t in range(9):                                # static unroll
                    pcol_ref[b * sp_out:(b + 1) * sp_out,
                             t * CP:(t + 1) * CP] = \
                        p_all[t * sp_out:(t + 1) * sp_out, :]
            acc = jnp.dot(pcol_ref[0:B * sp_out, :], w_ref[...],
                          preferred_element_type=jnp.float32)     # K = 9*CP
            a = jnp.maximum(acc + b_ref[li], 0.0).astype(jnp.bfloat16)
            sp_in = sp_out

        # ---- layer 5: 1x1 conv, no BN ----
        out = jnp.dot(a, w5_ref[...], preferred_element_type=jnp.float32) + b_ref[4]
        o_ref[...] = jnp.maximum(out, 0.0)

    operands = (p1, w1, g2, w2, g3, w3, g4, w4, w5, bias)
    pcol_rows = B * max(sp2, sp3, sp4)

    out = pl.pallas_call(
        kernel,
        out_shape=jax.ShapeDtypeStruct((B * sp4, CP), jnp.float32),
        grid=(1,),                                   # batch folded into GEMM M
        in_specs=[_full_spec(a) for a in operands],
        out_specs=pl.BlockSpec((B * sp4, CP), lambda i: (0, 0)),
        scratch_shapes=[pltpu.VMEM((pcol_rows, 9 * CP), jnp.bfloat16)],
        compiler_params=pltpu.CompilerParams(
            dimension_semantics=("arbitrary",)),
    )(*operands)

    out = out.reshape(B, sp4, CP)[:, :h4 * w4o, :cout]            # drop padding
    out = out.reshape(B, h4, w4o, cout)
    return jnp.transpose(out, (0, 3, 1, 2))                       # NHWC -> NCHW


# ------------------------------- references -------------------------------- #

def reference_forward(x, p):
    """Pure f32 reference mirroring the PyTorch module (eval mode)."""
    def conv(h, w, b, stride, pad):
        out = lax.conv_general_dilated(
            h, w, window_strides=(stride, stride),
            padding=((pad, pad), (pad, pad)),
            dimension_numbers=("NCHW", "HWIO", "NCHW"))
        return out + b[None, :, None, None]

    def bn(h, bn_p):
        g, beta, mean, var = bn_p
        s = g / jnp.sqrt(var + BN_EPS)
        return (h - mean[None, :, None, None]) * s[None, :, None, None] \
            + beta[None, :, None, None]

    h = jax.nn.relu(bn(conv(x, p["w1"], p["b1"], 2, 1), p["bn1"]))
    h = jax.nn.relu(bn(conv(h, p["w2"], p["b2"], 2, 1), p["bn2"]))
    h = jax.nn.relu(bn(conv(h, p["w3"], p["b3"], 2, 1), p["bn3"]))
    h = jax.nn.relu(bn(conv(h, p["w4"], p["b4"], 2, 1), p["bn4"]))
    h = jax.nn.relu(conv(h, p["w5"], p["b5"], 1, 0))
    return h


def reference_forward_bf16(x, p):
    """Numerics-matched reference: BN folded (eval mode), conv inputs and folded
    weights rounded to bf16, f32 accumulation — same rounding points as the
    kernel, so a tight tolerance is meaningful."""
    def conv(h, w, b, stride, pad):
        out = lax.conv_general_dilated(
            h.astype(jnp.bfloat16), w.astype(jnp.bfloat16),
            window_strides=(stride, stride), padding=((pad, pad), (pad, pad)),
            dimension_numbers=("NCHW", "HWIO", "NCHW"),
            preferred_element_type=jnp.float32)
        return out + b[None, :, None, None]

    h = x
    for idx in (1, 2, 3, 4):
        wf, bf = _fold_bn(p[f"w{idx}"], p[f"b{idx}"], p[f"bn{idx}"])
        h = jax.nn.relu(conv(h, wf, bf, 2, 1))
    h = jax.nn.relu(conv(h, p["w5"], p["b5"], 1, 0))
    return h


# --------------------------- parameter creation ---------------------------- #

def init_params(key, input_channels, encoder_out_channels):
    # NOTE: the PyTorch module only runs if encoder_out_channels == 32
    # (bn4 = BatchNorm2d(encoder_out_channels) is applied to the 32-channel
    # conv4 output), so keep that constraint here.
    assert encoder_out_channels == 32
    chans = [(input_channels, 32, 3), (32, 32, 3), (32, 64, 3),
             (64, 32, 3), (32, encoder_out_channels, 1)]
    params = {}
    for idx, (cin, cout, k) in enumerate(chans, start=1):
        key, kw_, kb_, kg, kbt, km, kv = jax.random.split(key, 7)
        params[f"w{idx}"] = 0.1 * jax.random.normal(
            kw_, (k, k, cin, cout), jnp.float32)
        params[f"b{idx}"] = 0.05 * jax.random.normal(kb_, (cout,), jnp.float32)
        if idx <= 4:  # BatchNorm (eval mode running stats)
            gamma = 1.0 + 0.1 * jax.random.normal(kg, (cout,), jnp.float32)
            beta = 0.1 * jax.random.normal(kbt, (cout,), jnp.float32)
            mean = 0.1 * jax.random.normal(km, (cout,), jnp.float32)
            var = jax.random.uniform(kv, (cout,), jnp.float32, 0.5, 1.5)
            params[f"bn{idx}"] = (gamma, beta, mean, var)
    return params


# ---------------------------------- main ----------------------------------- #

if __name__ == "__main__":
    key = jax.random.PRNGKey(0)
    k_in, k_par = jax.random.split(key)

    B, C, H, W = 2, 4, 16, 16
    encoder_out_channels = 32
    x = jax.random.normal(k_in, (B, C, H, W), jnp.float32)

    params = init_params(k_par, input_channels=C,
                         encoder_out_channels=encoder_out_channels)
    prep = prepare_fused(params, H, W)   # one-time: BN fold, packing, gathers

    fwd = jax.jit(lambda inp: encoder_block_forward(inp, prep))
    out = jax.block_until_ready(fwd(x))

    # 16 -> 8 -> 4 -> 2 -> 1 -> 1 spatial; final channels = encoder_out_channels
    assert out.shape == (B, encoder_out_channels, 1, 1), out.shape
    assert bool(jnp.all(out >= 0.0))                       # final ReLU

    # Tight check against the bf16-numerics-matched reference ...
    ref_bf16 = reference_forward_bf16(x, params)
    err = float(jnp.max(jnp.abs(out - ref_bf16)))
    assert bool(jnp.allclose(out, ref_bf16, atol=2e-3, rtol=2e-3)), err
    # ... and a loose end-to-end sanity check against the pure f32 reference.
    ref_f32 = reference_forward(x, params)
    assert bool(jnp.allclose(out, ref_f32, atol=1e-1, rtol=1e-1)), float(
        jnp.max(jnp.abs(out - ref_f32)))
    print("KERNEL_OK")
</pallas_src>

<mosaic_0001>
module attributes {stable_mosaic.version = 11 : i64} {
  func.func @kernel(%arg0: i32, %arg1: memref<128x128xbf16, #tpu.memory_space<vmem>>, %arg2: memref<128x128xbf16, #tpu.memory_space<vmem>>, %arg3: memref<144x64xbf16, #tpu.memory_space<vmem>>, %arg4: memref<1152x128xbf16, #tpu.memory_space<vmem>>, %arg5: memref<144x16xbf16, #tpu.memory_space<vmem>>, %arg6: memref<1152x128xbf16, #tpu.memory_space<vmem>>, %arg7: memref<144x16xbf16, #tpu.memory_space<vmem>>, %arg8: memref<1152x128xbf16, #tpu.memory_space<vmem>>, %arg9: memref<128x128xbf16, #tpu.memory_space<vmem>>, %arg10: memref<5x1x128xf32, #tpu.memory_space<vmem>>, %arg11: memref<32x128xf32, #tpu.memory_space<vmem>>, %arg12: memref<32x1152xbf16, #tpu.memory_space<vmem>>) attributes {dimension_semantics = [#tpu.dimension_semantics<arbitrary>], iteration_bounds = array<i64: 1>, scalar_prefetch = 0 : i64, scratch_operands = 1 : i64, tpu.core_type = #tpu.core_type<tc>, window_params = [{pipeline_mode = #tpu.pipeline_mode<synchronous>, transform_indices = @transform_0, window_bounds = array<i64: 128, 128>}, {pipeline_mode = #tpu.pipeline_mode<synchronous>, transform_indices = @transform_1, window_bounds = array<i64: 128, 128>}, {pipeline_mode = #tpu.pipeline_mode<synchronous>, transform_indices = @transform_2, window_bounds = array<i64: 144, 64>}, {pipeline_mode = #tpu.pipeline_mode<synchronous>, transform_indices = @transform_3, window_bounds = array<i64: 1152, 128>}, {pipeline_mode = #tpu.pipeline_mode<synchronous>, transform_indices = @transform_4, window_bounds = array<i64: 144, 16>}, {pipeline_mode = #tpu.pipeline_mode<synchronous>, transform_indices = @transform_5, window_bounds = array<i64: 1152, 128>}, {pipeline_mode = #tpu.pipeline_mode<synchronous>, transform_indices = @transform_6, window_bounds = array<i64: 144, 16>}, {pipeline_mode = #tpu.pipeline_mode<synchronous>, transform_indices = @transform_7, window_bounds = array<i64: 1152, 128>}, {pipeline_mode = #tpu.pipeline_mode<synchronous>, transform_indices = @transform_8, window_bounds = array<i64: 128, 128>}, {pipeline_mode = #tpu.pipeline_mode<synchronous>, transform_indices = @transform_9, window_bounds = array<i64: 5, 1, 128>}, {pipeline_mode = #tpu.pipeline_mode<synchronous>, transform_indices = @transform_10, window_bounds = array<i64: 32, 128>}]} {
    %c0 = arith.constant 0 : index
    %c0_0 = arith.constant 0 : index
    %0 = vector.load %arg1[%c0, %c0_0] : memref<128x128xbf16, #tpu.memory_space<vmem>>, vector<128x128xbf16>
    %c0_1 = arith.constant 0 : index
    %c0_2 = arith.constant 0 : index
    %1 = vector.load %arg2[%c0_1, %c0_2] : memref<128x128xbf16, #tpu.memory_space<vmem>>, vector<128x128xbf16>
    %cst = arith.constant dense<0.000000e+00> : vector<128x128xf32>
    %2 = tpu.matmul %0, %1, %cst {dimension_numbers = #tpu.dot_dimension_numbers<[1], [0], [0], [1], [0, 0, 1, 1], [], []>} : vector<128x128xbf16>, vector<128x128xbf16>, vector<128x128xf32> -> vector<128x128xf32>
    %c0_3 = arith.constant 0 : index
    %c0_4 = arith.constant 0 : index
    %c0_5 = arith.constant 0 : index
    %3 = vector.load %arg10[%c0_3, %c0_4, %c0_5] : memref<5x1x128xf32, #tpu.memory_space<vmem>>, vector<1x1x128xf32>
    %4 = vector.shape_cast %3 : vector<1x1x128xf32> to vector<1x128xf32>
    %5 = vector.broadcast %4 : vector<1x128xf32> to vector<128x128xf32>
    %6 = arith.addf %2, %5 : vector<128x128xf32>
    %cst_6 = arith.constant 0.000000e+00 : f32
    %7 = vector.broadcast %cst_6 : f32 to vector<128x128xf32>
    %8 = arith.maximumf %6, %7 : vector<128x128xf32>
    %9 = arith.truncf %8 : vector<128x128xf32> to vector<128x128xbf16>
    %c0_7 = arith.constant 0 : index
    %c0_8 = arith.constant 0 : index
    %10 = vector.load %arg3[%c0_7, %c0_8] : memref<144x64xbf16, #tpu.memory_space<vmem>>, vector<144x64xbf16>
    %11 = vector.extract_strided_slice %9 {offsets = [0, 0], sizes = [64, 128], strides = [1, 1]} : vector<128x128xbf16> to vector<64x128xbf16>
    %cst_9 = arith.constant dense<0.000000e+00> : vector<144x128xf32>
    %12 = tpu.matmul %10, %11, %cst_9 {dimension_numbers = #tpu.dot_dimension_numbers<[1], [0], [0], [1], [0, 0, 1, 1], [], []>} : vector<144x64xbf16>, vector<64x128xbf16>, vector<144x128xf32> -> vector<144x128xf32>
    %13 = arith.truncf %12 : vector<144x128xf32> to vector<144x128xbf16>
    %14 = vector.extract_strided_slice %13 {offsets = [0, 0], sizes = [16, 128], strides = [1, 1]} : vector<144x128xbf16> to vector<16x128xbf16>
    %c0_10 = arith.constant 0 : index
    %c0_11 = arith.constant 0 : index
    %15 = vector.load %arg12[%c0_10, %c0_11] : memref<32x1152xbf16, #tpu.memory_space<vmem>>, vector<16x128xbf16>
    tpu.vector_store %arg12[%c0_10, %c0_11], %14 {strides = array<i32>} : memref<32x1152xbf16, #tpu.memory_space<vmem>>, vector<16x128xbf16>,
    %16 = vector.extract_strided_slice %13 {offsets = [16, 0], sizes = [16, 128], strides = [1, 1]} : vector<144x128xbf16> to vector<16x128xbf16>
    %c0_12 = arith.constant 0 : index
    %c128 = arith.constant 128 : index
    %17 = vector.load %arg12[%c0_12, %c128] : memref<32x1152xbf16, #tpu.memory_space<vmem>>, vector<16x128xbf16>
    tpu.vector_store %arg12[%c0_12, %c128], %16 {strides = array<i32>} : memref<32x1152xbf16, #tpu.memory_space<vmem>>, vector<16x128xbf16>,
    %18 = vector.extract_strided_slice %13 {offsets = [32, 0], sizes = [16, 128], strides = [1, 1]} : vector<144x128xbf16> to vector<16x128xbf16>
    %c0_13 = arith.constant 0 : index
    %c256 = arith.constant 256 : index
    %19 = vector.load %arg12[%c0_13, %c256] : memref<32x1152xbf16, #tpu.memory_space<vmem>>, vector<16x128xbf16>
    tpu.vector_store %arg12[%c0_13, %c256], %18 {strides = array<i32>} : memref<32x1152xbf16, #tpu.memory_space<vmem>>, vector<16x128xbf16>,
    %20 = vector.extract_strided_slice %13 {offsets = [48, 0], sizes = [16, 128], strides = [1, 1]} : vector<144x128xbf16> to vector<16x128xbf16>
    %c0_14 = arith.constant 0 : index
    %c384 = arith.constant 384 : index
    %21 = vector.load %arg12[%c0_14, %c384] : memref<32x1152xbf16, #tpu.memory_space<vmem>>, vector<16x128xbf16>
    tpu.vector_store %arg12[%c0_14, %c384], %20 {strides = array<i32>} : memref<32x1152xbf16, #tpu.memory_space<vmem>>, vector<16x128xbf16>,
    %22 = vector.extract_strided_slice %13 {offsets = [64, 0], sizes = [16, 128], strides = [1, 1]} : vector<144x128xbf16> to vector<16x128xbf16>
    %c0_15 = arith.constant 0 : index
    %c512 = arith.constant 512 : index
    %23 = vector.load %arg12[%c0_15, %c512] : memref<32x1152xbf16, #tpu.memory_space<vmem>>, vector<16x128xbf16>
    tpu.vector_store %arg12[%c0_15, %c512], %22 {strides = array<i32>} : memref<32x1152xbf16, #tpu.memory_space<vmem>>, vector<16x128xbf16>,
    %24 = vector.extract_strided_slice %13 {offsets = [80, 0], sizes = [16, 128], strides = [1, 1]} : vector<144x128xbf16> to vector<16x128xbf16>
    %c0_16 = arith.constant 0 : index
    %c640 = arith.constant 640 : index
    %25 = vector.load %arg12[%c0_16, %c640] : memref<32x1152xbf16, #tpu.memory_space<vmem>>, vector<16x128xbf16>
    tpu.vector_store %arg12[%c0_16, %c640], %24 {strides = array<i32>} : memref<32x1152xbf16, #tpu.memory_space<vmem>>, vector<16x128xbf16>,
    %26 = vector.extract_strided_slice %13 {offsets = [96, 0], sizes = [16, 128], strides = [1, 1]} : vector<144x128xbf16> to vector<16x128xbf16>
    %c0_17 = arith.constant 0 : index
    %c768 = arith.constant 768 : index
    %27 = vector.load %arg12[%c0_17, %c768] : memref<32x1152xbf16, #tpu.memory_space<vmem>>, vector<16x128xbf16>
    tpu.vector_store %arg12[%c0_17, %c768], %26 {strides = array<i32>} : memref<32x1152xbf16, #tpu.memory_space<vmem>>, vector<16x128xbf16>,
    %28 = vector.extract_strided_slice %13 {offsets = [112, 0], sizes = [16, 128], strides = [1, 1]} : vector<144x128xbf16> to vector<16x128xbf16>
    %c0_18 = arith.constant 0 : index
    %c896 = arith.constant 896 : index
    %29 = vector.load %arg12[%c0_18, %c896] : memref<32x1152xbf16, #tpu.memory_space<vmem>>, vector<16x128xbf16>
    tpu.vector_store %arg12[%c0_18, %c896], %28 {strides = array<i32>} : memref<32x1152xbf16, #tpu.memory_space<vmem>>, vector<16x128xbf16>,
    %30 = vector.extract_strided_slice %13 {offsets = [128, 0], sizes = [16, 128], strides = [1, 1]} : vector<144x128xbf16> to vector<16x128xbf16>
    %c0_19 = arith.constant 0 : index
    %c1024 = arith.constant 1024 : index
    %31 = vector.load %arg12[%c0_19, %c1024] : memref<32x1152xbf16, #tpu.memory_space<vmem>>, vector<16x128xbf16>
    tpu.vector_store %arg12[%c0_19, %c1024], %30 {strides = array<i32>} : memref<32x1152xbf16, #tpu.memory_space<vmem>>, vector<16x128xbf16>,
    %c0_20 = arith.constant 0 : index
    %c0_21 = arith.constant 0 : index
    %32 = vector.load %arg3[%c0_20, %c0_21] : memref<144x64xbf16, #tpu.memory_space<vmem>>, vector<144x64xbf16>
    %33 = vector.extract_strided_slice %9 {offsets = [64, 0], sizes = [64, 128], strides = [1, 1]} : vector<128x128xbf16> to vector<64x128xbf16>
    %cst_22 = arith.constant dense<0.000000e+00> : vector<144x128xf32>
    %34 = tpu.matmul %32, %33, %cst_22 {dimension_numbers = #tpu.dot_dimension_numbers<[1], [0], [0], [1], [0, 0, 1, 1], [], []>} : vector<144x64xbf16>, vector<64x128xbf16>, vector<144x128xf32> -> vector<144x128xf32>
    %35 = arith.truncf %34 : vector<144x128xf32> to vector<144x128xbf16>
    %36 = vector.extract_strided_slice %35 {offsets = [0, 0], sizes = [16, 128], strides = [1, 1]} : vector<144x128xbf16> to vector<16x128xbf16>
    %c16 = arith.constant 16 : index
    %c0_23 = arith.constant 0 : index
    %37 = vector.load %arg12[%c16, %c0_23] : memref<32x1152xbf16, #tpu.memory_space<vmem>>, vector<16x128xbf16>
    tpu.vector_store %arg12[%c16, %c0_23], %36 {strides = array<i32>} : memref<32x1152xbf16, #tpu.memory_space<vmem>>, vector<16x128xbf16>,
    %38 = vector.extract_strided_slice %35 {offsets = [16, 0], sizes = [16, 128], strides = [1, 1]} : vector<144x128xbf16> to vector<16x128xbf16>
    %c16_24 = arith.constant 16 : index
    %c128_25 = arith.constant 128 : index
    %39 = vector.load %arg12[%c16_24, %c128_25] : memref<32x1152xbf16, #tpu.memory_space<vmem>>, vector<16x128xbf16>
    tpu.vector_store %arg12[%c16_24, %c128_25], %38 {strides = array<i32>} : memref<32x1152xbf16, #tpu.memory_space<vmem>>, vector<16x128xbf16>,
    %40 = vector.extract_strided_slice %35 {offsets = [32, 0], sizes = [16, 128], strides = [1, 1]} : vector<144x128xbf16> to vector<16x128xbf16>
    %c16_26 = arith.constant 16 : index
    %c256_27 = arith.constant 256 : index
    %41 = vector.load %arg12[%c16_26, %c256_27] : memref<32x1152xbf16, #tpu.memory_space<vmem>>, vector<16x128xbf16>
    tpu.vector_store %arg12[%c16_26, %c256_27], %40 {strides = array<i32>} : memref<32x1152xbf16, #tpu.memory_space<vmem>>, vector<16x128xbf16>,
    %42 = vector.extract_strided_slice %35 {offsets = [48, 0], sizes = [16, 128], strides = [1, 1]} : vector<144x128xbf16> to vector<16x128xbf16>
    %c16_28 = arith.constant 16 : index
    %c384_29 = arith.constant 384 : index
    %43 = vector.load %arg12[%c16_28, %c384_29] : memref<32x1152xbf16, #tpu.memory_space<vmem>>, vector<16x128xbf16>
    tpu.vector_store %arg12[%c16_28, %c384_29], %42 {strides = array<i32>} : memref<32x1152xbf16, #tpu.memory_space<vmem>>, vector<16x128xbf16>,
    %44 = vector.extract_strided_slice %35 {offsets = [64, 0], sizes = [16, 128], strides = [1, 1]} : vector<144x128xbf16> to vector<16x128xbf16>
    %c16_30 = arith.constant 16 : index
    %c512_31 = arith.constant 512 : index
    %45 = vector.load %arg12[%c16_30, %c512_31] : memref<32x1152xbf16, #tpu.memory_space<vmem>>, vector<16x128xbf16>
    tpu.vector_store %arg12[%c16_30, %c512_31], %44 {strides = array<i32>} : memref<32x1152xbf16, #tpu.memory_space<vmem>>, vector<16x128xbf16>,
    %46 = vector.extract_strided_slice %35 {offsets = [80, 0], sizes = [16, 128], strides = [1, 1]} : vector<144x128xbf16> to vector<16x128xbf16>
    %c16_32 = arith.constant 16 : index
    %c640_33 = arith.constant 640 : index
    %47 = vector.load %arg12[%c16_32, %c640_33] : memref<32x1152xbf16, #tpu.memory_space<vmem>>, vector<16x128xbf16>
    tpu.vector_store %arg12[%c16_32, %c640_33], %46 {strides = array<i32>} : memref<32x1152xbf16, #tpu.memory_space<vmem>>, vector<16x128xbf16>,
    %48 = vector.extract_strided_slice %35 {offsets = [96, 0], sizes = [16, 128], strides = [1, 1]} : vector<144x128xbf16> to vector<16x128xbf16>
    %c16_34 = arith.constant 16 : index
    %c768_35 = arith.constant 768 : index
    %49 = vector.load %arg12[%c16_34, %c768_35] : memref<32x1152xbf16, #tpu.memory_space<vmem>>, vector<16x128xbf16>
    tpu.vector_store %arg12[%c16_34, %c768_35], %48 {strides = array<i32>} : memref<32x1152xbf16, #tpu.memory_space<vmem>>, vector<16x128xbf16>,
    %50 = vector.extract_strided_slice %35 {offsets = [112, 0], sizes = [16, 128], strides = [1, 1]} : vector<144x128xbf16> to vector<16x128xbf16>
    %c16_36 = arith.constant 16 : index
    %c896_37 = arith.constant 896 : index
    %51 = vector.load %arg12[%c16_36, %c896_37] : memref<32x1152xbf16, #tpu.memory_space<vmem>>, vector<16x128xbf16>
    tpu.vector_store %arg12[%c16_36, %c896_37], %50 {strides = array<i32>} : memref<32x1152xbf16, #tpu.memory_space<vmem>>, vector<16x128xbf16>,
    %52 = vector.extract_strided_slice %35 {offsets = [128, 0], sizes = [16, 128], strides = [1, 1]} : vector<144x128xbf16> to vector<16x128xbf16>
    %c16_38 = arith.constant 16 : index
    %c1024_39 = arith.constant 1024 : index
    %53 = vector.load %arg12[%c16_38, %c1024_39] : memref<32x1152xbf16, #tpu.memory_space<vmem>>, vector<16x128xbf16>
    tpu.vector_store %arg12[%c16_38, %c1024_39], %52 {strides = array<i32>} : memref<32x1152xbf16, #tpu.memory_space<vmem>>, vector<16x128xbf16>,
    %c0_40 = arith.constant 0 : index
    %c0_41 = arith.constant 0 : index
    %54 = vector.load %arg12[%c0_40, %c0_41] : memref<32x1152xbf16, #tpu.memory_space<vmem>>, vector<32x1152xbf16>
    %c0_42 = arith.constant 0 : index
    %c0_43 = arith.constant 0 : index
    %55 = vector.load %arg4[%c0_42, %c0_43] : memref<1152x128xbf16, #tpu.memory_space<vmem>>, vector<1152x128xbf16>
    %cst_44 = arith.constant dense<0.000000e+00> : vector<32x128xf32>
    %56 = tpu.matmul %54, %55, %cst_44 {dimension_numbers = #tpu.dot_dimension_numbers<[1], [0], [0], [1], [0, 0, 1, 1], [], []>} : vector<32x1152xbf16>, vector<1152x128xbf16>, vector<32x128xf32> -> vector<32x128xf32>
    %c1 = arith.constant 1 : index
    %c0_45 = arith.constant 0 : index
    %c0_46 = arith.constant 0 : index
    %57 = vector.load %arg10[%c1, %c0_45, %c0_46] : memref<5x1x128xf32, #tpu.memory_space<vmem>>, vector<1x1x128xf32>
    %58 = vector.shape_cast %57 : vector<1x1x128xf32> to vector<1x128xf32>
    %59 = vector.broadcast %58 : vector<1x128xf32> to vector<32x128xf32>
    %60 = arith.addf %56, %59 : vector<32x128xf32>
    %cst_47 = arith.constant 0.000000e+00 : f32
    %61 = vector.broadcast %cst_47 : f32 to vector<32x128xf32>
    %62 = arith.maximumf %60, %61 : vector<32x128xf32>
    %63 = arith.truncf %62 : vector<32x128xf32> to vector<32x128xbf16>
    %c0_48 = arith.constant 0 : index
    %c0_49 = arith.constant 0 : index
    %64 = vector.load %arg5[%c0_48, %c0_49] : memref<144x16xbf16, #tpu.memory_space<vmem>>, vector<144x16xbf16>
    %65 = vector.extract_strided_slice %63 {offsets = [0, 0], sizes = [16, 128], strides = [1, 1]} : vector<32x128xbf16> to vector<16x128xbf16>
    %cst_50 = arith.constant dense<0.000000e+00> : vector<144x128xf32>
    %66 = tpu.matmul %64, %65, %cst_50 {dimension_numbers = #tpu.dot_dimension_numbers<[1], [0], [0], [1], [0, 0, 1, 1], [], []>} : vector<144x16xbf16>, vector<16x128xbf16>, vector<144x128xf32> -> vector<144x128xf32>
    %67 = arith.truncf %66 : vector<144x128xf32> to vector<144x128xbf16>
    %68 = vector.extract_strided_slice %67 {offsets = [0, 0], sizes = [16, 128], strides = [1, 1]} : vector<144x128xbf16> to vector<16x128xbf16>
    %c0_51 = arith.constant 0 : index
    %c0_52 = arith.constant 0 : index
    %69 = vector.load %arg12[%c0_51, %c0_52] : memref<32x1152xbf16, #tpu.memory_space<vmem>>, vector<16x128xbf16>
    tpu.vector_store %arg12[%c0_51, %c0_52], %68 {strides = array<i32>} : memref<32x1152xbf16, #tpu.memory_space<vmem>>, vector<16x128xbf16>,
    %70 = vector.extract_strided_slice %67 {offsets = [16, 0], sizes = [16, 128], strides = [1, 1]} : vector<144x128xbf16> to vector<16x128xbf16>
    %c0_53 = arith.constant 0 : index
    %c128_54 = arith.constant 128 : index
    %71 = vector.load %arg12[%c0_53, %c128_54] : memref<32x1152xbf16, #tpu.memory_space<vmem>>, vector<16x128xbf16>
    tpu.vector_store %arg12[%c0_53, %c128_54], %70 {strides = array<i32>} : memref<32x1152xbf16, #tpu.memory_space<vmem>>, vector<16x128xbf16>,
    %72 = vector.extract_strided_slice %67 {offsets = [32, 0], sizes = [16, 128], strides = [1, 1]} : vector<144x128xbf16> to vector<16x128xbf16>
    %c0_55 = arith.constant 0 : index
    %c256_56 = arith.constant 256 : index
    %73 = vector.load %arg12[%c0_55, %c256_56] : memref<32x1152xbf16, #tpu.memory_space<vmem>>, vector<16x128xbf16>
    tpu.vector_store %arg12[%c0_55, %c256_56], %72 {strides = array<i32>} : memref<32x1152xbf16, #tpu.memory_space<vmem>>, vector<16x128xbf16>,
    %74 = vector.extract_strided_slice %67 {offsets = [48, 0], sizes = [16, 128], strides = [1, 1]} : vector<144x128xbf16> to vector<16x128xbf16>
    %c0_57 = arith.constant 0 : index
    %c384_58 = arith.constant 384 : index
    %75 = vector.load %arg12[%c0_57, %c384_58] : memref<32x1152xbf16, #tpu.memory_space<vmem>>, vector<16x128xbf16>
    tpu.vector_store %arg12[%c0_57, %c384_58], %74 {strides = array<i32>} : memref<32x1152xbf16, #tpu.memory_space<vmem>>, vector<16x128xbf16>,
    %76 = vector.extract_strided_slice %67 {offsets = [64, 0], sizes = [16, 128], strides = [1, 1]} : vector<144x128xbf16> to vector<16x128xbf16>
    %c0_59 = arith.constant 0 : index
    %c512_60 = arith.constant 512 : index
    %77 = vector.load %arg12[%c0_59, %c512_60] : memref<32x1152xbf16, #tpu.memory_space<vmem>>, vector<16x128xbf16>
    tpu.vector_store %arg12[%c0_59, %c512_60], %76 {strides = array<i32>} : memref<32x1152xbf16, #tpu.memory_space<vmem>>, vector<16x128xbf16>,
    %78 = vector.extract_strided_slice %67 {offsets = [80, 0], sizes = [16, 128], strides = [1, 1]} : vector<144x128xbf16> to vector<16x128xbf16>
    %c0_61 = arith.constant 0 : index
    %c640_62 = arith.constant 640 : index
    %79 = vector.load %arg12[%c0_61, %c640_62] : memref<32x1152xbf16, #tpu.memory_space<vmem>>, vector<16x128xbf16>
    tpu.vector_store %arg12[%c0_61, %c640_62], %78 {strides = array<i32>} : memref<32x1152xbf16, #tpu.memory_space<vmem>>, vector<16x128xbf16>,
    %80 = vector.extract_strided_slice %67 {offsets = [96, 0], sizes = [16, 128], strides = [1, 1]} : vector<144x128xbf16> to vector<16x128xbf16>
    %c0_63 = arith.constant 0 : index
    %c768_64 = arith.constant 768 : index
    %81 = vector.load %arg12[%c0_63, %c768_64] : memref<32x1152xbf16, #tpu.memory_space<vmem>>, vector<16x128xbf16>
    tpu.vector_store %arg12[%c0_63, %c768_64], %80 {strides = array<i32>} : memref<32x1152xbf16, #tpu.memory_space<vmem>>, vector<16x128xbf16>,
    %82 = vector.extract_strided_slice %67 {offsets = [112, 0], sizes = [16, 128], strides = [1, 1]} : vector<144x128xbf16> to vector<16x128xbf16>
    %c0_65 = arith.constant 0 : index
    %c896_66 = arith.constant 896 : index
    %83 = vector.load %arg12[%c0_65, %c896_66] : memref<32x1152xbf16, #tpu.memory_space<vmem>>, vector<16x128xbf16>
    tpu.vector_store %arg12[%c0_65, %c896_66], %82 {strides = array<i32>} : memref<32x1152xbf16, #tpu.memory_space<vmem>>, vector<16x128xbf16>,
    %84 = vector.extract_strided_slice %67 {offsets = [128, 0], sizes = [16, 128], strides = [1, 1]} : vector<144x128xbf16> to vector<16x128xbf16>
    %c0_67 = arith.constant 0 : index
    %c1024_68 = arith.constant 1024 : index
    %85 = vector.load %arg12[%c0_67, %c1024_68] : memref<32x1152xbf16, #tpu.memory_space<vmem>>, vector<16x128xbf16>
    tpu.vector_store %arg12[%c0_67, %c1024_68], %84 {strides = array<i32>} : memref<32x1152xbf16, #tpu.memory_space<vmem>>, vector<16x128xbf16>,
    %c0_69 = arith.constant 0 : index
    %c0_70 = arith.constant 0 : index
    %86 = vector.load %arg5[%c0_69, %c0_70] : memref<144x16xbf16, #tpu.memory_space<vmem>>, vector<144x16xbf16>
    %87 = vector.extract_strided_slice %63 {offsets = [16, 0], sizes = [16, 128], strides = [1, 1]} : vector<32x128xbf16> to vector<16x128xbf16>
    %cst_71 = arith.constant dense<0.000000e+00> : vector<144x128xf32>
    %88 = tpu.matmul %86, %87, %cst_71 {dimension_numbers = #tpu.dot_dimension_numbers<[1], [0], [0], [1], [0, 0, 1, 1], [], []>} : vector<144x16xbf16>, vector<16x128xbf16>, vector<144x128xf32> -> vector<144x128xf32>
    %89 = arith.truncf %88 : vector<144x128xf32> to vector<144x128xbf16>
    %90 = vector.extract_strided_slice %89 {offsets = [0, 0], sizes = [16, 128], strides = [1, 1]} : vector<144x128xbf16> to vector<16x128xbf16>
    %c16_72 = arith.constant 16 : index
    %c0_73 = arith.constant 0 : index
    %91 = vector.load %arg12[%c16_72, %c0_73] : memref<32x1152xbf16, #tpu.memory_space<vmem>>, vector<16x128xbf16>
    tpu.vector_store %arg12[%c16_72, %c0_73], %90 {strides = array<i32>} : memref<32x1152xbf16, #tpu.memory_space<vmem>>, vector<16x128xbf16>,
    %92 = vector.extract_strided_slice %89 {offsets = [16, 0], sizes = [16, 128], strides = [1, 1]} : vector<144x128xbf16> to vector<16x128xbf16>
    %c16_74 = arith.constant 16 : index
    %c128_75 = arith.constant 128 : index
    %93 = vector.load %arg12[%c16_74, %c128_75] : memref<32x1152xbf16, #tpu.memory_space<vmem>>, vector<16x128xbf16>
    tpu.vector_store %arg12[%c16_74, %c128_75], %92 {strides = array<i32>} : memref<32x1152xbf16, #tpu.memory_space<vmem>>, vector<16x128xbf16>,
    %94 = vector.extract_strided_slice %89 {offsets = [32, 0], sizes = [16, 128], strides = [1, 1]} : vector<144x128xbf16> to vector<16x128xbf16>
    %c16_76 = arith.constant 16 : index
    %c256_77 = arith.constant 256 : index
    %95 = vector.load %arg12[%c16_76, %c256_77] : memref<32x1152xbf16, #tpu.memory_space<vmem>>, vector<16x128xbf16>
    tpu.vector_store %arg12[%c16_76, %c256_77], %94 {strides = array<i32>} : memref<32x1152xbf16, #tpu.memory_space<vmem>>, vector<16x128xbf16>,
    %96 = vector.extract_strided_slice %89 {offsets = [48, 0], sizes = [16, 128], strides = [1, 1]} : vector<144x128xbf16> to vector<16x128xbf16>
    %c16_78 = arith.constant 16 : index
    %c384_79 = arith.constant 384 : index
    %97 = vector.load %arg12[%c16_78, %c384_79] : memref<32x1152xbf16, #tpu.memory_space<vmem>>, vector<16x128xbf16>
    tpu.vector_store %arg12[%c16_78, %c384_79], %96 {strides = array<i32>} : memref<32x1152xbf16, #tpu.memory_space<vmem>>, vector<16x128xbf16>,
    %98 = vector.extract_strided_slice %89 {offsets = [64, 0], sizes = [16, 128], strides = [1, 1]} : vector<144x128xbf16> to vector<16x128xbf16>
    %c16_80 = arith.constant 16 : index
    %c512_81 = arith.constant 512 : index
    %99 = vector.load %arg12[%c16_80, %c512_81] : memref<32x1152xbf16, #tpu.memory_space<vmem>>, vector<16x128xbf16>
    tpu.vector_store %arg12[%c16_80, %c512_81], %98 {strides = array<i32>} : memref<32x1152xbf16, #tpu.memory_space<vmem>>, vector<16x128xbf16>,
    %100 = vector.extract_strided_slice %89 {offsets = [80, 0], sizes = [16, 128], strides = [1, 1]} : vector<144x128xbf16> to vector<16x128xbf16>
    %c16_82 = arith.constant 16 : index
    %c640_83 = arith.constant 640 : index
    %101 = vector.load %arg12[%c16_82, %c640_83] : memref<32x1152xbf16, #tpu.memory_space<vmem>>, vector<16x128xbf16>
    tpu.vector_store %arg12[%c16_82, %c640_83], %100 {strides = array<i32>} : memref<32x1152xbf16, #tpu.memory_space<vmem>>, vector<16x128xbf16>,
    %102 = vector.extract_strided_slice %89 {offsets = [96, 0], sizes = [16, 128], strides = [1, 1]} : vector<144x128xbf16> to vector<16x128xbf16>
    %c16_84 = arith.constant 16 : index
    %c768_85 = arith.constant 768 : index
    %103 = vector.load %arg12[%c16_84, %c768_85] : memref<32x1152xbf16, #tpu.memory_space<vmem>>, vector<16x128xbf16>
    tpu.vector_store %arg12[%c16_84, %c768_85], %102 {strides = array<i32>} : memref<32x1152xbf16, #tpu.memory_space<vmem>>, vector<16x128xbf16>,
    %104 = vector.extract_strided_slice %89 {offsets = [112, 0], sizes = [16, 128], strides = [1, 1]} : vector<144x128xbf16> to vector<16x128xbf16>
    %c16_86 = arith.constant 16 : index
    %c896_87 = arith.constant 896 : index
    %105 = vector.load %arg12[%c16_86, %c896_87] : memref<32x1152xbf16, #tpu.memory_space<vmem>>, vector<16x128xbf16>
    tpu.vector_store %arg12[%c16_86, %c896_87], %104 {strides = array<i32>} : memref<32x1152xbf16, #tpu.memory_space<vmem>>, vector<16x128xbf16>,
    %106 = vector.extract_strided_slice %89 {offsets = [128, 0], sizes = [16, 128], strides = [1, 1]} : vector<144x128xbf16> to vector<16x128xbf16>
    %c16_88 = arith.constant 16 : index
    %c1024_89 = arith.constant 1024 : index
    %107 = vector.load %arg12[%c16_88, %c1024_89] : memref<32x1152xbf16, #tpu.memory_space<vmem>>, vector<16x128xbf16>
    tpu.vector_store %arg12[%c16_88, %c1024_89], %106 {strides = array<i32>} : memref<32x1152xbf16, #tpu.memory_space<vmem>>, vector<16x128xbf16>,
    %c0_90 = arith.constant 0 : index
    %c0_91 = arith.constant 0 : index
    %108 = vector.load %arg12[%c0_90, %c0_91] : memref<32x1152xbf16, #tpu.memory_space<vmem>>, vector<32x1152xbf16>
    %c0_92 = arith.constant 0 : index
    %c0_93 = arith.constant 0 : index
    %109 = vector.load %arg6[%c0_92, %c0_93] : memref<1152x128xbf16, #tpu.memory_space<vmem>>, vector<1152x128xbf16>
    %cst_94 = arith.constant dense<0.000000e+00> : vector<32x128xf32>
    %110 = tpu.matmul %108, %109, %cst_94 {dimension_numbers = #tpu.dot_dimension_numbers<[1], [0], [0], [1], [0, 0, 1, 1], [], []>} : vector<32x1152xbf16>, vector<1152x128xbf16>, vector<32x128xf32> -> vector<32x128xf32>
    %c2 = arith.constant 2 : index
    %c0_95 = arith.constant 0 : index
    %c0_96 = arith.constant 0 : index
    %111 = vector.load %arg10[%c2, %c0_95, %c0_96] : memref<5x1x128xf32, #tpu.memory_space<vmem>>, vector<1x1x128xf32>
    %112 = vector.shape_cast %111 : vector<1x1x128xf32> to vector<1x128xf32>
    %113 = vector.broadcast %112 : vector<1x128xf32> to vector<32x128xf32>
    %114 = arith.addf %110, %113 : vector<32x128xf32>
    %cst_97 = arith.constant 0.000000e+00 : f32
    %115 = vector.broadcast %cst_97 : f32 to vector<32x128xf32>
    %116 = arith.maximumf %114, %115 : vector<32x128xf32>
    %117 = arith.truncf %116 : vector<32x128xf32> to vector<32x128xbf16>
    %c0_98 = arith.constant 0 : index
    %c0_99 = arith.constant 0 : index
    %118 = vector.load %arg7[%c0_98, %c0_99] : memref<144x16xbf16, #tpu.memory_space<vmem>>, vector<144x16xbf16>
    %119 = vector.extract_strided_slice %117 {offsets = [0, 0], sizes = [16, 128], strides = [1, 1]} : vector<32x128xbf16> to vector<16x128xbf16>
    %cst_100 = arith.constant dense<0.000000e+00> : vector<144x128xf32>
    %120 = tpu.matmul %118, %119, %cst_100 {dimension_numbers = #tpu.dot_dimension_numbers<[1], [0], [0], [1], [0, 0, 1, 1], [], []>} : vector<144x16xbf16>, vector<16x128xbf16>, vector<144x128xf32> -> vector<144x128xf32>
    %121 = arith.truncf %120 : vector<144x128xf32> to vector<144x128xbf16>
    %122 = vector.extract_strided_slice %121 {offsets = [0, 0], sizes = [16, 128], strides = [1, 1]} : vector<144x128xbf16> to vector<16x128xbf16>
    %c0_101 = arith.constant 0 : index
    %c0_102 = arith.constant 0 : index
    %123 = vector.load %arg12[%c0_101, %c0_102] : memref<32x1152xbf16, #tpu.memory_space<vmem>>, vector<16x128xbf16>
    tpu.vector_store %arg12[%c0_101, %c0_102], %122 {strides = array<i32>} : memref<32x1152xbf16, #tpu.memory_space<vmem>>, vector<16x128xbf16>,
    %124 = vector.extract_strided_slice %121 {offsets = [16, 0], sizes = [16, 128], strides = [1, 1]} : vector<144x128xbf16> to vector<16x128xbf16>
    %c0_103 = arith.constant 0 : index
    %c128_104 = arith.constant 128 : index
    %125 = vector.load %arg12[%c0_103, %c128_104] : memref<32x1152xbf16, #tpu.memory_space<vmem>>, vector<16x128xbf16>
    tpu.vector_store %arg12[%c0_103, %c128_104], %124 {strides = array<i32>} : memref<32x1152xbf16, #tpu.memory_space<vmem>>, vector<16x128xbf16>,
    %126 = vector.extract_strided_slice %121 {offsets = [32, 0], sizes = [16, 128], strides = [1, 1]} : vector<144x128xbf16> to vector<16x128xbf16>
    %c0_105 = arith.constant 0 : index
    %c256_106 = arith.constant 256 : index
    %127 = vector.load %arg12[%c0_105, %c256_106] : memref<32x1152xbf16, #tpu.memory_space<vmem>>, vector<16x128xbf16>
    tpu.vector_store %arg12[%c0_105, %c256_106], %126 {strides = array<i32>} : memref<32x1152xbf16, #tpu.memory_space<vmem>>, vector<16x128xbf16>,
    %128 = vector.extract_strided_slice %121 {offsets = [48, 0], sizes = [16, 128], strides = [1, 1]} : vector<144x128xbf16> to vector<16x128xbf16>
    %c0_107 = arith.constant 0 : index
    %c384_108 = arith.constant 384 : index
    %129 = vector.load %arg12[%c0_107, %c384_108] : memref<32x1152xbf16, #tpu.memory_space<vmem>>, vector<16x128xbf16>
    tpu.vector_store %arg12[%c0_107, %c384_108], %128 {strides = array<i32>} : memref<32x1152xbf16, #tpu.memory_space<vmem>>, vector<16x128xbf16>,
    %130 = vector.extract_strided_slice %121 {offsets = [64, 0], sizes = [16, 128], strides = [1, 1]} : vector<144x128xbf16> to vector<16x128xbf16>
    %c0_109 = arith.constant 0 : index
    %c512_110 = arith.constant 512 : index
    %131 = vector.load %arg12[%c0_109, %c512_110] : memref<32x1152xbf16, #tpu.memory_space<vmem>>, vector<16x128xbf16>
    tpu.vector_store %arg12[%c0_109, %c512_110], %130 {strides = array<i32>} : memref<32x1152xbf16, #tpu.memory_space<vmem>>, vector<16x128xbf16>,
    %132 = vector.extract_strided_slice %121 {offsets = [80, 0], sizes = [16, 128], strides = [1, 1]} : vector<144x128xbf16> to vector<16x128xbf16>
    %c0_111 = arith.constant 0 : index
    %c640_112 = arith.constant 640 : index
    %133 = vector.load %arg12[%c0_111, %c640_112] : memref<32x1152xbf16, #tpu.memory_space<vmem>>, vector<16x128xbf16>
    tpu.vector_store %arg12[%c0_111, %c640_112], %132 {strides = array<i32>} : memref<32x1152xbf16, #tpu.memory_space<vmem>>, vector<16x128xbf16>,
    %134 = vector.extract_strided_slice %121 {offsets = [96, 0], sizes = [16, 128], strides = [1, 1]} : vector<144x128xbf16> to vector<16x128xbf16>
    %c0_113 = arith.constant 0 : index
    %c768_114 = arith.constant 768 : index
    %135 = vector.load %arg12[%c0_113, %c768_114] : memref<32x1152xbf16, #tpu.memory_space<vmem>>, vector<16x128xbf16>
    tpu.vector_store %arg12[%c0_113, %c768_114], %134 {strides = array<i32>} : memref<32x1152xbf16, #tpu.memory_space<vmem>>, vector<16x128xbf16>,
    %136 = vector.extract_strided_slice %121 {offsets = [112, 0], sizes = [16, 128], strides = [1, 1]} : vector<144x128xbf16> to vector<16x128xbf16>
    %c0_115 = arith.constant 0 : index
    %c896_116 = arith.constant 896 : index
    %137 = vector.load %arg12[%c0_115, %c896_116] : memref<32x1152xbf16, #tpu.memory_space<vmem>>, vector<16x128xbf16>
    tpu.vector_store %arg12[%c0_115, %c896_116], %136 {strides = array<i32>} : memref<32x1152xbf16, #tpu.memory_space<vmem>>, vector<16x128xbf16>,
    %138 = vector.extract_strided_slice %121 {offsets = [128, 0], sizes = [16, 128], strides = [1, 1]} : vector<144x128xbf16> to vector<16x128xbf16>
    %c0_117 = arith.constant 0 : index
    %c1024_118 = arith.constant 1024 : index
    %139 = vector.load %arg12[%c0_117, %c1024_118] : memref<32x1152xbf16, #tpu.memory_space<vmem>>, vector<16x128xbf16>
    tpu.vector_store %arg12[%c0_117, %c1024_118], %138 {strides = array<i32>} : memref<32x1152xbf16, #tpu.memory_space<vmem>>, vector<16x128xbf16>,
    %c0_119 = arith.constant 0 : index
    %c0_120 = arith.constant 0 : index
    %140 = vector.load %arg7[%c0_119, %c0_120] : memref<144x16xbf16, #tpu.memory_space<vmem>>, vector<144x16xbf16>
    %141 = vector.extract_strided_slice %117 {offsets = [16, 0], sizes = [16, 128], strides = [1, 1]} : vector<32x128xbf16> to vector<16x128xbf16>
    %cst_121 = arith.constant dense<0.000000e+00> : vector<144x128xf32>
    %142 = tpu.matmul %140, %141, %cst_121 {dimension_numbers = #tpu.dot_dimension_numbers<[1], [0], [0], [1], [0, 0, 1, 1], [], []>} : vector<144x16xbf16>, vector<16x128xbf16>, vector<144x128xf32> -> vector<144x128xf32>
    %143 = arith.truncf %142 : vector<144x128xf32> to vector<144x128xbf16>
    %144 = vector.extract_strided_slice %143 {offsets = [0, 0], sizes = [16, 128], strides = [1, 1]} : vector<144x128xbf16> to vector<16x128xbf16>
    %c16_122 = arith.constant 16 : index
    %c0_123 = arith.constant 0 : index
    %145 = vector.load %arg12[%c16_122, %c0_123] : memref<32x1152xbf16, #tpu.memory_space<vmem>>, vector<16x128xbf16>
    tpu.vector_store %arg12[%c16_122, %c0_123], %144 {strides = array<i32>} : memref<32x1152xbf16, #tpu.memory_space<vmem>>, vector<16x128xbf16>,
    %146 = vector.extract_strided_slice %143 {offsets = [16, 0], sizes = [16, 128], strides = [1, 1]} : vector<144x128xbf16> to vector<16x128xbf16>
    %c16_124 = arith.constant 16 : index
    %c128_125 = arith.constant 128 : index
    %147 = vector.load %arg12[%c16_124, %c128_125] : memref<32x1152xbf16, #tpu.memory_space<vmem>>, vector<16x128xbf16>
    tpu.vector_store %arg12[%c16_124, %c128_125], %146 {strides = array<i32>} : memref<32x1152xbf16, #tpu.memory_space<vmem>>, vector<16x128xbf16>,
    %148 = vector.extract_strided_slice %143 {offsets = [32, 0], sizes = [16, 128], strides = [1, 1]} : vector<144x128xbf16> to vector<16x128xbf16>
    %c16_126 = arith.constant 16 : index
    %c256_127 = arith.constant 256 : index
    %149 = vector.load %arg12[%c16_126, %c256_127] : memref<32x1152xbf16, #tpu.memory_space<vmem>>, vector<16x128xbf16>
    tpu.vector_store %arg12[%c16_126, %c256_127], %148 {strides = array<i32>} : memref<32x1152xbf16, #tpu.memory_space<vmem>>, vector<16x128xbf16>,
    %150 = vector.extract_strided_slice %143 {offsets = [48, 0], sizes = [16, 128], strides = [1, 1]} : vector<144x128xbf16> to vector<16x128xbf16>
    %c16_128 = arith.constant 16 : index
    %c384_129 = arith.constant 384 : index
    %151 = vector.load %arg12[%c16_128, %c384_129] : memref<32x1152xbf16, #tpu.memory_space<vmem>>, vector<16x128xbf16>
    tpu.vector_store %arg12[%c16_128, %c384_129], %150 {strides = array<i32>} : memref<32x1152xbf16, #tpu.memory_space<vmem>>, vector<16x128xbf16>,
    %152 = vector.extract_strided_slice %143 {offsets = [64, 0], sizes = [16, 128], strides = [1, 1]} : vector<144x128xbf16> to vector<16x128xbf16>
    %c16_130 = arith.constant 16 : index
    %c512_131 = arith.constant 512 : index
    %153 = vector.load %arg12[%c16_130, %c512_131] : memref<32x1152xbf16, #tpu.memory_space<vmem>>, vector<16x128xbf16>
    tpu.vector_store %arg12[%c16_130, %c512_131], %152 {strides = array<i32>} : memref<32x1152xbf16, #tpu.memory_space<vmem>>, vector<16x128xbf16>,
    %154 = vector.extract_strided_slice %143 {offsets = [80, 0], sizes = [16, 128], strides = [1, 1]} : vector<144x128xbf16> to vector<16x128xbf16>
    %c16_132 = arith.constant 16 : index
    %c640_133 = arith.constant 640 : index
    %155 = vector.load %arg12[%c16_132, %c640_133] : memref<32x1152xbf16, #tpu.memory_space<vmem>>, vector<16x128xbf16>
    tpu.vector_store %arg12[%c16_132, %c640_133], %154 {strides = array<i32>} : memref<32x1152xbf16, #tpu.memory_space<vmem>>, vector<16x128xbf16>,
    %156 = vector.extract_strided_slice %143 {offsets = [96, 0], sizes = [16, 128], strides = [1, 1]} : vector<144x128xbf16> to vector<16x128xbf16>
    %c16_134 = arith.constant 16 : index
    %c768_135 = arith.constant 768 : index
    %157 = vector.load %arg12[%c16_134, %c768_135] : memref<32x1152xbf16, #tpu.memory_space<vmem>>, vector<16x128xbf16>
    tpu.vector_store %arg12[%c16_134, %c768_135], %156 {strides = array<i32>} : memref<32x1152xbf16, #tpu.memory_space<vmem>>, vector<16x128xbf16>,
    %158 = vector.extract_strided_slice %143 {offsets = [112, 0], sizes = [16, 128], strides = [1, 1]} : vector<144x128xbf16> to vector<16x128xbf16>
    %c16_136 = arith.constant 16 : index
    %c896_137 = arith.constant 896 : index
    %159 = vector.load %arg12[%c16_136, %c896_137] : memref<32x1152xbf16, #tpu.memory_space<vmem>>, vector<16x128xbf16>
    tpu.vector_store %arg12[%c16_136, %c896_137], %158 {strides = array<i32>} : memref<32x1152xbf16, #tpu.memory_space<vmem>>, vector<16x128xbf16>,
    %160 = vector.extract_strided_slice %143 {offsets = [128, 0], sizes = [16, 128], strides = [1, 1]} : vector<144x128xbf16> to vector<16x128xbf16>
    %c16_138 = arith.constant 16 : index
    %c1024_139 = arith.constant 1024 : index
    %161 = vector.load %arg12[%c16_138, %c1024_139] : memref<32x1152xbf16, #tpu.memory_space<vmem>>, vector<16x128xbf16>
    tpu.vector_store %arg12[%c16_138, %c1024_139], %160 {strides = array<i32>} : memref<32x1152xbf16, #tpu.memory_space<vmem>>, vector<16x128xbf16>,
    %c0_140 = arith.constant 0 : index
    %c0_141 = arith.constant 0 : index
    %162 = vector.load %arg12[%c0_140, %c0_141] : memref<32x1152xbf16, #tpu.memory_space<vmem>>, vector<32x1152xbf16>
    %c0_142 = arith.constant 0 : index
    %c0_143 = arith.constant 0 : index
    %163 = vector.load %arg8[%c0_142, %c0_143] : memref<1152x128xbf16, #tpu.memory_space<vmem>>, vector<1152x128xbf16>
    %cst_144 = arith.constant dense<0.000000e+00> : vector<32x128xf32>
    %164 = tpu.matmul %162, %163, %cst_144 {dimension_numbers = #tpu.dot_dimension_numbers<[1], [0], [0], [1], [0, 0, 1, 1], [], []>} : vector<32x1152xbf16>, vector<1152x128xbf16>, vector<32x128xf32> -> vector<32x128xf32>
    %c3 = arith.constant 3 : index
    %c0_145 = arith.constant 0 : index
    %c0_146 = arith.constant 0 : index
    %165 = vector.load %arg10[%c3, %c0_145, %c0_146] : memref<5x1x128xf32, #tpu.memory_space<vmem>>, vector<1x1x128xf32>
    %166 = vector.shape_cast %165 : vector<1x1x128xf32> to vector<1x128xf32>
    %167 = vector.broadcast %166 : vector<1x128xf32> to vector<32x128xf32>
    %168 = arith.addf %164, %167 : vector<32x128xf32>
    %cst_147 = arith.constant 0.000000e+00 : f32
    %169 = vector.broadcast %cst_147 : f32 to vector<32x128xf32>
    %170 = arith.maximumf %168, %169 : vector<32x128xf32>
    %171 = arith.truncf %170 : vector<32x128xf32> to vector<32x128xbf16>
    %c0_148 = arith.constant 0 : index
    %c0_149 = arith.constant 0 : index
    %172 = vector.load %arg9[%c0_148, %c0_149] : memref<128x128xbf16, #tpu.memory_space<vmem>>, vector<128x128xbf16>
    %cst_150 = arith.constant dense<0.000000e+00> : vector<32x128xf32>
    %173 = tpu.matmul %171, %172, %cst_150 {dimension_numbers = #tpu.dot_dimension_numbers<[1], [0], [0], [1], [0, 0, 1, 1], [], []>} : vector<32x128xbf16>, vector<128x128xbf16>, vector<32x128xf32> -> vector<32x128xf32>
    %c4 = arith.constant 4 : index
    %c0_151 = arith.constant 0 : index
    %c0_152 = arith.constant 0 : index
    %174 = vector.load %arg10[%c4, %c0_151, %c0_152] : memref<5x1x128xf32, #tpu.memory_space<vmem>>, vector<1x1x128xf32>
    %175 = vector.shape_cast %174 : vector<1x1x128xf32> to vector<1x128xf32>
    %176 = vector.broadcast %175 : vector<1x128xf32> to vector<32x128xf32>
    %177 = arith.addf %173, %176 : vector<32x128xf32>
    %cst_153 = arith.constant 0.000000e+00 : f32
    %178 = vector.broadcast %cst_153 : f32 to vector<32x128xf32>
    %179 = arith.maximumf %177, %178 : vector<32x128xf32>
    %c0_154 = arith.constant 0 : index
    %c0_155 = arith.constant 0 : index
    %180 = vector.load %arg11[%c0_154, %c0_155] : memref<32x128xf32, #tpu.memory_space<vmem>>, vector<32x128xf32>
    tpu.vector_store %arg11[%c0_154, %c0_155], %179 {strides = array<i32>} : memref<32x128xf32, #tpu.memory_space<vmem>>, vector<32x128xf32>,
    return
  }
  func.func @transform_0(%arg0: i32) -> (i32, i32) {
    %c0_i32 = arith.constant 0 : i32
    %c0_i32_0 = arith.constant 0 : i32
    %c0_i32_1 = arith.constant 0 : i32
    return %c0_i32, %c0_i32_0 : i32, i32
  }
  func.func @transform_1(%arg0: i32) -> (i32, i32) {
    %c0_i32 = arith.constant 0 : i32
    %c0_i32_0 = arith.constant 0 : i32
    %c0_i32_1 = arith.constant 0 : i32
    return %c0_i32, %c0_i32_0 : i32, i32
  }
  func.func @transform_2(%arg0: i32) -> (i32, i32) {
    %c0_i32 = arith.constant 0 : i32
    %c0_i32_0 = arith.constant 0 : i32
    %c0_i32_1 = arith.constant 0 : i32
    return %c0_i32, %c0_i32_0 : i32, i32
  }
  func.func @transform_3(%arg0: i32) -> (i32, i32) {
    %c0_i32 = arith.constant 0 : i32
    %c0_i32_0 = arith.constant 0 : i32
    %c0_i32_1 = arith.constant 0 : i32
    return %c0_i32, %c0_i32_0 : i32, i32
  }
  func.func @transform_4(%arg0: i32) -> (i32, i32) {
    %c0_i32 = arith.constant 0 : i32
    %c0_i32_0 = arith.constant 0 : i32
    %c0_i32_1 = arith.constant 0 : i32
    return %c0_i32, %c0_i32_0 : i32, i32
  }
  func.func @transform_5(%arg0: i32) -> (i32, i32) {
    %c0_i32 = arith.constant 0 : i32
    %c0_i32_0 = arith.constant 0 : i32
    %c0_i32_1 = arith.constant 0 : i32
    return %c0_i32, %c0_i32_0 : i32, i32
  }
  func.func @transform_6(%arg0: i32) -> (i32, i32) {
    %c0_i32 = arith.constant 0 : i32
    %c0_i32_0 = arith.constant 0 : i32
    %c0_i32_1 = arith.constant 0 : i32
    return %c0_i32, %c0_i32_0 : i32, i32
  }
  func.func @transform_7(%arg0: i32) -> (i32, i32) {
    %c0_i32 = arith.constant 0 : i32
    %c0_i32_0 = arith.constant 0 : i32
    %c0_i32_1 = arith.constant 0 : i32
    return %c0_i32, %c0_i32_0 : i32, i32
  }
  func.func @transform_8(%arg0: i32) -> (i32, i32) {
    %c0_i32 = arith.constant 0 : i32
    %c0_i32_0 = arith.constant 0 : i32
    %c0_i32_1 = arith.constant 0 : i32
    return %c0_i32, %c0_i32_0 : i32, i32
  }
  func.func @transform_9(%arg0: i32) -> (i32, i32, i32) {
    %c0_i32 = arith.constant 0 : i32
    %c0_i32_0 = arith.constant 0 : i32
    %c0_i32_1 = arith.constant 0 : i32
    %c0_i32_2 = arith.constant 0 : i32
    return %c0_i32, %c0_i32_0, %c0_i32_1 : i32, i32, i32
  }
  func.func @transform_10(%arg0: i32) -> (i32, i32) {
    %c0_i32 = arith.constant 0 : i32
    %c0_i32_0 = arith.constant 0 : i32
    %c0_i32_1 = arith.constant 0 : i32
    return %c0_i32, %c0_i32_0 : i32, i32
  }
}

</mosaic_0001>

<bundles_post_ra>
// kernel: _lambda_.1
= control target key start
LH: loop header
LB: loop body
LE: loop exit
PB: predicated region body
PF: predicated region fallthrough
CT: control target
= control target key end

     0   :  { %v5729_v16 = vmov 0.0   ;;  %vm5730_vm0 = vmmov 0   ;;  %vm355_vm1 = vcmask 523264   ;;  %vm1635_vm2 = vcmask 130048   ;;  %s6925_s1 = inlined_call_operand.vmem [shape: bf16[128,128], index: 1, kind: input, shape index: {}]   ;;  %s6926_s0 = inlined_call_operand.vmem [shape: bf16[128,128], index: 0, kind: input, shape index: {}]   ;;  %s6927_s2 = inlined_call_operand.vmem [shape: bf16[144,64], index: 2, kind: input, shape index: {}]   ;;  %s6928_s3 = inlined_call_operand.vmem [shape: bf16[1152,128], index: 3, kind: input, shape index: {}]   ;;  %s6929_s9 = inlined_call_operand.vmem [shape: f32[5,1,128], index: 9, kind: input, shape index: {}]   ;;  %s6930_s4 = inlined_call_operand.vmem [shape: bf16[144,16], index: 4, kind: input, shape index: {}]   ;;  %s6931_s5 = inlined_call_operand.vmem [shape: bf16[1152,128], index: 5, kind: input, shape index: {}]   ;;  %s6932_s6 = inlined_call_operand.vmem [shape: bf16[144,16], index: 6, kind: input, shape index: {}]   ;;  %s6933_s7 = inlined_call_operand.vmem [shape: bf16[1152,128], index: 7, kind: input, shape index: {}]   ;;  %s6934_s8 = inlined_call_operand.vmem [shape: bf16[128,128], index: 8, kind: input, shape index: {}]   ;;  %s6935_s10 = inlined_call_operand.vmem [shape: f32[32,128], index: 10, kind: output, shape index: {}]  }
   0x1   :  { %v5435_v0 = vld [vmem:[%s6925_s1] sm:$0xff]   ;;  %v5436_v1 = vld [vmem:[%s6925_s1 + $0x8] sm:$0xff]   ;;  %v5437_v2 = vld [vmem:[%s6925_s1 + $0x10] sm:$0xff]   ;;  %5111 = vmatprep.subr.bf16.mxu1 %v5729_v16  ;;  %5119 = vmatprep.mubr.msk.bf16.mxu1 %vm5730_vm0, %v5729_v16 }
   0x2   :  { %5079 = vmatprep.subr.bf16.mxu0 %v5435_v0  ;;  %v5438_v3 = vld [vmem:[%s6925_s1 + $0x18] sm:$0xff]   ;;  %v5443_v4 = vld [vmem:[%s6926_s0] sm:$0xff]   ;;  %v5440_v6 = vld [vmem:[%s6925_s1 + $0x28] sm:$0xff]  }
   0x3   :  { %5080 = vmatpush3.bf16.msra.mxu0 %v5435_v0  ;;  %5095 = vmatprep.mubr.bf16.mxu0 %v5443_v4  ;;  %v5439_v5 = vld [vmem:[%s6925_s1 + $0x20] sm:$0xff]   ;;  %v5441_v7 = vld [vmem:[%s6925_s1 + $0x30] sm:$0xff]   ;;  %v5442_v8 = vld [vmem:[%s6925_s1 + $0x38] sm:$0xff]  }
   0x4   :  { %5081 = vmatprep.subr.bf16.mxu0 %v5436_v1  ;;  %v5444_v9 = vld [vmem:[%s6926_s0 + $0x8] sm:$0xff]   ;;  %v5445_v10 = vld [vmem:[%s6926_s0 + $0x10] sm:$0xff]   ;;  %v5446_v11 = vld [vmem:[%s6926_s0 + $0x18] sm:$0xff]  }
   0x5   :  { %v5447_v12 = vld [vmem:[%s6926_s0 + $0x20] sm:$0xff]   ;;  %v5448_v13 = vld [vmem:[%s6926_s0 + $0x28] sm:$0xff]   ;;  %v5449_v14 = vld [vmem:[%s6926_s0 + $0x30] sm:$0xff]  }
   0x6   :  { %v5450_v15 = vld [vmem:[%s6926_s0 + $0x38] sm:$0xff]   ;;  %v5843_v17 = vld [vmem:[%s6929_s9] ss:$0 sm:$0xff]  ;;  %v5471_v0 = vld [vmem:[%s6928_s3 + $0x48] sm:$0xff]  }
   0x7   :  { %5082 = vmatpush3.bf16.msra.mxu0 %v5436_v1  ;;  %v5469_v53 = vld [vmem:[%s6928_s3 + $0x40] sm:$0xff]  }
   0x8   :  { %5083 = vmatprep.subr.bf16.mxu0 %v5437_v2  ;;  %v5451_v55 = vld [vmem:[%s6927_s2] sm:$0xff]  }
   0x9   :  { %v5470_v58 = vld [vmem:[%s6928_s3] sm:$0xff]  }
   0xb   :  { %5084 = vmatpush3.bf16.msra.mxu0 %v5437_v2 }
   0xc   :  { %5085 = vmatprep.subr.bf16.mxu0 %v5438_v3 }
   0xf   :  { %5086 = vmatpush3.bf16.msra.mxu0 %v5438_v3 }
  0x10   :  { %5087 = vmatprep.subr.bf16.mxu0 %v5439_v5 }
  0x13   :  { %5088 = vmatpush3.bf16.msra.mxu0 %v5439_v5 }
  0x14   :  { %5089 = vmatprep.subr.bf16.mxu0 %v5440_v6 }
  0x17   :  { %5090 = vmatpush3.bf16.msra.mxu0 %v5440_v6 }
  0x18   :  { %5091 = vmatprep.subr.bf16.mxu0 %v5441_v7 }
  0x1b   :  { %5092 = vmatpush3.bf16.msra.mxu0 %v5441_v7  ;;  %v5452_v7 = vld [vmem:[%s6927_s2 + $0x8] sm:$0xff]  }
  0x1c   :  { %5093 = vmatprep.subr.bf16.mxu0 %v5442_v8 }
  0x1f   :  { %5094 = vmatpush3.bf16.msra.mxu0 %v5442_v8  ;;  %v5472_v8 = vld [vmem:[%s6928_s3 + $0x8] sm:$0xff]  }
  0x20   :  { %5155 = vmatprep.subr.bf16.mxu0 %v5729_v16 }
  0x22   :  { %5096 = vmatmul.mubr.bf16.vlgmr.msra.gmra.mrb[0].mxu0 %v5444_v9 }
  0x23   :  { %5099 = vmatprep.mubr.bf16.mxu0 %v5445_v10  ;;  %v5473_v10 = vld [vmem:[%s6928_s3 + $0x50] sm:$0xff]  }
  0x2a   :  { %5100 = vmatmul.mubr.bf16.gmra.mrb[4].mxu0 %v5446_v11 }
  0x2b   :  { %5103 = vmatprep.mubr.bf16.mxu0 %v5447_v12 }
  0x32   :  { %5104 = vmatmul.mubr.bf16.gmra.mrb[8].mxu0 %v5448_v13  ;;  %v5474_v13 = vld [vmem:[%s6928_s3 + $0x10] sm:$0xff]  }
  0x33   :  { %5107 = vmatprep.mubr.bf16.mxu0 %v5449_v14 }
  0x3a   :  { %5108 = vmatmul.mubr.bf16.gmra.mrb[12].mxu0 %v5450_v15 }
  0x3b   :  { %5163 = vmatprep.mubr.msk.bf16.mxu0 %vm5730_vm0, %v5729_v16 }
  0xf5   :  { %v5097_v18 = vpop.f32.mrb[0].mxu0 }
  0xf6   :  { %v214_v19 = vadd.f32 %v5097_v18, %v5843_v17  ;;  %v205_v20 = vpop.f32.mrb[1].mxu0  ;;  %v5475_v18 = vld [vmem:[%s6928_s3 + $0x58] sm:$0xff]  }
  0xf7   :  { %v206_v21 = vadd.f32 %v5843_v17, %v205_v20  ;;  %v5098_v22 = vpop.f32.mrb[2].mxu0  ;;  %v5476_v20 = vld [vmem:[%s6928_s3 + $0x18] sm:$0xff]  }
  0xf8   :  { %v217_v23 = vadd.f32 %v5098_v22, %v5843_v17  ;;  %v208_v24 = vpop.f32.mrb[3].mxu0  ;;  %v270_v26 = vmax.f32 %v214_v19, 0.0  ;;  %v5477_v22 = vld [vmem:[%s6928_s3 + $0x60] sm:$0xff]  }
  0xf9   :  { %v209_v25 = vadd.f32 %v5843_v17, %v208_v24  ;;  %v268_v28 = vmax.f32 %v206_v21, 0.0  ;;  %v5479_v21 = vld [vmem:[%s6928_s3 + $0x140] sm:$0xff]  }
  0xfa   :  { %v271_v27 = vmax.f32 %v217_v23, 0.0  ;;  %v5453_v23 = vld [vmem:[%s6927_s2 + $0x10] sm:$0xff]   ;;  %v5454_v24 = vld [vmem:[%s6927_s2] sm:$0xff]  }
  0xfb   :  { %v269_v29 = vmax.f32 %v209_v25, 0.0  ;;  %v5478_v25 = vld [vmem:[%s6928_s3 + $0x20] sm:$0xff]  }
  0xfc   :  { %v285_v30 = vpack.c.bf16 %v271_v27, %v270_v26  ;;  %v5480_v26 = vld [vmem:[%s6928_s3 + $0x100] sm:$0xff]   ;;  %v5481_v27 = vld [vmem:[%s6928_s3 + $0x68] sm:$0xff]  }
  0xfd   :  { %v5101_v31 = vpop.f32.mrb[4].mxu0  ;;  %v284_v32 = vpack.c.bf16 %v269_v29, %v268_v28  ;;  %v5482_v28 = vld [vmem:[%s6928_s3 + $0x28] sm:$0xff]   ;;  %v5455_v29 = vld [vmem:[%s6927_s2 + $0x18] sm:$0xff]  }
  0xfe   :  { %v230_v33 = vadd.f32 %v5101_v31, %v5843_v17  ;;  %v221_v34 = vpop.f32.mrb[5].mxu0  ;;  %v5457_v31 = vld [vmem:[%s6927_s2 + $0x20] sm:$0xff]  }
  0xff   :  { %v222_v35 = vadd.f32 %v5843_v17, %v221_v34  ;;  %v5102_v36 = vpop.f32.mrb[6].mxu0  ;;  %5112 = vmatpush3.bf16.msra.mxu1 %v284_v32  ;;  %v5458_v32 = vld [vmem:[%s6927_s2 + $0x10] sm:$0xff]   ;;  %v5460_v34 = vld [vmem:[%s6927_s2 + $0x18] sm:$0xff]  }
 0x100   :  { %v233_v37 = vadd.f32 %v5102_v36, %v5843_v17  ;;  %v224_v38 = vpop.f32.mrb[7].mxu0  ;;  %5113 = vmatprep.subr.bf16.mxu1 %v5729_v16  ;;  %v274_v40 = vmax.f32 %v230_v33, 0.0  ;;  %v5459_v33 = vld [vmem:[%s6927_s2 + $0x28] sm:$0xff]   ;;  %v5463_v36 = vld [vmem:[%s6927_s2 + $0x30] sm:$0xff]  }
 0x101   :  { %v225_v39 = vadd.f32 %v5843_v17, %v224_v38  ;;  %v272_v42 = vmax.f32 %v222_v35, 0.0  ;;  %v5461_v35 = vld [vmem:[%s6927_s2 + $0x20] sm:$0xff]   ;;  %v5465_v38 = vld [vmem:[%s6927_s2 + $0x38] sm:$0xff]  }
 0x102   :  { %v275_v41 = vmax.f32 %v233_v37, 0.0  ;;  %v5462_v37 = vld [vmem:[%s6927_s2 + $0x28] sm:$0xff]  }
 0x103   :  { %v273_v43 = vmax.f32 %v225_v39, 0.0  ;;  %5114 = vmatpush3.bf16.msra.mxu1 %v285_v30  ;;  %v5456_v30 = vld [vmem:[%s6927_s2 + $0x8] sm:$0xff]   ;;  %v5464_v39 = vld [vmem:[%s6927_s2 + $0x30] sm:$0xff]  }
 0x104   :  { %v287_v44 = vpack.c.bf16 %v275_v41, %v274_v40  ;;  %5115 = vmatprep.subr.bf16.mxu1 %v5729_v16  ;;  %v5467_v40 = vld [vmem:[%s6927_s2 + $0x40] sm:$0xff]   ;;  %v5466_v41 = vld [vmem:[%s6927_s2 + $0x38] sm:$0xff]  }
 0x105   :  { %v286_v45 = vpack.c.bf16 %v273_v43, %v272_v42  ;;  %v5105_v46 = vpop.f32.mrb[8].mxu0  ;;  %v5468_v42 = vld [vmem:[%s6927_s2 + $0x40] sm:$0xff]   ;;  %v5483_v43 = vld [vmem:[%s6928_s3 + $0x70] sm:$0xff]  }
 0x106   :  { %v246_v47 = vadd.f32 %v5105_v46, %v5843_v17  ;;  %v237_v48 = vpop.f32.mrb[9].mxu0  ;;  %v5487_v46 = vld [vmem:[%s6928_s3 + $0x78] sm:$0xff]  }
 0x107   :  { %v238_v49 = vadd.f32 %v5843_v17, %v237_v48  ;;  %v5106_v50 = vpop.f32.mrb[10].mxu0  ;;  %5116 = vmatpush3.bf16.msra.mxu1 %v286_v45  ;;  %v5485_v45 = vld [vmem:[%s6928_s3 + $0x148] sm:$0xff]   ;;  %v5488_v48 = vld [vmem:[%s6928_s3 + $0x38] sm:$0xff]  }
 0x108   :  { %v249_v51 = vadd.f32 %v5106_v50, %v5843_v17  ;;  %v240_v52 = vpop.f32.mrb[11].mxu0  ;;  %5117 = vmatprep.subr.bf16.mxu1 %v5729_v16  ;;  %v278_v56 = vmax.f32 %v246_v47, 0.0  ;;  %v5486_v47 = vld [vmem:[%s6928_s3 + $0x108] sm:$0xff]   ;;  %v5491_v50 = vld [vmem:[%s6928_s3 + $0x150] sm:$0xff]  }
 0x109   :  { %v241_v54 = vadd.f32 %v5843_v17, %v240_v52  ;;  %v276_v59 = vmax.f32 %v238_v49, 0.0  ;;  %v5489_v49 = vld [vmem:[%s6928_s3 + $0xc0] sm:$0xff]   ;;  %v5498_v52 = vld [vmem:[%s6928_s3 + $0x158] sm:$0xff]  }
 0x10a   :  { %v279_v57 = vmax.f32 %v249_v51, 0.0  ;;  %v5493_v51 = vld [vmem:[%s6928_s3 + $0x110] sm:$0xff]  }
 0x10b   :  { %v277_v60 = vmax.f32 %v241_v54, 0.0  ;;  %5118 = vmatpush3.bf16.msra.mxu1 %v287_v44  ;;  %v5484_v44 = vld [vmem:[%s6928_s3 + $0x30] sm:$0xff]   ;;  %v5503_v54 = vld [vmem:[%s6928_s3 + $0x160] sm:$0xff]  }
 0x10c   :  { %v289_v61 = vpack.c.bf16 %v279_v57, %v278_v56  ;;  %4663 = vmatprep.subr.bf16.mxu1 %v5469_v53  ;;  %v5500_v53 = vld [vmem:[%s6928_s3 + $0x118] sm:$0xff]   ;;  %v5507_v56 = vld [vmem:[%s6928_s3 + $0x168] sm:$0xff]  }
 0x10d   :  { %v288_v62 = vpack.c.bf16 %v277_v60, %v276_v59  ;;  %v5109_v63 = vpop.f32.mrb[12].mxu0  ;;  %v5508_v57 = vld [vmem:[%s6928_s3 + $0x128] sm:$0xff]   ;;  %v5512_v59 = vld [vmem:[%s6928_s3 + $0x130] sm:$0xff]   ;;  %v5515_v60 = vld [vmem:[%s6928_s3 + $0x178] sm:$0xff]  }
 0x10e   :  { %v262_v1 = vadd.f32 %v5109_v63, %v5843_v17  ;;  %v253_v2 = vpop.f32.mrb[13].mxu0  ;;  %5120 = vmatmul.mubr.msk.bf16.vlgmr.msra.gmra.mrb[0].mxu1 %vm355_vm1, %v5451_v55  ;;  %v5504_v55 = vld [vmem:[%s6928_s3 + $0x120] sm:$0xff]  }
 0x10f   :  { %v254_v3 = vadd.f32 %v5843_v17, %v253_v2  ;;  %v5110_v4 = vpop.f32.mrb[14].mxu0  ;;  %5156 = vmatpush3.bf16.msra.mxu0 %v288_v62  ;;  %5123 = vmatprep.mubr.msk.bf16.mxu1 %vm5730_vm0, %v5729_v16  ;;  %v6073_v62 = vld [vmem:[%s6928_s3 + $0x200] sm:$0xff]  }
 0x110   :  { %v265_v5 = vadd.f32 %v5110_v4, %v5843_v17  ;;  %v256_v6 = vpop.f32.mrb[15].mxu0  ;;  %5157 = vmatprep.subr.bf16.mxu0 %v5729_v16  ;;  %4664 = vmatpush3.bf16.msra.mxu1 %v5470_v58  ;;  %v282_v11 = vmax.f32 %v262_v1, 0.0  ;;  %v5511_v58 = vld [vmem:[%s6928_s3 + $0x170] sm:$0xff]  }
 0x111   :  { %v257_v9 = vadd.f32 %v5843_v17, %v256_v6  ;;  %4665 = vmatprep.subr.bf16.mxu1 %v5471_v0  ;;  %v280_v14 = vmax.f32 %v254_v3, 0.0 }
 0x112   :  { %v283_v12 = vmax.f32 %v265_v5, 0.0 }
 0x113   :  { %v281_v15 = vmax.f32 %v257_v9, 0.0  ;;  %5158 = vmatpush3.bf16.msra.mxu0 %v289_v61  ;;  %v5516_v61 = vld [vmem:[%s6928_s3 + $0x138] sm:$0xff]  }
 0x114   :  { %v291_v19 = vpack.c.bf16 %v283_v12, %v282_v11  ;;  %5159 = vmatprep.subr.bf16.mxu0 %v5729_v16  ;;  %4666 = vmatpush3.bf16.msra.mxu1 %v5472_v8  ;;  %v5490_v8 = vld [vmem:[%s6928_s3 + $0x80] sm:$0xff]   ;;  %v5494_v11 = vld [vmem:[%s6928_s3 + $0x88] sm:$0xff]  }
 0x115   :  { %v290_v17 = vpack.c.bf16 %v281_v15, %v280_v14  ;;  %4667 = vmatprep.subr.bf16.mxu1 %v5473_v10  ;;  %v5492_v10 = vld [vmem:[%s6928_s3 + $0xc8] sm:$0xff]  }
 0x116   :  { %5124 = vmatmul.mubr.msk.bf16.gmra.mrb[4].mxu1 %vm355_vm1, %v5452_v7 }
 0x117   :  { %5160 = vmatpush3.bf16.msra.mxu0 %v290_v17  ;;  %5127 = vmatprep.mubr.msk.bf16.mxu1 %vm5730_vm0, %v5729_v16 }
 0x118   :  { %5161 = vmatprep.subr.bf16.mxu0 %v5729_v16  ;;  %4668 = vmatpush3.bf16.msra.mxu1 %v5474_v13  ;;  %v5495_v13 = vld [vmem:[%s6928_s3 + $0xd0] sm:$0xff]  }
 0x119   :  { %4669 = vmatprep.subr.bf16.mxu1 %v5475_v18 }
 0x11b   :  { %5162 = vmatpush3.bf16.msra.mxu0 %v291_v19 }
 0x11c   :  { %4670 = vmatpush3.bf16.msra.mxu1 %v5476_v20  ;;  %4719 = vmatprep.subr.bf16.mxu0 %v5479_v21 }
 0x11d   :  { %4671 = vmatprep.subr.bf16.mxu1 %v5477_v22  ;;  %v5496_v22 = vld [vmem:[%s6928_s3 + $0x90] sm:$0xff]  }
 0x11e   :  { %5128 = vmatmul.mubr.msk.bf16.gmra.mrb[8].mxu1 %vm355_vm1, %v5453_v23  ;;  %5164 = vmatmul.mubr.msk.bf16.vlgmr.msra.gmra.mrb[16].mxu0 %vm355_vm1, %v5454_v24 }
 0x11f   :  { %5131 = vmatprep.mubr.msk.bf16.mxu1 %vm5730_vm0, %v5729_v16  ;;  %5167 = vmatprep.mubr.msk.bf16.mxu0 %vm5730_vm0, %v5729_v16 }
 0x120   :  { %4672 = vmatpush3.bf16.msra.mxu1 %v5478_v25  ;;  %4720 = vmatpush3.bf16.msra.mxu0 %v5480_v26  ;;  %v5497_v25 = vld [vmem:[%s6928_s3 + $0xd8] sm:$0xff]  }
 0x121   :  { %4673 = vmatprep.subr.bf16.mxu1 %v5481_v27  ;;  %4721 = vmatprep.subr.bf16.mxu0 %v5485_v45  ;;  %v5499_v26 = vld [vmem:[%s6928_s3 + $0x98] sm:$0xff]  }
 0x124   :  { %4674 = vmatpush3.bf16.msra.mxu1 %v5482_v28  ;;  %4722 = vmatpush3.bf16.msra.mxu0 %v5486_v47  ;;  %v5501_v28 = vld [vmem:[%s6928_s3 + $0xe0] sm:$0xff]  }
 0x125   :  { %4675 = vmatprep.subr.bf16.mxu1 %v5483_v43  ;;  %4723 = vmatprep.subr.bf16.mxu0 %v5491_v50  ;;  %v5509_v43 = vld [vmem:[%s6928_s3 + $0xf0] sm:$0xff]  }
 0x126   :  { %5132 = vmatmul.mubr.msk.bf16.gmra.mrb[12].mxu1 %vm355_vm1, %v5455_v29  ;;  %5168 = vmatmul.mubr.msk.bf16.gmra.mrb[20].mxu0 %vm355_vm1, %v5456_v30 }
 0x127   :  { %5135 = vmatprep.mubr.msk.bf16.mxu1 %vm5730_vm0, %v5729_v16  ;;  %5171 = vmatprep.mubr.msk.bf16.mxu0 %vm5730_vm0, %v5729_v16 }
 0x128   :  { %4676 = vmatpush3.bf16.msra.mxu1 %v5484_v44  ;;  %4724 = vmatpush3.bf16.msra.mxu0 %v5493_v51  ;;  %v5510_v51 = vld [vmem:[%s6928_s3 + $0xb0] sm:$0xff]  }
 0x129   :  { %4677 = vmatprep.subr.bf16.mxu1 %v5487_v46  ;;  %4725 = vmatprep.subr.bf16.mxu0 %v5498_v52 }
 0x12c   :  { %4678 = vmatpush3.bf16.msra.mxu1 %v5488_v48  ;;  %4726 = vmatpush3.bf16.msra.mxu0 %v5500_v53  ;;  %v5513_v53 = vld [vmem:[%s6928_s3 + $0xf8] sm:$0xff]  }
 0x12d   :  { %4691 = vmatprep.subr.bf16.mxu1 %v5489_v49  ;;  %4727 = vmatprep.subr.bf16.mxu0 %v5503_v54  ;;  %v5514_v54 = vld [vmem:[%s6928_s3 + $0xb8] sm:$0xff]  }
 0x12e   :  { %5136 = vmatmul.mubr.msk.bf16.gmra.mrb[16].mxu1 %vm355_vm1, %v5457_v31  ;;  %5172 = vmatmul.mubr.msk.bf16.gmra.mrb[24].mxu0 %vm355_vm1, %v5458_v32 }
 0x12f   :  { %5139 = vmatprep.mubr.msk.bf16.mxu1 %vm5730_vm0, %v5729_v16  ;;  %5175 = vmatprep.mubr.msk.bf16.mxu0 %vm5730_vm0, %v5729_v16 }
 0x130   :  { %4728 = vmatpush3.bf16.msra.mxu0 %v5504_v55 }
 0x131   :  { %4729 = vmatprep.subr.bf16.mxu0 %v5507_v56 }
 0x134   :  { %4730 = vmatpush3.bf16.msra.mxu0 %v5508_v57  ;;  %v5517_v57 = vld [vmem:[%s6928_s3 + $0x1c0] sm:$0xff]  }
 0x135   :  { %4731 = vmatprep.subr.bf16.mxu0 %v5511_v58 }
 0x136   :  { %5140 = vmatmul.mubr.msk.bf16.gmra.mrb[20].mxu1 %vm355_vm1, %v5459_v33  ;;  %5176 = vmatmul.mubr.msk.bf16.gmra.mrb[28].mxu0 %vm355_vm1, %v5460_v34 }
 0x137   :  { %5179 = vmatprep.mubr.msk.bf16.mxu0 %vm5730_vm0, %v5729_v16  ;;  %5143 = vmatprep.mubr.msk.bf16.mxu1 %vm5730_vm0, %v5729_v16 }
 0x138   :  { %4732 = vmatpush3.bf16.msra.mxu0 %v5512_v59 }
 0x139   :  { %4733 = vmatprep.subr.bf16.mxu0 %v5515_v60 }
 0x13c   :  { %4734 = vmatpush3.bf16.msra.mxu0 %v5516_v61 }
 0x13d   :  { %5199 = vmatprep.subr.bf16.mxu0 %v6073_v62 }
 0x13e   :  { %5180 = vmatmul.mubr.msk.bf16.gmra.mrb[32].mxu0 %vm355_vm1, %v5461_v35  ;;  %5144 = vmatmul.mubr.msk.bf16.gmra.mrb[24].mxu1 %vm355_vm1, %v5463_v36  ;;  %v5502_v36 = vld [vmem:[%s6928_s3 + $0xa0] sm:$0xff]  }
 0x13f   :  { %5183 = vmatprep.mubr.msk.bf16.mxu0 %vm5730_vm0, %v5729_v16  ;;  %5147 = vmatprep.mubr.msk.bf16.mxu1 %vm5730_vm0, %v5729_v16 }
 0x146   :  { %5184 = vmatmul.mubr.msk.bf16.gmra.mrb[36].mxu0 %vm355_vm1, %v5462_v37  ;;  %5148 = vmatmul.mubr.msk.bf16.gmra.mrb[28].mxu1 %vm355_vm1, %v5465_v38 }
 0x147   :  { %5187 = vmatprep.mubr.msk.bf16.mxu0 %vm5730_vm0, %v5729_v16  ;;  %5151 = vmatprep.mubr.msk.bf16.mxu1 %vm5730_vm0, %v5729_v16 }
 0x14e   :  { %5188 = vmatmul.mubr.msk.bf16.gmra.mrb[40].mxu0 %vm355_vm1, %v5464_v39  ;;  %5152 = vmatmul.mubr.msk.bf16.gmra.mrb[32].mxu1 %vm355_vm1, %v5467_v40  ;;  %v5505_v39 = vld [vmem:[%s6928_s3 + $0xe8] sm:$0xff]  }
 0x14f   :  { %5191 = vmatprep.mubr.msk.bf16.mxu0 %vm5730_vm0, %v5729_v16  ;;  %v5506_v40 = vld [vmem:[%s6928_s3 + $0xa8] sm:$0xff]  }
 0x156   :  { %5192 = vmatmul.mubr.msk.bf16.gmra.mrb[44].mxu0 %vm355_vm1, %v5466_v41 }
 0x157   :  { %5195 = vmatprep.mubr.msk.bf16.mxu0 %vm5730_vm0, %v5729_v16 }
 0x15e   :  { %5196 = vmatmul.mubr.msk.bf16.gmra.mrb[48].mxu0 %vm355_vm1, %v5468_v42 }
 0x1e1   :  { %v417_v63 = vpop.f32.mrb[0].mxu1 }
 0x1e2   :  { %v5121_v0 = vpop.f32.mrb[1].mxu1 }
 0x1e3   :  { %v420_v1 = vpop.f32.mrb[2].mxu1 }
 0x1e4   :  { %v488_v2 = vpack.c.bf16 %v420_v1, %v417_v63  ;;  %v5122_v3 = vpop.f32.mrb[3].mxu1 }
 0x1e9   :  { %v425_v4 = vpop.f32.mrb[4].mxu1 }
 0x1ea   :  { %v5125_v5 = vpop.f32.mrb[5].mxu1 }
 0x1eb   :  { %v428_v6 = vpop.f32.mrb[6].mxu1  ;;  %v5525_v5 = vld [vmem:[%s6928_s3 + $0x208] sm:$0xff]  }
 0x1ec   :  { %v489_v7 = vpack.c.bf16 %v428_v6, %v425_v4  ;;  %v5126_v9 = vpop.f32.mrb[7].mxu1  ;;  %v5519_v4 = vld [vmem:[%s6928_s3 + $0x1c8] sm:$0xff]  }
 0x1ed   :  { %v5520_v6 = vld [vmem:[%s6928_s3 + $0x188] sm:$0xff]  }
 0x1ee   :  { %1353 = vmatprep.mubr.bf16.mxu1 %v489_v7 }
 0x1ef   :  { %1354 = vmatmul.mubr.bf16.vlgmr.msra.gmra.mrb[36].mxu1 %v488_v2  ;;  %v5518_v2 = vld [vmem:[%s6928_s3 + $0x180] sm:$0xff]  }
 0x1f0   :  { %4692 = vmatpush3.bf16.msra.mxu1 %v5490_v8  ;;  %v5521_v8 = vld [vmem:[%s6928_s3 + $0x1d0] sm:$0xff]  }
 0x1f1   :  { %v630_v12 = vpop.f32.mrb[16].mxu0  ;;  %4693 = vmatprep.subr.bf16.mxu1 %v5492_v10  ;;  %v6088_v14 = vpop.f32.mrb[8].mxu1 }
 0x1f2   :  { %v5165_v15 = vpop.f32.mrb[17].mxu0  ;;  %v5129_v18 = vpop.f32.mrb[9].mxu1 }
 0x1f3   :  { %v633_v19 = vpop.f32.mrb[18].mxu0  ;;  %v6090_v17 = vpop.f32.mrb[10].mxu1 }
 0x1f4   :  { %4694 = vmatpush3.bf16.msra.mxu1 %v5494_v11  ;;  %v701_v20 = vpack.c.bf16 %v633_v19, %v630_v12  ;;  %v5166_v21 = vpop.f32.mrb[19].mxu0  ;;  %v490_v23 = vpack.c.bf16 %v6090_v17, %v6088_v14  ;;  %v5130_v24 = vpop.f32.mrb[11].mxu1  ;;  %v5528_v11 = vld [vmem:[%s6928_s3 + $0x210] sm:$0xff]  }
 0x1f5   :  { %4695 = vmatprep.subr.bf16.mxu1 %v5495_v13  ;;  %v5523_v19 = vld [vmem:[%s6928_s3 + $0x190] sm:$0xff]   ;;  %v5531_v21 = vld [vmem:[%s6928_s3 + $0x218] sm:$0xff]   ;;  %v5527_v24 = vld [vmem:[%s6928_s3 + $0x1e0] sm:$0xff]  }
 0x1f8   :  { %4696 = vmatpush3.bf16.msra.mxu1 %v5496_v22  ;;  %v5526_v22 = vld [vmem:[%s6928_s3 + $0x198] sm:$0xff]  }
 0x1f9   :  { %v638_v27 = vpop.f32.mrb[20].mxu0  ;;  %4697 = vmatprep.subr.bf16.mxu1 %v5497_v25  ;;  %v441_v29 = vpop.f32.mrb[12].mxu1 }
 0x1fa   :  { %v5169_v30 = vpop.f32.mrb[21].mxu0  ;;  %v5133_v31 = vpop.f32.mrb[13].mxu1 }
 0x1fb   :  { %v641_v32 = vpop.f32.mrb[22].mxu0  ;;  %v444_v33 = vpop.f32.mrb[14].mxu1 }
 0x1fc   :  { %v702_v34 = vpack.c.bf16 %v641_v32, %v638_v27  ;;  %4698 = vmatpush3.bf16.msra.mxu1 %v5499_v26  ;;  %v5170_v35 = vpop.f32.mrb[23].mxu0  ;;  %v491_v37 = vpack.c.bf16 %v444_v33, %v441_v29  ;;  %v5134_v38 = vpop.f32.mrb[15].mxu1  ;;  %v5534_v27 = vld [vmem:[%s6928_s3 + $0x220] sm:$0xff]  }
 0x1fd   :  { %4699 = vmatprep.subr.bf16.mxu1 %v5501_v28  ;;  %v5529_v33 = vld [vmem:[%s6928_s3 + $0x1a0] sm:$0xff]   ;;  %v5532_v38 = vld [vmem:[%s6928_s3 + $0x1a8] sm:$0xff]  }
 0x1fe   :  { %1361 = vmatprep.mubr.bf16.mxu1 %v702_v34 }
 0x1ff   :  { %1362 = vmatmul.mubr.bf16.gmra.mrb[40].mxu1 %v701_v20  ;;  %v5524_v20 = vld [vmem:[%s6928_s3 + $0x1d8] sm:$0xff]  }
 0x200   :  { %4700 = vmatpush3.bf16.msra.mxu1 %v5502_v36  ;;  %1402 = vmatprep.mubr.bf16.mxu1 %v491_v37  ;;  %v5530_v36 = vld [vmem:[%s6928_s3 + $0x1e8] sm:$0xff]  }
 0x201   :  { %v6115_v41 = vpop.f32.mrb[24].mxu0  ;;  %4701 = vmatprep.subr.bf16.mxu1 %v5505_v39  ;;  %v449_v42 = vpop.f32.mrb[16].mxu1  ;;  %v5537_v37 = vld [vmem:[%s6928_s3 + $0x228] sm:$0xff]  }
 0x202   :  { %v5173_v44 = vpop.f32.mrb[25].mxu0  ;;  %v5137_v45 = vpop.f32.mrb[17].mxu1 }
 0x203   :  { %v649_v46 = vpop.f32.mrb[26].mxu0  ;;  %v452_v47 = vpop.f32.mrb[18].mxu1 }
 0x204   :  { %4702 = vmatpush3.bf16.msra.mxu1 %v5506_v40  ;;  %v703_v48 = vpack.c.bf16 %v649_v46, %v6115_v41  ;;  %v5174_v49 = vpop.f32.mrb[27].mxu0  ;;  %v492_v50 = vpack.c.bf16 %v452_v47, %v449_v42  ;;  %v5138_v52 = vpop.f32.mrb[19].mxu1  ;;  %v5533_v40 = vld [vmem:[%s6928_s3 + $0x1f0] sm:$0xff]  }
 0x205   :  { %4703 = vmatprep.subr.bf16.mxu1 %v5509_v43  ;;  %v5539_v43 = vld [vmem:[%s6928_s3 + $0x230] sm:$0xff]   ;;  %v5536_v52 = vld [vmem:[%s6928_s3 + $0x1f8] sm:$0xff]  }
 0x206   :  { %v5535_v49 = vld [vmem:[%s6928_s3 + $0x1b0] sm:$0xff]  }
 0x208   :  { %4704 = vmatpush3.bf16.msra.mxu1 %v5510_v51 }
 0x209   :  { %v457_v55 = vpop.f32.mrb[20].mxu1  ;;  %v654_v56 = vpop.f32.mrb[28].mxu0  ;;  %4705 = vmatprep.subr.bf16.mxu1 %v5513_v53  ;;  %v5540_v53 = vld [vmem:[%s6928_s3 + $0x238] sm:$0xff]  }
 0x20a   :  { %v5141_v58 = vpop.f32.mrb[21].mxu1  ;;  %v5177_v59 = vpop.f32.mrb[29].mxu0 }
 0x20b   :  { %v460_v60 = vpop.f32.mrb[22].mxu1  ;;  %v657_v61 = vpop.f32.mrb[30].mxu0 }
 0x20c   :  { %v493_v63 = vpack.c.bf16 %v460_v60, %v457_v55  ;;  %4706 = vmatpush3.bf16.msra.mxu1 %v5514_v54  ;;  %v704_v0 = vpack.c.bf16 %v657_v61, %v654_v56  ;;  %v5178_v1 = vpop.f32.mrb[31].mxu0  ;;  %v5142_v3 = vpop.f32.mrb[23].mxu1  ;;  %v5538_v54 = vld [vmem:[%s6928_s3 + $0x1b8] sm:$0xff]  }
 0x20d   :  { %4747 = vmatprep.subr.bf16.mxu1 %v5517_v57 }
 0x20e   :  { %1451 = vmatprep.mubr.bf16.mxu0 %v493_v63 }
 0x20f   :  { %1403 = vmatmul.mubr.bf16.vlgmr.msra.gmra.mrb[44].mxu1 %v490_v23  ;;  %1452 = vmatmul.mubr.bf16.vlgmr.msra.gmra.mrb[52].mxu0 %v492_v50 }
 0x210   :  { %4748 = vmatpush3.bf16.msra.mxu1 %v5518_v2  ;;  %1410 = vmatprep.mubr.bf16.mxu1 %v704_v0 }
 0x211   :  { %v662_v7 = vpop.f32.mrb[32].mxu0  ;;  %4749 = vmatprep.subr.bf16.mxu1 %v5519_v4  ;;  %5200 = vmatpush3.bf16.msra.mxu0 %v6073_v62  ;;  %v6149_v9 = vpop.f32.mrb[24].mxu1 }
 0x212   :  { %v5181_v10 = vpop.f32.mrb[33].mxu0  ;;  %5201 = vmatprep.subr.bf16.mxu0 %v5525_v5  ;;  %v5145_v12 = vpop.f32.mrb[25].mxu1 }
 0x213   :  { %v665_v13 = vpop.f32.mrb[34].mxu0  ;;  %v6154_v14 = vpop.f32.mrb[26].mxu1 }
 0x214   :  { %4750 = vmatpush3.bf16.msra.mxu1 %v5520_v6  ;;  %v705_v15 = vpack.c.bf16 %v665_v13, %v662_v7  ;;  %v5182_v18 = vpop.f32.mrb[35].mxu0  ;;  %v494_v62 = vpack.c.bf16 %v6154_v14, %v6149_v9  ;;  %v5146_v17 = vpop.f32.mrb[27].mxu1  ;;  %v4318_v14 = vld [vmem:[%s6929_s9 + $0x1] ss:$0 sm:$0xff] }
 0x215   :  { %4751 = vmatprep.subr.bf16.mxu1 %v5521_v8  ;;  %5202 = vmatpush3.bf16.msra.mxu0 %v5525_v5 }
 0x216   :  { %5203 = vmatprep.subr.bf16.mxu0 %v5528_v11 }
 0x217   :  { %1411 = vmatmul.mubr.bf16.gmra.mrb[48].mxu1 %v703_v48 }
 0x218   :  { %4752 = vmatpush3.bf16.msra.mxu1 %v5523_v19 }
 0x219   :  { %v670_v23 = vpop.f32.mrb[36].mxu0  ;;  %4753 = vmatprep.subr.bf16.mxu1 %v5524_v20  ;;  %5204 = vmatpush3.bf16.msra.mxu0 %v5528_v11  ;;  %v473_v25 = vpop.f32.mrb[28].mxu1 }
 0x21a   :  { %v5185_v26 = vpop.f32.mrb[37].mxu0  ;;  %5205 = vmatprep.subr.bf16.mxu0 %v5531_v21  ;;  %v5149_v28 = vpop.f32.mrb[29].mxu1 }
 0x21b   :  { %v673_v29 = vpop.f32.mrb[38].mxu0  ;;  %v476_v30 = vpop.f32.mrb[30].mxu1 }
 0x21c   :  { %v706_v31 = vpack.c.bf16 %v673_v29, %v670_v23  ;;  %4754 = vmatpush3.bf16.msra.mxu1 %v5526_v22  ;;  %v5186_v32 = vpop.f32.mrb[39].mxu0  ;;  %v495_v34 = vpack.c.bf16 %v476_v30, %v473_v25  ;;  %v5150_v35 = vpop.f32.mrb[31].mxu1 }
 0x21d   :  { %4755 = vmatprep.subr.bf16.mxu1 %v5527_v24  ;;  %5206 = vmatpush3.bf16.msra.mxu0 %v5531_v21 }
 0x21e   :  { %1459 = vmatprep.mubr.bf16.mxu0 %v706_v31  ;;  %5207 = vmatprep.subr.bf16.mxu0 %v5534_v27 }
 0x21f   :  { %1460 = vmatmul.mubr.bf16.gmra.mrb[56].mxu0 %v705_v15  ;;  %1500 = vmatprep.mubr.bf16.mxu1 %v495_v34 }
 0x220   :  { %4756 = vmatpush3.bf16.msra.mxu1 %v5529_v33 }
 0x221   :  { %v678_v39 = vpop.f32.mrb[40].mxu0  ;;  %4757 = vmatprep.subr.bf16.mxu1 %v5530_v36  ;;  %5208 = vmatpush3.bf16.msra.mxu0 %v5534_v27  ;;  %v481_v41 = vpop.f32.mrb[32].mxu1 }
 0x222   :  { %v5189_v42 = vpop.f32.mrb[41].mxu0  ;;  %5209 = vmatprep.subr.bf16.mxu0 %v5537_v37  ;;  %v5153_v44 = vpop.f32.mrb[33].mxu1 }
 0x223   :  { %v681_v45 = vpop.f32.mrb[42].mxu0  ;;  %v484_v46 = vpop.f32.mrb[34].mxu1 }
 0x224   :  { %4758 = vmatpush3.bf16.msra.mxu1 %v5532_v38  ;;  %v707_v47 = vpack.c.bf16 %v681_v45, %v678_v39  ;;  %v5190_v48 = vpop.f32.mrb[43].mxu0  ;;  %v496_v50 = vpack.c.bf16 %v484_v46, %v481_v41  ;;  %v5154_v51 = vpop.f32.mrb[35].mxu1 }
 0x225   :  { %4759 = vmatprep.subr.bf16.mxu1 %v5533_v40  ;;  %5210 = vmatpush3.bf16.msra.mxu0 %v5537_v37 }
 0x226   :  { %5211 = vmatprep.subr.bf16.mxu0 %v5539_v43  ;;  %5215 = vmatprep.mubr.bf16.mxu0 %v496_v50 }
 0x228   :  { %4760 = vmatpush3.bf16.msra.mxu1 %v5535_v49 }
 0x229   :  { %v686_v55 = vpop.f32.mrb[44].mxu0  ;;  %4761 = vmatprep.subr.bf16.mxu1 %v5536_v52  ;;  %5212 = vmatpush3.bf16.msra.mxu0 %v5539_v43 }
 0x22a   :  { %v5193_v56 = vpop.f32.mrb[45].mxu0  ;;  %5213 = vmatprep.subr.bf16.mxu0 %v5540_v53 }
 0x22b   :  { %v689_v57 = vpop.f32.mrb[46].mxu0 }
 0x22c   :  { %4762 = vmatpush3.bf16.msra.mxu1 %v5538_v54  ;;  %v708_v58 = vpack.c.bf16 %v689_v57, %v686_v55  ;;  %v5194_v59 = vpop.f32.mrb[47].mxu0 }
 0x22d   :  { %5214 = vmatpush3.bf16.msra.mxu0 %v5540_v53  ;;  %5431 = vmatprep.subr.bf16.mxu1 %v5729_v16 }
 0x22e   :  { %5219 = vmatprep.subr.bf16.mxu0 %v5729_v16 }
 0x22f   :  { %1501 = vmatmul.mubr.bf16.vlgmr.msra.gmra.mrb[52].mxu1 %v494_v62 }
 0x230   :  { %1508 = vmatprep.mubr.bf16.mxu1 %v708_v58 }
 0x231   :  { %v694_v60 = vpop.f32.mrb[48].mxu0 }
 0x232   :  { %v5197_v61 = vpop.f32.mrb[49].mxu0 }
 0x233   :  { %v697_v63 = vpop.f32.mrb[50].mxu0 }
 0x234   :  { %v709_v0 = vpack.c.bf16 %v697_v63, %v694_v60  ;;  %v5198_v1 = vpop.f32.mrb[51].mxu0 }
 0x236   :  { %5216 = vmatmul.mubr.bf16.vlgmr.msra.gmra.mrb[60].mxu0 %v709_v0 }
 0x237   :  { %1509 = vmatmul.mubr.bf16.gmra.mrb[56].mxu1 %v707_v47  ;;  %5221 = vmatprep.mubr.msk.bf16.mxu0 %vm5730_vm0, %v5729_v16 }
 0x238   :  { %5225 = vmatprep.mubr.msk.bf16.mxu1 %vm5730_vm0, %v5729_v16 }
 0x2c2   :  { %v4679_v2 = vpop.f32.mrb[36].mxu1 }
 0x2c3   :  { %v4680_v3 = vpop.f32.mrb[37].mxu1 }
 0x2c4   :  { %v4681_v4 = vadd.f32 %v4680_v3, %v4679_v2  ;;  %v4682_v5 = vpop.f32.mrb[38].mxu1 }
 0x2c5   :  { %v4683_v6 = vpop.f32.mrb[39].mxu1 }
 0x2c6   :  { %v4684_v7 = vadd.f32 %v4683_v6, %v4682_v5  ;;  %v1356_v17 = vadd.f32 %v4681_v4, %v4318_v14 }
 0x2c8   :  { %v1359_v26 = vadd.f32 %v4684_v7, %v4318_v14 }
 0x2d2   :  { %v4685_v8 = vpop.f32.mrb[40].mxu1 }
 0x2d3   :  { %v4686_v9 = vpop.f32.mrb[41].mxu1 }
 0x2d4   :  { %v4687_v10 = vadd.f32 %v4686_v9, %v4685_v8  ;;  %v4688_v11 = vpop.f32.mrb[42].mxu1  ;;  %v5559_v9 = vld [vmem:[%s6931_s5 + $0x40] sm:$0xff]  }
 0x2d5   :  { %v4689_v12 = vpop.f32.mrb[43].mxu1 }
 0x2d6   :  { %v4690_v13 = vadd.f32 %v4689_v12, %v4688_v11  ;;  %v1364_v35 = vadd.f32 %v4687_v10, %v4318_v14 }
 0x2d8   :  { %v1367_v39 = vadd.f32 %v4690_v13, %v4318_v14  ;;  %v5541_v14 = vld [vmem:[%s6930_s4] sm:$0xff]  }
 0x2e2   :  { %v4707_v15 = vpop.f32.mrb[44].mxu1  ;;  %v4735_v18 = vpop.f32.mrb[52].mxu0 }
 0x2e3   :  { %v4708_v19 = vpop.f32.mrb[45].mxu1  ;;  %v4736_v62 = vpop.f32.mrb[53].mxu0 }
 0x2e4   :  { %v4709_v20 = vadd.f32 %v4708_v19, %v4707_v15  ;;  %v4710_v21 = vpop.f32.mrb[46].mxu1  ;;  %v4737_v22 = vadd.f32 %v4736_v62, %v4735_v18  ;;  %v4738_v23 = vpop.f32.mrb[54].mxu0  ;;  %v5542_v15 = vld [vmem:[%s6930_s4 + $0x8] sm:$0xff]   ;;  %v5560_v62 = vld [vmem:[%s6931_s5] sm:$0xff]  }
 0x2e5   :  { %v4711_v24 = vpop.f32.mrb[47].mxu1  ;;  %v4739_v25 = vpop.f32.mrb[55].mxu0 }
 0x2e6   :  { %v1405_v27 = vadd.f32 %v4709_v20, %v1356_v17  ;;  %v4712_v28 = vadd.f32 %v4711_v24, %v4710_v21  ;;  %v4740_v29 = vadd.f32 %v4739_v25, %v4738_v23  ;;  %v5561_v17 = vld [vmem:[%s6931_s5 + $0x48] sm:$0xff]   ;;  %v5566_v20 = vld [vmem:[%s6931_s5 + $0xc0] sm:$0xff]   ;;  %v5563_v25 = vld [vmem:[%s6931_s5 + $0x50] sm:$0xff]  }
 0x2e7   :  { %v5562_v24 = vld [vmem:[%s6931_s5 + $0x8] sm:$0xff]  }
 0x2e8   :  { %v1454_v30 = vadd.f32 %v4737_v22, %v1405_v27  ;;  %v1408_v31 = vadd.f32 %v4712_v28, %v1359_v26  ;;  %v5543_v26 = vld [vmem:[%s6930_s4 + $0x10] sm:$0xff]   ;;  %v5544_v27 = vld [vmem:[%s6930_s4] sm:$0xff]  }
 0x2e9   :  { %v5564_v28 = vld [vmem:[%s6931_s5 + $0x10] sm:$0xff]  }
 0x2ea   :  { %v1457_v32 = vadd.f32 %v4740_v29, %v1408_v31  ;;  %v4713_v33 = vpop.f32.mrb[48].mxu1  ;;  %v5568_v29 = vld [vmem:[%s6931_s5 + $0x80] sm:$0xff]   ;;  %v5572_v31 = vld [vmem:[%s6931_s5 + $0xc8] sm:$0xff]  }
 0x2eb   :  { %v4714_v34 = vpop.f32.mrb[49].mxu1 }
 0x2ec   :  { %v4715_v36 = vadd.f32 %v4714_v34, %v4713_v33  ;;  %v4716_v37 = vpop.f32.mrb[50].mxu1  ;;  %v5574_v33 = vld [vmem:[%s6931_s5 + $0x88] sm:$0xff]   ;;  %v5569_v34 = vld [vmem:[%s6931_s5 + $0x60] sm:$0xff]  }
 0x2ed   :  { %v4717_v38 = vpop.f32.mrb[51].mxu1 }
 0x2ee   :  { %v1413_v40 = vadd.f32 %v4715_v36, %v1364_v35  ;;  %v4718_v41 = vadd.f32 %v4717_v38, %v4716_v37  ;;  %v5576_v35 = vld [vmem:[%s6931_s5 + $0xd0] sm:$0xff]   ;;  %v5545_v36 = vld [vmem:[%s6930_s4 + $0x18] sm:$0xff]   ;;  %v5546_v37 = vld [vmem:[%s6930_s4 + $0x8] sm:$0xff]  }
 0x2ef   :  { %v5570_v38 = vld [vmem:[%s6931_s5 + $0x20] sm:$0xff]  }
 0x2f0   :  { %v1416_v42 = vadd.f32 %v4718_v41, %v1367_v39  ;;  %v5578_v39 = vld [vmem:[%s6931_s5 + $0x90] sm:$0xff]   ;;  %v5573_v41 = vld [vmem:[%s6931_s5 + $0x28] sm:$0xff]  }
 0x2f2   :  { %v4741_v43 = vpop.f32.mrb[56].mxu0 }
 0x2f3   :  { %v4742_v44 = vpop.f32.mrb[57].mxu0 }
 0x2f4   :  { %v4743_v45 = vadd.f32 %v4742_v44, %v4741_v43  ;;  %v4744_v46 = vpop.f32.mrb[58].mxu0  ;;  %v5547_v43 = vld [vmem:[%s6930_s4 + $0x20] sm:$0xff]   ;;  %v5548_v44 = vld [vmem:[%s6930_s4 + $0x10] sm:$0xff]  }
 0x2f5   :  { %v4745_v47 = vpop.f32.mrb[59].mxu0 }
 0x2f6   :  { %v1462_v48 = vadd.f32 %v4743_v45, %v1413_v40  ;;  %v4746_v49 = vadd.f32 %v4745_v47, %v4744_v46  ;;  %v5571_v40 = vld [vmem:[%s6931_s5 + $0x68] sm:$0xff]   ;;  %v5577_v45 = vld [vmem:[%s6931_s5 + $0x30] sm:$0xff]   ;;  %v5550_v47 = vld [vmem:[%s6930_s4 + $0x18] sm:$0xff]  }
 0x2f7   :  { %v5549_v46 = vld [vmem:[%s6930_s4 + $0x28] sm:$0xff]  }
 0x2f8   :  { %v1465_v50 = vadd.f32 %v4746_v49, %v1416_v42  ;;  %v5575_v42 = vld [vmem:[%s6931_s5 + $0x70] sm:$0xff]   ;;  %v5552_v49 = vld [vmem:[%s6930_s4 + $0x20] sm:$0xff]  }
 0x302   :  { %v4763_v51 = vpop.f32.mrb[52].mxu1 }
 0x303   :  { %v4764_v52 = vpop.f32.mrb[53].mxu1 }
 0x304   :  { %v4765_v53 = vadd.f32 %v4764_v52, %v4763_v51  ;;  %v4766_v54 = vpop.f32.mrb[54].mxu1  ;;  %v5554_v51 = vld [vmem:[%s6930_s4 + $0x28] sm:$0xff]   ;;  %v5555_v52 = vld [vmem:[%s6930_s4 + $0x30] sm:$0xff]  }
 0x305   :  { %v4767_v55 = vpop.f32.mrb[55].mxu1 }
 0x306   :  { %v4768_v56 = vadd.f32 %v4767_v55, %v4766_v54  ;;  %v1503_v57 = vadd.f32 %v4765_v53, %v1454_v30  ;;  %v5565_v30 = vld [vmem:[%s6931_s5 + $0x58] sm:$0xff]   ;;  %v5557_v53 = vld [vmem:[%s6930_s4 + $0x40] sm:$0xff]  }
 0x307   :  { %v5556_v54 = vld [vmem:[%s6930_s4 + $0x38] sm:$0xff]   ;;  %v5558_v55 = vld [vmem:[%s6930_s4 + $0x40] sm:$0xff]  }
 0x308   :  { %v1506_v58 = vadd.f32 %v4768_v56, %v1457_v32  ;;  %v5567_v32 = vld [vmem:[%s6931_s5 + $0x18] sm:$0xff]  }
 0x309   :  { %v5217_v59 = vpop.f32.mrb[60].mxu0  ;;  %v5579_v56 = vld [vmem:[%s6931_s5 + $0x78] sm:$0xff]  }
 0x30a   :  { %v4769_v60 = vpop.f32.mrb[56].mxu1  ;;  %v1551_v61 = vpop.f32.mrb[61].mxu0 }
 0x30b   :  { %v4770_v63 = vpop.f32.mrb[57].mxu1  ;;  %v1552_v0 = vadd.f32 %v1551_v61, %v1503_v57  ;;  %v5218_v1 = vpop.f32.mrb[62].mxu0  ;;  %v5580_v57 = vld [vmem:[%s6931_s5 + $0xd8] sm:$0xff]   ;;  %v5584_v61 = vld [vmem:[%s6931_s5 + $0x140] sm:$0xff]  }
 0x30c   :  { %v4771_v2 = vadd.f32 %v4770_v63, %v4769_v60  ;;  %v4772_v3 = vpop.f32.mrb[58].mxu1  ;;  %v1554_v4 = vpop.f32.mrb[63].mxu0  ;;  %v5583_v60 = vld [vmem:[%s6931_s5 + $0xe0] sm:$0xff]  }
 0x30d   :  { %v4773_v5 = vpop.f32.mrb[59].mxu1  ;;  %v1555_v6 = vadd.f32 %v1554_v4, %v1506_v58  ;;  %v1566_v10 = vmax.f32 %v1552_v0, 0.0  ;;  %v5581_v58 = vld [vmem:[%s6931_s5 + $0x38] sm:$0xff]   ;;  %v5585_v63 = vld [vmem:[%s6931_s5 + $0xa0] sm:$0xff]   ;;  %v5587_v0 = vld [vmem:[%s6931_s5 + $0xe8] sm:$0xff]  }
 0x30e   :  { %v1511_v7 = vadd.f32 %v4771_v2, %v1462_v48  ;;  %v4774_v8 = vadd.f32 %v4773_v5, %v4772_v3  ;;  %v5551_v48 = vld [vmem:[%s6930_s4 + $0x30] sm:$0xff]   ;;  %v5595_v4 = vld [vmem:[%s6931_s5 + $0xf8] sm:$0xff]  }
 0x30f   :  { %v1567_v11 = vmax.f32 %v1555_v6, 0.0  ;;  %v5591_v2 = vld [vmem:[%s6931_s5 + $0xf0] sm:$0xff]   ;;  %v5597_v5 = vld [vmem:[%s6931_s5 + $0xb8] sm:$0xff]   ;;  %v5600_v6 = vld [vmem:[%s6931_s5 + $0x1c0] sm:$0xff]  }
 0x310   :  { %v1560_v12 = vadd.f32 %v5217_v59, %v1511_v7  ;;  %v1514_v13 = vadd.f32 %v4774_v8, %v1465_v50  ;;  %v5553_v50 = vld [vmem:[%s6930_s4 + $0x38] sm:$0xff]   ;;  %v5593_v3 = vld [vmem:[%s6931_s5 + $0xb0] sm:$0xff]  }
 0x311   :  { %v1570_v18 = vpack.c.bf16 %v1567_v11, %v1566_v10  ;;  %v5582_v59 = vld [vmem:[%s6931_s5 + $0x98] sm:$0xff]  }
 0x312   :  { %v1563_v19 = vadd.f32 %v5218_v1, %v1514_v13  ;;  %v1568_v21 = vmax.f32 %v1560_v12, 0.0  ;;  %v5589_v1 = vld [vmem:[%s6931_s5 + $0xa8] sm:$0xff]  }
 0x313   :  { %5220 = vmatpush3.bf16.msra.mxu0 %v1570_v18  ;;  %5432 = vmatpush3.bf16.msra.mxu1 %v1570_v18  ;;  %v5586_v18 = vld [vmem:[%s6931_s5 + $0x100] sm:$0xff]  }
 0x314   :  { %v1569_v22 = vmax.f32 %v1563_v19, 0.0  ;;  %5257 = vmatprep.subr.bf16.mxu0 %v5729_v16  ;;  %4805 = vmatprep.subr.bf16.mxu1 %v5559_v9 }
 0x316   :  { %v1571_v23 = vpack.c.bf16 %v1569_v22, %v1568_v21  ;;  %5222 = vmatmul.mubr.msk.bf16.vlgmr.msra.gmra.mrb[64].mxu0 %vm1635_vm2, %v5541_v14  ;;  %5226 = vmatmul.mubr.msk.bf16.vlgmr.msra.gmra.mrb[60].mxu1 %vm1635_vm2, %v5542_v15  ;;  %v5592_v22 = vld [vmem:[%s6931_s5 + $0x150] sm:$0xff]  }
 0x317   :  { %5229 = vmatprep.mubr.msk.bf16.mxu1 %vm5730_vm0, %v5729_v16  ;;  %5259 = vmatprep.mubr.msk.bf16.mxu0 %vm5730_vm0, %v5729_v16 }
 0x318   :  { %5258 = vmatpush3.bf16.msra.mxu0 %v1571_v23  ;;  %4806 = vmatpush3.bf16.msra.mxu1 %v5560_v62  ;;  %v5588_v62 = vld [vmem:[%s6931_s5 + $0x148] sm:$0xff]  }
 0x319   :  { %4807 = vmatprep.subr.bf16.mxu1 %v5561_v17  ;;  %4833 = vmatprep.subr.bf16.mxu0 %v5566_v20  ;;  %v5590_v17 = vld [vmem:[%s6931_s5 + $0x108] sm:$0xff]  }
 0x31c   :  { %4808 = vmatpush3.bf16.msra.mxu1 %v5562_v24 }
 0x31d   :  { %4809 = vmatprep.subr.bf16.mxu1 %v5563_v25 }
 0x31e   :  { %5230 = vmatmul.mubr.msk.bf16.gmra.mrb[64].mxu1 %vm1635_vm2, %v5543_v26  ;;  %5260 = vmatmul.mubr.msk.bf16.vlgmr.msra.gmra.mrb[68].mxu0 %vm1635_vm2, %v5544_v27 }
 0x31f   :  { %5233 = vmatprep.mubr.msk.bf16.mxu1 %vm5730_vm0, %v5729_v16  ;;  %5263 = vmatprep.mubr.msk.bf16.mxu0 %vm5730_vm0, %v5729_v16 }
 0x320   :  { %4810 = vmatpush3.bf16.msra.mxu1 %v5564_v28  ;;  %4834 = vmatpush3.bf16.msra.mxu0 %v5568_v29 }
 0x321   :  { %4811 = vmatprep.subr.bf16.mxu1 %v5565_v30  ;;  %4835 = vmatprep.subr.bf16.mxu0 %v5572_v31  ;;  %v5594_v31 = vld [vmem:[%s6931_s5 + $0x110] sm:$0xff]  }
 0x324   :  { %4812 = vmatpush3.bf16.msra.mxu1 %v5567_v32  ;;  %4836 = vmatpush3.bf16.msra.mxu0 %v5574_v33  ;;  %v5596_v32 = vld [vmem:[%s6931_s5 + $0x158] sm:$0xff]  }
 0x325   :  { %4813 = vmatprep.subr.bf16.mxu1 %v5569_v34  ;;  %4837 = vmatprep.subr.bf16.mxu0 %v5576_v35  ;;  %v5598_v33 = vld [vmem:[%s6931_s5 + $0x118] sm:$0xff]  }
 0x326   :  { %5234 = vmatmul.mubr.msk.bf16.gmra.mrb[68].mxu1 %vm1635_vm2, %v5545_v36  ;;  %5264 = vmatmul.mubr.msk.bf16.gmra.mrb[72].mxu0 %vm1635_vm2, %v5546_v37  ;;  %v5599_v36 = vld [vmem:[%s6931_s5 + $0x160] sm:$0xff]  }
 0x327   :  { %5237 = vmatprep.mubr.msk.bf16.mxu1 %vm5730_vm0, %v5729_v16  ;;  %5267 = vmatprep.mubr.msk.bf16.mxu0 %vm5730_vm0, %v5729_v16 }
 0x328   :  { %4814 = vmatpush3.bf16.msra.mxu1 %v5570_v38  ;;  %4838 = vmatpush3.bf16.msra.mxu0 %v5578_v39 }
 0x329   :  { %4815 = vmatprep.subr.bf16.mxu1 %v5571_v40  ;;  %4839 = vmatprep.subr.bf16.mxu0 %v5580_v57 }
 0x32c   :  { %4816 = vmatpush3.bf16.msra.mxu1 %v5573_v41  ;;  %4840 = vmatpush3.bf16.msra.mxu0 %v5582_v59 }
 0x32d   :  { %4817 = vmatprep.subr.bf16.mxu1 %v5575_v42  ;;  %4841 = vmatprep.subr.bf16.mxu0 %v5583_v60 }
 0x32e   :  { %5238 = vmatmul.mubr.msk.bf16.gmra.mrb[72].mxu1 %vm1635_vm2, %v5547_v43  ;;  %5268 = vmatmul.mubr.msk.bf16.gmra.mrb[76].mxu0 %vm1635_vm2, %v5548_v44  ;;  %v5601_v44 = vld [vmem:[%s6931_s5 + $0x120] sm:$0xff]  }
 0x32f   :  { %5241 = vmatprep.mubr.msk.bf16.mxu1 %vm5730_vm0, %v5729_v16  ;;  %5271 = vmatprep.mubr.msk.bf16.mxu0 %vm5730_vm0, %v5729_v16 }
 0x330   :  { %4818 = vmatpush3.bf16.msra.mxu1 %v5577_v45  ;;  %4842 = vmatpush3.bf16.msra.mxu0 %v5585_v63  ;;  %v5602_v45 = vld [vmem:[%s6931_s5 + $0x180] sm:$0xff]  }
 0x331   :  { %4819 = vmatprep.subr.bf16.mxu1 %v5579_v56  ;;  %4843 = vmatprep.subr.bf16.mxu0 %v5587_v0  ;;  %v5609_v0 = vld [vmem:[%s6931_s5 + $0x130] sm:$0xff]  }
 0x334   :  { %4820 = vmatpush3.bf16.msra.mxu1 %v5581_v58  ;;  %4844 = vmatpush3.bf16.msra.mxu0 %v5589_v1  ;;  %v5610_v1 = vld [vmem:[%s6931_s5 + $0x190] sm:$0xff]  }
 0x335   :  { %4861 = vmatprep.subr.bf16.mxu1 %v5584_v61  ;;  %4845 = vmatprep.subr.bf16.mxu0 %v5591_v2  ;;  %v5611_v2 = vld [vmem:[%s6931_s5 + $0x178] sm:$0xff]  }
 0x336   :  { %5242 = vmatmul.mubr.msk.bf16.gmra.mrb[76].mxu1 %vm1635_vm2, %v5549_v46  ;;  %5272 = vmatmul.mubr.msk.bf16.gmra.mrb[80].mxu0 %vm1635_vm2, %v5550_v47  ;;  %v5603_v47 = vld [vmem:[%s6931_s5 + $0x168] sm:$0xff]  }
 0x337   :  { %5245 = vmatprep.mubr.msk.bf16.mxu1 %vm5730_vm0, %v5729_v16  ;;  %5275 = vmatprep.mubr.msk.bf16.mxu0 %vm5730_vm0, %v5729_v16 }
 0x338   :  { %4846 = vmatpush3.bf16.msra.mxu0 %v5593_v3  ;;  %v5612_v3 = vld [vmem:[%s6931_s5 + $0x1d8] sm:$0xff]  }
 0x339   :  { %4847 = vmatprep.subr.bf16.mxu0 %v5595_v4  ;;  %v5613_v4 = vld [vmem:[%s6931_s5 + $0x138] sm:$0xff]  }
 0x33c   :  { %4848 = vmatpush3.bf16.msra.mxu0 %v5597_v5  ;;  %v5614_v5 = vld [vmem:[%s6931_s5 + $0x198] sm:$0xff]  }
 0x33d   :  { %4889 = vmatprep.subr.bf16.mxu0 %v5600_v6 }
 0x33e   :  { %5246 = vmatmul.mubr.msk.bf16.gmra.mrb[80].mxu1 %vm1635_vm2, %v5551_v48  ;;  %5276 = vmatmul.mubr.msk.bf16.gmra.mrb[84].mxu0 %vm1635_vm2, %v5552_v49  ;;  %v5604_v48 = vld [vmem:[%s6931_s5 + $0x1c8] sm:$0xff]  }
 0x33f   :  { %5249 = vmatprep.mubr.msk.bf16.mxu1 %vm5730_vm0, %v5729_v16  ;;  %5279 = vmatprep.mubr.msk.bf16.mxu0 %vm5730_vm0, %v5729_v16  ;;  %v5605_v49 = vld [vmem:[%s6931_s5 + $0x128] sm:$0xff]  }
 0x346   :  { %5250 = vmatmul.mubr.msk.bf16.gmra.mrb[84].mxu1 %vm1635_vm2, %v5553_v50  ;;  %5280 = vmatmul.mubr.msk.bf16.gmra.mrb[88].mxu0 %vm1635_vm2, %v5554_v51  ;;  %v5606_v50 = vld [vmem:[%s6931_s5 + $0x188] sm:$0xff]  }
 0x347   :  { %5283 = vmatprep.mubr.msk.bf16.mxu0 %vm5730_vm0, %v5729_v16  ;;  %5253 = vmatprep.mubr.msk.bf16.mxu1 %vm5730_vm0, %v5729_v16 }
 0x34e   :  { %5284 = vmatmul.mubr.msk.bf16.gmra.mrb[92].mxu0 %vm1635_vm2, %v5555_v52  ;;  %5254 = vmatmul.mubr.msk.bf16.gmra.mrb[88].mxu1 %vm1635_vm2, %v5557_v53  ;;  %v5607_v53 = vld [vmem:[%s6931_s5 + $0x170] sm:$0xff]  }
 0x34f   :  { %5287 = vmatprep.mubr.msk.bf16.mxu0 %vm5730_vm0, %v5729_v16 }
 0x356   :  { %5288 = vmatmul.mubr.msk.bf16.gmra.mrb[96].mxu0 %vm1635_vm2, %v5556_v54  ;;  %v5608_v54 = vld [vmem:[%s6931_s5 + $0x1d0] sm:$0xff]  }
 0x357   :  { %5291 = vmatprep.mubr.msk.bf16.mxu0 %vm5730_vm0, %v5729_v16 }
 0x35e   :  { %5292 = vmatmul.mubr.msk.bf16.gmra.mrb[100].mxu0 %vm1635_vm2, %v5558_v55 }
 0x3e9   :  { %v1705_v7 = vpop.f32.mrb[60].mxu1  ;;  %v1697_v8 = vpop.f32.mrb[64].mxu0 }
 0x3ea   :  { %v5227_v9 = vpop.f32.mrb[61].mxu1  ;;  %v5223_v10 = vpop.f32.mrb[65].mxu0 }
 0x3eb   :  { %v1708_v11 = vpop.f32.mrb[62].mxu1  ;;  %v1700_v12 = vpop.f32.mrb[66].mxu0  ;;  %v5619_v9 = vld [vmem:[%s6931_s5 + $0x200] sm:$0xff]  }
 0x3ec   :  { %v1769_v13 = vpack.c.bf16 %v1708_v11, %v1705_v7  ;;  %v1768_v14 = vpack.c.bf16 %v1700_v12, %v1697_v8  ;;  %v5224_v15 = vpop.f32.mrb[67].mxu0  ;;  %v5228_v19 = vpop.f32.mrb[63].mxu1  ;;  %v5615_v8 = vld [vmem:[%s6931_s5 + $0x1e0] sm:$0xff]  }
 0x3ed   :  { %v5616_v19 = vld [vmem:[%s6931_s5 + $0x1a0] sm:$0xff]  }
 0x3ee   :  { %2633 = vmatprep.mubr.bf16.mxu1 %v1769_v13 }
 0x3ef   :  { %2634 = vmatmul.mubr.bf16.vlgmr.msra.gmra.mrb[92].mxu1 %v1768_v14 }
 0x3f0   :  { %4862 = vmatpush3.bf16.msra.mxu1 %v5586_v18 }
 0x3f1   :  { %v1910_v20 = vpop.f32.mrb[68].mxu0  ;;  %4863 = vmatprep.subr.bf16.mxu1 %v5588_v62  ;;  %v1713_v21 = vpop.f32.mrb[64].mxu1 }
 0x3f2   :  { %v5261_v23 = vpop.f32.mrb[69].mxu0  ;;  %v5231_v24 = vpop.f32.mrb[65].mxu1 }
 0x3f3   :  { %v1913_v25 = vpop.f32.mrb[70].mxu0  ;;  %v1716_v26 = vpop.f32.mrb[66].mxu1  ;;  %v5620_v24 = vld [vmem:[%s6931_s5 + $0x1f0] sm:$0xff]  }
 0x3f4   :  { %v1981_v27 = vpack.c.bf16 %v1913_v25, %v1910_v20  ;;  %4864 = vmatpush3.bf16.msra.mxu1 %v5590_v17  ;;  %v5262_v28 = vpop.f32.mrb[71].mxu0  ;;  %v1770_v29 = vpack.c.bf16 %v1716_v26, %v1713_v21  ;;  %v5232_v30 = vpop.f32.mrb[67].mxu1  ;;  %v5617_v17 = vld [vmem:[%s6931_s5 + $0x1e8] sm:$0xff]   ;;  %v5625_v25 = vld [vmem:[%s6931_s5 + $0x210] sm:$0xff]  }
 0x3f5   :  { %4865 = vmatprep.subr.bf16.mxu1 %v5592_v22  ;;  %v5622_v20 = vld [vmem:[%s6931_s5 + $0x208] sm:$0xff]  }
 0x3f6   :  { %v5618_v21 = vld [vmem:[%s6931_s5 + $0x1a8] sm:$0xff]  }
 0x3f8   :  { %4866 = vmatpush3.bf16.msra.mxu1 %v5594_v31 }
 0x3f9   :  { %v1721_v34 = vpop.f32.mrb[68].mxu1  ;;  %v1918_v35 = vpop.f32.mrb[72].mxu0  ;;  %4867 = vmatprep.subr.bf16.mxu1 %v5596_v32 }
 0x3fa   :  { %v5235_v37 = vpop.f32.mrb[69].mxu1  ;;  %v5265_v38 = vpop.f32.mrb[73].mxu0 }
 0x3fb   :  { %v1724_v39 = vpop.f32.mrb[70].mxu1  ;;  %v1921_v40 = vpop.f32.mrb[74].mxu0  ;;  %v5624_v37 = vld [vmem:[%s6931_s5 + $0x1b8] sm:$0xff]  }
 0x3fc   :  { %v1771_v41 = vpack.c.bf16 %v1724_v39, %v1721_v34  ;;  %v1982_v42 = vpack.c.bf16 %v1921_v40, %v1918_v35  ;;  %4868 = vmatpush3.bf16.msra.mxu1 %v5598_v33  ;;  %v5266_v43 = vpop.f32.mrb[75].mxu0  ;;  %v5236_v46 = vpop.f32.mrb[71].mxu1  ;;  %v5621_v34 = vld [vmem:[%s6931_s5 + $0x1b0] sm:$0xff]   ;;  %v5623_v35 = vld [vmem:[%s6931_s5 + $0x1f8] sm:$0xff]   ;;  %v5627_v40 = vld [vmem:[%s6931_s5 + $0x220] sm:$0xff]  }
 0x3fd   :  { %4869 = vmatprep.subr.bf16.mxu1 %v5599_v36  ;;  %v5626_v36 = vld [vmem:[%s6931_s5 + $0x218] sm:$0xff]  }
 0x3fe   :  { %2641 = vmatprep.mubr.bf16.mxu1 %v1982_v42  ;;  %2682 = vmatprep.mubr.bf16.mxu0 %v1771_v41 }
 0x3ff   :  { %2642 = vmatmul.mubr.bf16.gmra.mrb[96].mxu1 %v1981_v27  ;;  %2683 = vmatmul.mubr.bf16.vlgmr.msra.gmra.mrb[104].mxu0 %v1770_v29 }
 0x400   :  { %4870 = vmatpush3.bf16.msra.mxu1 %v5601_v44  ;;  %4890 = vmatpush3.bf16.msra.mxu0 %v5602_v45 }
 0x401   :  { %v1926_v51 = vpop.f32.mrb[76].mxu0  ;;  %4871 = vmatprep.subr.bf16.mxu1 %v5603_v47  ;;  %4891 = vmatprep.subr.bf16.mxu0 %v5604_v48  ;;  %v1729_v52 = vpop.f32.mrb[72].mxu1 }
 0x402   :  { %v5269_v55 = vpop.f32.mrb[77].mxu0  ;;  %v5239_v56 = vpop.f32.mrb[73].mxu1 }
 0x403   :  { %v1929_v57 = vpop.f32.mrb[78].mxu0  ;;  %v1732_v58 = vpop.f32.mrb[74].mxu1 }
 0x404   :  { %v1983_v59 = vpack.c.bf16 %v1929_v57, %v1926_v51  ;;  %4872 = vmatpush3.bf16.msra.mxu1 %v5605_v49  ;;  %4892 = vmatpush3.bf16.msra.mxu0 %v5606_v50  ;;  %v5270_v60 = vpop.f32.mrb[79].mxu0  ;;  %v1772_v61 = vpack.c.bf16 %v1732_v58, %v1729_v52  ;;  %v5240_v63 = vpop.f32.mrb[75].mxu1  ;;  %v5628_v49 = vld [vmem:[%s6931_s5 + $0x228] sm:$0xff]   ;;  %v5629_v51 = vld [vmem:[%s6931_s5 + $0x230] sm:$0xff]  }
 0x405   :  { %4873 = vmatprep.subr.bf16.mxu1 %v5607_v53  ;;  %4893 = vmatprep.subr.bf16.mxu0 %v5608_v54 }
 0x408   :  { %4874 = vmatpush3.bf16.msra.mxu1 %v5609_v0  ;;  %4894 = vmatpush3.bf16.msra.mxu0 %v5610_v1 }
 0x409   :  { %v1737_v6 = vpop.f32.mrb[76].mxu1  ;;  %v1934_v7 = vpop.f32.mrb[80].mxu0  ;;  %4875 = vmatprep.subr.bf16.mxu1 %v5611_v2  ;;  %4895 = vmatprep.subr.bf16.mxu0 %v5612_v3 }
 0x40a   :  { %v5243_v10 = vpop.f32.mrb[77].mxu1  ;;  %v5273_v11 = vpop.f32.mrb[81].mxu0 }
 0x40b   :  { %v1740_v12 = vpop.f32.mrb[78].mxu1  ;;  %v1937_v13 = vpop.f32.mrb[82].mxu0 }
 0x40c   :  { %v1773_v14 = vpack.c.bf16 %v1740_v12, %v1737_v6  ;;  %v1984_v15 = vpack.c.bf16 %v1937_v13, %v1934_v7  ;;  %4876 = vmatpush3.bf16.msra.mxu1 %v5613_v4  ;;  %4896 = vmatpush3.bf16.msra.mxu0 %v5614_v5  ;;  %v5274_v18 = vpop.f32.mrb[83].mxu0  ;;  %v5244_v62 = vpop.f32.mrb[79].mxu1 }
 0x40d   :  { %4897 = vmatprep.subr.bf16.mxu0 %v5615_v8  ;;  %5295 = vmatprep.subr.bf16.mxu1 %v5619_v9 }
 0x40e   :  { %2690 = vmatprep.mubr.bf16.mxu0 %v1984_v15  ;;  %2731 = vmatprep.mubr.bf16.mxu1 %v1773_v14  ;;  %v4428_v15 = vld [vmem:[%s6929_s9 + $0x2] ss:$0 sm:$0xff] }
 0x40f   :  { %2691 = vmatmul.mubr.bf16.gmra.mrb[108].mxu0 %v1983_v59  ;;  %2732 = vmatmul.mubr.bf16.vlgmr.msra.gmra.mrb[100].mxu1 %v1772_v61  ;;  %v5630_v61 = vld [vmem:[%s6931_s5 + $0x238] sm:$0xff]  }
 0x410   :  { %4898 = vmatpush3.bf16.msra.mxu0 %v5616_v19  ;;  %5296 = vmatpush3.bf16.msra.mxu1 %v5619_v9 }
 0x411   :  { %v1942_v22 = vpop.f32.mrb[84].mxu0  ;;  %4899 = vmatprep.subr.bf16.mxu0 %v5617_v17  ;;  %v1745_v23 = vpop.f32.mrb[80].mxu1  ;;  %5297 = vmatprep.subr.bf16.mxu1 %v5622_v20 }
 0x412   :  { %v5277_v26 = vpop.f32.mrb[85].mxu0  ;;  %v5247_v27 = vpop.f32.mrb[81].mxu1 }
 0x413   :  { %v1945_v28 = vpop.f32.mrb[86].mxu0  ;;  %v1748_v29 = vpop.f32.mrb[82].mxu1 }
 0x414   :  { %v1985_v30 = vpack.c.bf16 %v1945_v28, %v1942_v22  ;;  %4900 = vmatpush3.bf16.msra.mxu0 %v5618_v21  ;;  %v5278_v31 = vpop.f32.mrb[87].mxu0  ;;  %v1774_v32 = vpack.c.bf16 %v1748_v29, %v1745_v23  ;;  %v5248_v33 = vpop.f32.mrb[83].mxu1  ;;  %5298 = vmatpush3.bf16.msra.mxu1 %v5622_v20 }
 0x415   :  { %4901 = vmatprep.subr.bf16.mxu0 %v5620_v24  ;;  %5299 = vmatprep.subr.bf16.mxu1 %v5625_v25 }
 0x418   :  { %4902 = vmatpush3.bf16.msra.mxu0 %v5621_v34  ;;  %5300 = vmatpush3.bf16.msra.mxu1 %v5625_v25 }
 0x419   :  { %v1753_v38 = vpop.f32.mrb[84].mxu1  ;;  %v1950_v39 = vpop.f32.mrb[88].mxu0  ;;  %4903 = vmatprep.subr.bf16.mxu0 %v5623_v35  ;;  %5301 = vmatprep.subr.bf16.mxu1 %v5626_v36 }
 0x41a   :  { %v5251_v41 = vpop.f32.mrb[85].mxu1  ;;  %v5281_v42 = vpop.f32.mrb[89].mxu0 }
 0x41b   :  { %v1756_v43 = vpop.f32.mrb[86].mxu1  ;;  %v1953_v44 = vpop.f32.mrb[90].mxu0 }
 0x41c   :  { %v1775_v45 = vpack.c.bf16 %v1756_v43, %v1753_v38  ;;  %v1986_v46 = vpack.c.bf16 %v1953_v44, %v1950_v39  ;;  %4904 = vmatpush3.bf16.msra.mxu0 %v5624_v37  ;;  %v5282_v47 = vpop.f32.mrb[91].mxu0  ;;  %5302 = vmatpush3.bf16.msra.mxu1 %v5626_v36  ;;  %v5252_v48 = vpop.f32.mrb[87].mxu1 }
 0x41d   :  { %5303 = vmatprep.subr.bf16.mxu1 %v5627_v40  ;;  %5315 = vmatprep.subr.bf16.mxu0 %v5729_v16 }
 0x41e   :  { %2739 = vmatprep.mubr.bf16.mxu1 %v1986_v46  ;;  %2780 = vmatprep.mubr.bf16.mxu0 %v1775_v45 }
 0x41f   :  { %2740 = vmatmul.mubr.bf16.gmra.mrb[104].mxu1 %v1985_v30  ;;  %2781 = vmatmul.mubr.bf16.vlgmr.msra.gmra.mrb[112].mxu0 %v1774_v32 }
 0x420   :  { %5304 = vmatpush3.bf16.msra.mxu1 %v5627_v40 }
 0x421   :  { %v1958_v50 = vpop.f32.mrb[92].mxu0  ;;  %5305 = vmatprep.subr.bf16.mxu1 %v5628_v49  ;;  %v1761_v52 = vpop.f32.mrb[88].mxu1 }
 0x422   :  { %v5285_v53 = vpop.f32.mrb[93].mxu0  ;;  %v5255_v54 = vpop.f32.mrb[89].mxu1 }
 0x423   :  { %v1961_v55 = vpop.f32.mrb[94].mxu0  ;;  %v1764_v56 = vpop.f32.mrb[90].mxu1 }
 0x424   :  { %v1987_v57 = vpack.c.bf16 %v1961_v55, %v1958_v50  ;;  %v5286_v58 = vpop.f32.mrb[95].mxu0  ;;  %5306 = vmatpush3.bf16.msra.mxu1 %v5628_v49  ;;  %v1776_v59 = vpack.c.bf16 %v1764_v56, %v1761_v52  ;;  %v5256_v60 = vpop.f32.mrb[91].mxu1 }
 0x425   :  { %5307 = vmatprep.subr.bf16.mxu1 %v5629_v51 }
 0x426   :  { %5311 = vmatprep.mubr.bf16.mxu1 %v1776_v59 }
 0x428   :  { %5308 = vmatpush3.bf16.msra.mxu1 %v5629_v51 }
 0x429   :  { %v1966_v63 = vpop.f32.mrb[96].mxu0  ;;  %5309 = vmatprep.subr.bf16.mxu1 %v5630_v61 }
 0x42a   :  { %v5289_v0 = vpop.f32.mrb[97].mxu0 }
 0x42b   :  { %v1969_v1 = vpop.f32.mrb[98].mxu0 }
 0x42c   :  { %v1988_v2 = vpack.c.bf16 %v1969_v1, %v1966_v63  ;;  %v5290_v3 = vpop.f32.mrb[99].mxu0  ;;  %5310 = vmatpush3.bf16.msra.mxu1 %v5630_v61 }
 0x42d   :  { %5353 = vmatprep.subr.bf16.mxu1 %v5729_v16 }
 0x42e   :  { %2788 = vmatprep.mubr.bf16.mxu0 %v1988_v2 }
 0x42f   :  { %2789 = vmatmul.mubr.bf16.gmra.mrb[116].mxu0 %v1987_v57 }
 0x430   :  { %5317 = vmatprep.mubr.msk.bf16.mxu0 %vm5730_vm0, %v5729_v16 }
 0x431   :  { %v1974_v4 = vpop.f32.mrb[100].mxu0 }
 0x432   :  { %v5293_v5 = vpop.f32.mrb[101].mxu0 }
 0x433   :  { %v1977_v6 = vpop.f32.mrb[102].mxu0 }
 0x434   :  { %v1989_v7 = vpack.c.bf16 %v1977_v6, %v1974_v4  ;;  %v5294_v8 = vpop.f32.mrb[103].mxu0 }
 0x436   :  { %5312 = vmatmul.mubr.bf16.vlgmr.msra.gmra.mrb[108].mxu1 %v1989_v7 }
 0x437   :  { %5355 = vmatprep.mubr.msk.bf16.mxu1 %vm5730_vm0, %v5729_v16 }
 0x4c2   :  { %v4821_v9 = vpop.f32.mrb[92].mxu1 }
 0x4c3   :  { %v4822_v10 = vpop.f32.mrb[93].mxu1 }
 0x4c4   :  { %v4823_v11 = vadd.f32 %v4822_v10, %v4821_v9  ;;  %v4824_v12 = vpop.f32.mrb[94].mxu1 }
 0x4c5   :  { %v4825_v13 = vpop.f32.mrb[95].mxu1 }
 0x4c6   :  { %v4826_v14 = vadd.f32 %v4825_v13, %v4824_v12  ;;  %v2636_v20 = vadd.f32 %v4823_v11, %v4428_v15 }
 0x4c8   :  { %v2639_v27 = vadd.f32 %v4826_v14, %v4428_v15 }
 0x4d2   :  { %v4827_v18 = vpop.f32.mrb[96].mxu1  ;;  %v4849_v19 = vpop.f32.mrb[104].mxu0 }
 0x4d3   :  { %v4828_v62 = vpop.f32.mrb[97].mxu1  ;;  %v4850_v17 = vpop.f32.mrb[105].mxu0 }
 0x4d4   :  { %v4829_v21 = vadd.f32 %v4828_v62, %v4827_v18  ;;  %v4851_v22 = vadd.f32 %v4850_v17, %v4849_v19  ;;  %v4830_v23 = vpop.f32.mrb[98].mxu1  ;;  %v4852_v24 = vpop.f32.mrb[106].mxu0  ;;  %v5655_v17 = vld [vmem:[%s6933_s7 + $0xc0] sm:$0xff]  }
 0x4d5   :  { %v4831_v25 = vpop.f32.mrb[99].mxu1  ;;  %v4853_v26 = vpop.f32.mrb[107].mxu0 }
 0x4d6   :  { %v2685_v28 = vadd.f32 %v4851_v22, %v2636_v20  ;;  %v4832_v29 = vadd.f32 %v4831_v25, %v4830_v23  ;;  %v4854_v30 = vadd.f32 %v4853_v26, %v4852_v24  ;;  %v2644_v36 = vadd.f32 %v4829_v21, %v4428_v15  ;;  %v5649_v22 = vld [vmem:[%s6933_s7 + $0x40] sm:$0xff]  }
 0x4d7   :  { %v5633_v25 = vld [vmem:[%s6932_s6] sm:$0xff]  }
 0x4d8   :  { %v2688_v31 = vadd.f32 %v4854_v30, %v2639_v27  ;;  %v2647_v41 = vadd.f32 %v4832_v29, %v4428_v15  ;;  %v5650_v29 = vld [vmem:[%s6933_s7] sm:$0xff]   ;;  %v5651_v30 = vld [vmem:[%s6933_s7 + $0x48] sm:$0xff]  }
 0x4e2   :  { %v4855_v32 = vpop.f32.mrb[108].mxu0  ;;  %v4877_v33 = vpop.f32.mrb[100].mxu1 }
 0x4e3   :  { %v4856_v34 = vpop.f32.mrb[109].mxu0  ;;  %v4878_v35 = vpop.f32.mrb[101].mxu1 }
 0x4e4   :  { %v4857_v37 = vadd.f32 %v4856_v34, %v4855_v32  ;;  %v4879_v38 = vadd.f32 %v4878_v35, %v4877_v33  ;;  %v4858_v39 = vpop.f32.mrb[110].mxu0  ;;  %v4880_v40 = vpop.f32.mrb[102].mxu1  ;;  %v5659_v32 = vld [vmem:[%s6933_s7 + $0xc8] sm:$0xff]   ;;  %v5653_v34 = vld [vmem:[%s6933_s7 + $0x50] sm:$0xff]  }
 0x4e5   :  { %v4859_v42 = vpop.f32.mrb[111].mxu0  ;;  %v4881_v43 = vpop.f32.mrb[103].mxu1  ;;  %v5652_v33 = vld [vmem:[%s6933_s7 + $0x8] sm:$0xff]  }
 0x4e6   :  { %v2693_v44 = vadd.f32 %v4857_v37, %v2644_v36  ;;  %v2734_v45 = vadd.f32 %v4879_v38, %v2685_v28  ;;  %v4860_v46 = vadd.f32 %v4859_v42, %v4858_v39  ;;  %v4882_v47 = vadd.f32 %v4881_v43, %v4880_v40  ;;  %v5631_v28 = vld [vmem:[%s6932_s6] sm:$0xff]   ;;  %v5660_v35 = vld [vmem:[%s6933_s7 + $0x88] sm:$0xff]   ;;  %v5663_v37 = vld [vmem:[%s6933_s7 + $0xd0] sm:$0xff]  }
 0x4e7   :  { %v5635_v36 = vld [vmem:[%s6932_s6 + $0x8] sm:$0xff]   ;;  %v5654_v39 = vld [vmem:[%s6933_s7 + $0x10] sm:$0xff]   ;;  %v5657_v40 = vld [vmem:[%s6933_s7 + $0x58] sm:$0xff]  }
 0x4e8   :  { %v2696_v48 = vadd.f32 %v4860_v46, %v2647_v41  ;;  %v2737_v49 = vadd.f32 %v4882_v47, %v2688_v31  ;;  %v5656_v31 = vld [vmem:[%s6933_s7 + $0x80] sm:$0xff]   ;;  %v5632_v38 = vld [vmem:[%s6932_s6 + $0x8] sm:$0xff]   ;;  %v5664_v41 = vld [vmem:[%s6933_s7 + $0x90] sm:$0xff]  }
 0x4e9   :  { %v5658_v42 = vld [vmem:[%s6933_s7 + $0x18] sm:$0xff]   ;;  %v5661_v43 = vld [vmem:[%s6933_s7 + $0x60] sm:$0xff]   ;;  %v5665_v47 = vld [vmem:[%s6933_s7 + $0x68] sm:$0xff]  }
 0x4ea   :  { %v5662_v46 = vld [vmem:[%s6933_s7 + $0x20] sm:$0xff]  }
 0x4f2   :  { %v4883_v50 = vpop.f32.mrb[104].mxu1  ;;  %v4905_v51 = vpop.f32.mrb[112].mxu0 }
 0x4f3   :  { %v4884_v52 = vpop.f32.mrb[105].mxu1  ;;  %v4906_v53 = vpop.f32.mrb[113].mxu0 }
 0x4f4   :  { %v4885_v54 = vadd.f32 %v4884_v52, %v4883_v50  ;;  %v4907_v55 = vadd.f32 %v4906_v53, %v4905_v51  ;;  %v4886_v56 = vpop.f32.mrb[106].mxu1  ;;  %v4908_v57 = vpop.f32.mrb[114].mxu0  ;;  %v5636_v50 = vld [vmem:[%s6932_s6 + $0x18] sm:$0xff]   ;;  %v5641_v51 = vld [vmem:[%s6932_s6 + $0x20] sm:$0xff]   ;;  %v5643_v53 = vld [vmem:[%s6932_s6 + $0x28] sm:$0xff]  }
 0x4f5   :  { %v4887_v58 = vpop.f32.mrb[107].mxu1  ;;  %v4909_v59 = vpop.f32.mrb[115].mxu0  ;;  %v5638_v52 = vld [vmem:[%s6932_s6 + $0x20] sm:$0xff]  }
 0x4f6   :  { %v2742_v60 = vadd.f32 %v4885_v54, %v2693_v44  ;;  %v4888_v61 = vadd.f32 %v4887_v58, %v4886_v56  ;;  %v4910_v63 = vadd.f32 %v4909_v59, %v4908_v57  ;;  %v2783_v0 = vadd.f32 %v4907_v55, %v2734_v45  ;;  %v5637_v44 = vld [vmem:[%s6932_s6 + $0x10] sm:$0xff]   ;;  %v5640_v54 = vld [vmem:[%s6932_s6 + $0x28] sm:$0xff]   ;;  %v5646_v57 = vld [vmem:[%s6932_s6 + $0x38] sm:$0xff]  }
 0x4f7   :  { %v5634_v45 = vld [vmem:[%s6932_s6 + $0x10] sm:$0xff]   ;;  %v5644_v58 = vld [vmem:[%s6932_s6 + $0x38] sm:$0xff]   ;;  %v5648_v59 = vld [vmem:[%s6932_s6 + $0x40] sm:$0xff]  }
 0x4f8   :  { %v2745_v1 = vadd.f32 %v4888_v61, %v2696_v48  ;;  %v2786_v2 = vadd.f32 %v4910_v63, %v2737_v49  ;;  %v5666_v48 = vld [vmem:[%s6933_s7 + $0x28] sm:$0xff]   ;;  %v5639_v49 = vld [vmem:[%s6932_s6 + $0x18] sm:$0xff]   ;;  %v5645_v55 = vld [vmem:[%s6932_s6 + $0x30] sm:$0xff]  }
 0x4f9   :  { %v5642_v56 = vld [vmem:[%s6932_s6 + $0x30] sm:$0xff]   ;;  %v5669_v63 = vld [vmem:[%s6933_s7 + $0xd8] sm:$0xff]  }
 0x4fa   :  { %v5667_v61 = vld [vmem:[%s6933_s7 + $0x70] sm:$0xff]  }
 0x502   :  { %v4911_v3 = vpop.f32.mrb[116].mxu0 }
 0x503   :  { %v4912_v4 = vpop.f32.mrb[117].mxu0 }
 0x504   :  { %v4913_v5 = vadd.f32 %v4912_v4, %v4911_v3  ;;  %v4914_v6 = vpop.f32.mrb[118].mxu0  ;;  %v5673_v3 = vld [vmem:[%s6933_s7 + $0x140] sm:$0xff]  }
 0x505   :  { %v4915_v7 = vpop.f32.mrb[119].mxu0  ;;  %v5674_v4 = vld [vmem:[%s6933_s7 + $0xe0] sm:$0xff]  }
 0x506   :  { %v4916_v8 = vadd.f32 %v4915_v7, %v4914_v6  ;;  %v2791_v9 = vadd.f32 %v4913_v5, %v2742_v60  ;;  %v5647_v60 = vld [vmem:[%s6932_s6 + $0x40] sm:$0xff]   ;;  %v5678_v6 = vld [vmem:[%s6933_s7 + $0xe8] sm:$0xff]  }
 0x507   :  { %v5676_v5 = vld [vmem:[%s6933_s7 + $0xa0] sm:$0xff]   ;;  %v5680_v7 = vld [vmem:[%s6933_s7 + $0xa8] sm:$0xff]  }
 0x508   :  { %v2794_v10 = vadd.f32 %v4916_v8, %v2745_v1  ;;  %v5671_v1 = vld [vmem:[%s6933_s7 + $0x78] sm:$0xff]   ;;  %v5682_v8 = vld [vmem:[%s6933_s7 + $0xf0] sm:$0xff]  }
 0x509   :  { %v5313_v11 = vpop.f32.mrb[108].mxu1 }
 0x50a   :  { %v2840_v12 = vadd.f32 %v5313_v11, %v2791_v9  ;;  %v2831_v13 = vpop.f32.mrb[109].mxu1  ;;  %v5684_v9 = vld [vmem:[%s6933_s7 + $0xb0] sm:$0xff]   ;;  %v5688_v11 = vld [vmem:[%s6933_s7 + $0xb8] sm:$0xff]  }
 0x50b   :  { %v2832_v14 = vadd.f32 %v2831_v13, %v2783_v0  ;;  %v5314_v15 = vpop.f32.mrb[110].mxu1  ;;  %v5670_v0 = vld [vmem:[%s6933_s7 + $0x98] sm:$0xff]  }
 0x50c   :  { %v2843_v18 = vadd.f32 %v5314_v15, %v2794_v10  ;;  %v2834_v19 = vpop.f32.mrb[111].mxu1  ;;  %v2848_v20 = vmax.f32 %v2840_v12, 0.0  ;;  %v5686_v10 = vld [vmem:[%s6933_s7 + $0xf8] sm:$0xff]   ;;  %v5691_v12 = vld [vmem:[%s6933_s7 + $0x1c0] sm:$0xff]  }
 0x50d   :  { %v2835_v62 = vadd.f32 %v2834_v19, %v2786_v2  ;;  %v2846_v23 = vmax.f32 %v2832_v14, 0.0  ;;  %v5672_v2 = vld [vmem:[%s6933_s7 + $0x38] sm:$0xff]  }
 0x50e   :  { %v2849_v21 = vmax.f32 %v2843_v18, 0.0 }
 0x50f   :  { %v2847_v24 = vmax.f32 %v2835_v62, 0.0 }
 0x510   :  { %v2851_v26 = vpack.c.bf16 %v2849_v21, %v2848_v20 }
 0x511   :  { %v2850_v27 = vpack.c.bf16 %v2847_v24, %v2846_v23 }
 0x512   :  { %5354 = vmatpush3.bf16.msra.mxu1 %v2851_v26 }
 0x513   :  { %5316 = vmatpush3.bf16.msra.mxu0 %v2850_v27  ;;  %4975 = vmatprep.subr.bf16.mxu1 %v5655_v17 }
 0x514   :  { %4947 = vmatprep.subr.bf16.mxu0 %v5649_v22 }
 0x515   :  { %5356 = vmatmul.mubr.msk.bf16.vlgmr.msra.gmra.mrb[112].mxu1 %vm1635_vm2, %v5633_v25 }
 0x516   :  { %5318 = vmatmul.mubr.msk.bf16.vlgmr.msra.gmra.mrb[120].mxu0 %vm1635_vm2, %v5631_v28  ;;  %5359 = vmatprep.mubr.msk.bf16.mxu1 %vm5730_vm0, %v5729_v16 }
 0x517   :  { %5321 = vmatprep.mubr.msk.bf16.mxu0 %vm5730_vm0, %v5729_v16  ;;  %4948 = vmatpush3.bf16.msra.mxu0 %v5650_v29 }
 0x518   :  { %4949 = vmatprep.subr.bf16.mxu0 %v5651_v30  ;;  %4976 = vmatpush3.bf16.msra.mxu1 %v5656_v31 }
 0x519   :  { %4977 = vmatprep.subr.bf16.mxu1 %v5659_v32  ;;  %v5675_v32 = vld [vmem:[%s6933_s7 + $0x100] sm:$0xff]  }
 0x51b   :  { %4950 = vmatpush3.bf16.msra.mxu0 %v5652_v33 }
 0x51c   :  { %4951 = vmatprep.subr.bf16.mxu0 %v5653_v34  ;;  %4978 = vmatpush3.bf16.msra.mxu1 %v5660_v35  ;;  %v5677_v34 = vld [vmem:[%s6933_s7 + $0x148] sm:$0xff]  }
 0x51d   :  { %5360 = vmatmul.mubr.msk.bf16.gmra.mrb[116].mxu1 %vm1635_vm2, %v5635_v36  ;;  %4979 = vmatprep.subr.bf16.mxu1 %v5663_v37  ;;  %v5679_v35 = vld [vmem:[%s6933_s7 + $0x108] sm:$0xff]  }
 0x51e   :  { %5322 = vmatmul.mubr.msk.bf16.gmra.mrb[124].mxu0 %vm1635_vm2, %v5632_v38  ;;  %5363 = vmatprep.mubr.msk.bf16.mxu1 %vm5730_vm0, %v5729_v16  ;;  %v5681_v38 = vld [vmem:[%s6933_s7 + $0x150] sm:$0xff]  }
 0x51f   :  { %5325 = vmatprep.mubr.msk.bf16.mxu0 %vm5730_vm0, %v5729_v16  ;;  %4952 = vmatpush3.bf16.msra.mxu0 %v5654_v39 }
 0x520   :  { %4953 = vmatprep.subr.bf16.mxu0 %v5657_v40  ;;  %4980 = vmatpush3.bf16.msra.mxu1 %v5664_v41 }
 0x521   :  { %4981 = vmatprep.subr.bf16.mxu1 %v5669_v63  ;;  %v5693_v63 = vld [vmem:[%s6933_s7 + $0x168] sm:$0xff]  }
 0x523   :  { %4954 = vmatpush3.bf16.msra.mxu0 %v5658_v42 }
 0x524   :  { %4955 = vmatprep.subr.bf16.mxu0 %v5661_v43  ;;  %4982 = vmatpush3.bf16.msra.mxu1 %v5670_v0  ;;  %v5695_v0 = vld [vmem:[%s6933_s7 + $0x1c8] sm:$0xff]  }
 0x525   :  { %5364 = vmatmul.mubr.msk.bf16.gmra.mrb[120].mxu1 %vm1635_vm2, %v5637_v44  ;;  %4983 = vmatprep.subr.bf16.mxu1 %v5674_v4 }
 0x526   :  { %5326 = vmatmul.mubr.msk.bf16.gmra.mrb[128].mxu0 %vm1635_vm2, %v5634_v45  ;;  %5367 = vmatprep.mubr.msk.bf16.mxu1 %vm5730_vm0, %v5729_v16 }
 0x527   :  { %5329 = vmatprep.mubr.msk.bf16.mxu0 %vm5730_vm0, %v5729_v16  ;;  %4956 = vmatpush3.bf16.msra.mxu0 %v5662_v46  ;;  %v5683_v46 = vld [vmem:[%s6933_s7 + $0x110] sm:$0xff]  }
 0x528   :  { %4957 = vmatprep.subr.bf16.mxu0 %v5665_v47  ;;  %4984 = vmatpush3.bf16.msra.mxu1 %v5676_v5  ;;  %v5697_v5 = vld [vmem:[%s6933_s7 + $0x170] sm:$0xff]  }
 0x529   :  { %4985 = vmatprep.subr.bf16.mxu1 %v5678_v6  ;;  %v5699_v6 = vld [vmem:[%s6933_s7 + $0x1d0] sm:$0xff]  }
 0x52b   :  { %4958 = vmatpush3.bf16.msra.mxu0 %v5666_v48  ;;  %v5685_v48 = vld [vmem:[%s6933_s7 + $0x158] sm:$0xff]  }
 0x52c   :  { %4959 = vmatprep.subr.bf16.mxu0 %v5667_v61  ;;  %4986 = vmatpush3.bf16.msra.mxu1 %v5680_v7  ;;  %v5692_v61 = vld [vmem:[%s6933_s7 + $0x180] sm:$0xff]  }
 0x52d   :  { %5368 = vmatmul.mubr.msk.bf16.gmra.mrb[124].mxu1 %vm1635_vm2, %v5639_v49  ;;  %4987 = vmatprep.subr.bf16.mxu1 %v5682_v8  ;;  %v5687_v49 = vld [vmem:[%s6933_s7 + $0x118] sm:$0xff]  }
 0x52e   :  { %5330 = vmatmul.mubr.msk.bf16.gmra.mrb[132].mxu0 %vm1635_vm2, %v5636_v50  ;;  %5371 = vmatprep.mubr.msk.bf16.mxu1 %vm5730_vm0, %v5729_v16 }
 0x52f   :  { %5333 = vmatprep.mubr.msk.bf16.mxu0 %vm5730_vm0, %v5729_v16 }
 0x530   :  { %4988 = vmatpush3.bf16.msra.mxu1 %v5684_v9 }
 0x531   :  { %4989 = vmatprep.subr.bf16.mxu1 %v5686_v10 }
 0x534   :  { %4990 = vmatpush3.bf16.msra.mxu1 %v5688_v11 }
 0x535   :  { %5372 = vmatmul.mubr.msk.bf16.gmra.mrb[128].mxu1 %vm1635_vm2, %v5641_v51  ;;  %5031 = vmatprep.subr.bf16.mxu1 %v5691_v12 }
 0x536   :  { %5334 = vmatmul.mubr.msk.bf16.gmra.mrb[136].mxu0 %vm1635_vm2, %v5638_v52  ;;  %5375 = vmatprep.mubr.msk.bf16.mxu1 %vm5730_vm0, %v5729_v16  ;;  %v5689_v52 = vld [vmem:[%s6933_s7 + $0x160] sm:$0xff]  }
 0x537   :  { %5337 = vmatprep.mubr.msk.bf16.mxu0 %vm5730_vm0, %v5729_v16 }
 0x53d   :  { %5376 = vmatmul.mubr.msk.bf16.gmra.mrb[132].mxu1 %vm1635_vm2, %v5643_v53 }
 0x53e   :  { %5338 = vmatmul.mubr.msk.bf16.gmra.mrb[140].mxu0 %vm1635_vm2, %v5640_v54  ;;  %5379 = vmatprep.mubr.msk.bf16.mxu1 %vm5730_vm0, %v5729_v16 }
 0x53f   :  { %5341 = vmatprep.mubr.msk.bf16.mxu0 %vm5730_vm0, %v5729_v16 }
 0x545   :  { %5380 = vmatmul.mubr.msk.bf16.gmra.mrb[136].mxu1 %vm1635_vm2, %v5645_v55 }
 0x546   :  { %5342 = vmatmul.mubr.msk.bf16.gmra.mrb[144].mxu0 %vm1635_vm2, %v5642_v56  ;;  %5383 = vmatprep.mubr.msk.bf16.mxu1 %vm5730_vm0, %v5729_v16 }
 0x547   :  { %5345 = vmatprep.mubr.msk.bf16.mxu0 %vm5730_vm0, %v5729_v16 }
 0x54d   :  { %5384 = vmatmul.mubr.msk.bf16.gmra.mrb[140].mxu1 %vm1635_vm2, %v5646_v57 }
 0x54e   :  { %5346 = vmatmul.mubr.msk.bf16.gmra.mrb[148].mxu0 %vm1635_vm2, %v5644_v58  ;;  %5387 = vmatprep.mubr.msk.bf16.mxu1 %vm5730_vm0, %v5729_v16 }
 0x54f   :  { %5349 = vmatprep.mubr.msk.bf16.mxu0 %vm5730_vm0, %v5729_v16  ;;  %v5668_v16 = vld [vmem:[%s6933_s7 + $0x30] sm:$0xff]  }
 0x550   :  { %4960 = vmatpush3.bf16.msra.mxu0 %v5668_v16 }
 0x551   :  { %4961 = vmatprep.subr.bf16.mxu0 %v5671_v1  ;;  %v5694_v1 = vld [vmem:[%s6933_s7 + $0x128] sm:$0xff]  }
 0x554   :  { %4962 = vmatpush3.bf16.msra.mxu0 %v5672_v2  ;;  %v5696_v2 = vld [vmem:[%s6933_s7 + $0x188] sm:$0xff]  }
 0x555   :  { %5388 = vmatmul.mubr.msk.bf16.gmra.mrb[144].mxu1 %vm1635_vm2, %v5648_v59  ;;  %5003 = vmatprep.subr.bf16.mxu0 %v5673_v3 }
 0x556   :  { %5350 = vmatmul.mubr.msk.bf16.gmra.mrb[152].mxu0 %vm1635_vm2, %v5647_v60  ;;  %v5690_v60 = vld [vmem:[%s6933_s7 + $0x120] sm:$0xff]  }
 0x5e8   :  { %v3189_v13 = vpop.f32.mrb[112].mxu1 }
 0x5e9   :  { %v2976_v14 = vpop.f32.mrb[120].mxu0  ;;  %v5357_v15 = vpop.f32.mrb[113].mxu1 }
 0x5ea   :  { %v5319_v18 = vpop.f32.mrb[121].mxu0  ;;  %v3192_v19 = vpop.f32.mrb[114].mxu1 }
 0x5eb   :  { %v2979_v62 = vpop.f32.mrb[122].mxu0  ;;  %v3260_v17 = vpack.c.bf16 %v3192_v19, %v3189_v13  ;;  %v5358_v20 = vpop.f32.mrb[115].mxu1  ;;  %v5700_v18 = vld [vmem:[%s6933_s7 + $0x190] sm:$0xff]   ;;  %v5701_v19 = vld [vmem:[%s6933_s7 + $0x178] sm:$0xff]  }
 0x5ec   :  { %v3047_v21 = vpack.c.bf16 %v2979_v62, %v2976_v14  ;;  %v5320_v22 = vpop.f32.mrb[123].mxu0  ;;  %v5698_v14 = vld [vmem:[%s6933_s7 + $0x130] sm:$0xff]   ;;  %v5703_v62 = vld [vmem:[%s6933_s7 + $0x1d8] sm:$0xff]  }
 0x5ed   :  { %v5704_v20 = vld [vmem:[%s6933_s7 + $0x198] sm:$0xff]  }
 0x5f0   :  { %v3197_v23 = vpop.f32.mrb[116].mxu1 }
 0x5f1   :  { %v2984_v24 = vpop.f32.mrb[124].mxu0  ;;  %v5361_v25 = vpop.f32.mrb[117].mxu1 }
 0x5f2   :  { %v5323_v26 = vpop.f32.mrb[125].mxu0  ;;  %v3200_v27 = vpop.f32.mrb[118].mxu1 }
 0x5f3   :  { %v2987_v28 = vpop.f32.mrb[126].mxu0  ;;  %v3261_v29 = vpack.c.bf16 %v3200_v27, %v3197_v23  ;;  %v5362_v30 = vpop.f32.mrb[119].mxu1  ;;  %v5705_v23 = vld [vmem:[%s6933_s7 + $0x200] sm:$0xff]  }
 0x5f4   :  { %v3048_v31 = vpack.c.bf16 %v2987_v28, %v2984_v24  ;;  %v5324_v33 = vpop.f32.mrb[127].mxu0  ;;  %v5706_v24 = vld [vmem:[%s6933_s7 + $0x1e0] sm:$0xff]  }
 0x5f6   :  { %3912 = vmatprep.mubr.bf16.mxu0 %v3048_v31 }
 0x5f7   :  { %3913 = vmatmul.mubr.bf16.vlgmr.msra.gmra.mrb[156].mxu0 %v3047_v21 }
 0x5f8   :  { %5004 = vmatpush3.bf16.msra.mxu0 %v5675_v32  ;;  %3920 = vmatprep.mubr.bf16.mxu0 %v3261_v29  ;;  %v6763_v36 = vpop.f32.mrb[120].mxu1  ;;  %v5707_v32 = vld [vmem:[%s6933_s7 + $0x1a0] sm:$0xff]  }
 0x5f9   :  { %5005 = vmatprep.subr.bf16.mxu0 %v5677_v34  ;;  %v2992_v37 = vpop.f32.mrb[128].mxu0  ;;  %v5365_v39 = vpop.f32.mrb[121].mxu1  ;;  %v5708_v34 = vld [vmem:[%s6933_s7 + $0x208] sm:$0xff]  }
 0x5fa   :  { %v5327_v40 = vpop.f32.mrb[129].mxu0  ;;  %v3208_v41 = vpop.f32.mrb[122].mxu1  ;;  %v5711_v39 = vld [vmem:[%s6933_s7 + $0x210] sm:$0xff]  }
 0x5fb   :  { %v2995_v42 = vpop.f32.mrb[130].mxu0  ;;  %v3262_v43 = vpack.c.bf16 %v3208_v41, %v6763_v36  ;;  %v5366_v44 = vpop.f32.mrb[123].mxu1  ;;  %v5710_v36 = vld [vmem:[%s6933_s7 + $0x1a8] sm:$0xff]   ;;  %v5712_v40 = vld [vmem:[%s6933_s7 + $0x1f0] sm:$0xff]  }
 0x5fc   :  { %5006 = vmatpush3.bf16.msra.mxu0 %v5679_v35  ;;  %v3049_v45 = vpack.c.bf16 %v2995_v42, %v2992_v37  ;;  %v5328_v47 = vpop.f32.mrb[131].mxu0  ;;  %v5709_v35 = vld [vmem:[%s6933_s7 + $0x1e8] sm:$0xff]  }
 0x5fd   :  { %5007 = vmatprep.subr.bf16.mxu0 %v5681_v38 }
 0x5ff   :  { %3921 = vmatmul.mubr.bf16.gmra.mrb[160].mxu0 %v3260_v17  ;;  %v5702_v17 = vld [vmem:[%s6933_s7 + $0x138] sm:$0xff]  }
 0x600   :  { %5008 = vmatpush3.bf16.msra.mxu0 %v5683_v46  ;;  %v3213_v50 = vpop.f32.mrb[124].mxu1 }
 0x601   :  { %v3000_v51 = vpop.f32.mrb[132].mxu0  ;;  %5009 = vmatprep.subr.bf16.mxu0 %v5685_v48  ;;  %v5369_v53 = vpop.f32.mrb[125].mxu1 }
 0x602   :  { %v5331_v54 = vpop.f32.mrb[133].mxu0  ;;  %v3216_v55 = vpop.f32.mrb[126].mxu1 }
 0x603   :  { %v3003_v56 = vpop.f32.mrb[134].mxu0  ;;  %v3263_v57 = vpack.c.bf16 %v3216_v55, %v3213_v50  ;;  %v5370_v58 = vpop.f32.mrb[127].mxu1  ;;  %v5714_v50 = vld [vmem:[%s6933_s7 + $0x218] sm:$0xff]   ;;  %v5717_v55 = vld [vmem:[%s6933_s7 + $0x220] sm:$0xff]  }
 0x604   :  { %v3050_v59 = vpack.c.bf16 %v3003_v56, %v3000_v51  ;;  %5010 = vmatpush3.bf16.msra.mxu0 %v5687_v49  ;;  %v5332_v16 = vpop.f32.mrb[135].mxu0  ;;  %v5713_v49 = vld [vmem:[%s6933_s7 + $0x1b0] sm:$0xff]   ;;  %v5715_v51 = vld [vmem:[%s6933_s7 + $0x1f8] sm:$0xff]  }
 0x605   :  { %5011 = vmatprep.subr.bf16.mxu0 %v5689_v52  ;;  %v5716_v52 = vld [vmem:[%s6933_s7 + $0x1b8] sm:$0xff]  }
 0x606   :  { %3961 = vmatprep.mubr.bf16.mxu1 %v3050_v59 }
 0x607   :  { %3962 = vmatmul.mubr.bf16.vlgmr.msra.gmra.mrb[148].mxu1 %v3049_v45 }
 0x608   :  { %5012 = vmatpush3.bf16.msra.mxu0 %v5690_v60  ;;  %5032 = vmatpush3.bf16.msra.mxu1 %v5692_v61  ;;  %v6799_v3 = vpop.f32.mrb[128].mxu1 }
 0x609   :  { %5013 = vmatprep.subr.bf16.mxu0 %v5693_v63  ;;  %5033 = vmatprep.subr.bf16.mxu1 %v5695_v0  ;;  %v3008_v4 = vpop.f32.mrb[136].mxu0  ;;  %v5373_v7 = vpop.f32.mrb[129].mxu1  ;;  %v5718_v0 = vld [vmem:[%s6933_s7 + $0x228] sm:$0xff]  }
 0x60a   :  { %v5335_v8 = vpop.f32.mrb[137].mxu0  ;;  %3969 = vmatprep.mubr.bf16.mxu1 %v3263_v57  ;;  %v6807_v9 = vpop.f32.mrb[130].mxu1 }
 0x60b   :  { %v3011_v10 = vpop.f32.mrb[138].mxu0  ;;  %v3264_v11 = vpack.c.bf16 %v6807_v9, %v6799_v3  ;;  %v5374_v12 = vpop.f32.mrb[131].mxu1 }
 0x60c   :  { %5014 = vmatpush3.bf16.msra.mxu0 %v5694_v1  ;;  %5034 = vmatpush3.bf16.msra.mxu1 %v5696_v2  ;;  %v3051_v13 = vpack.c.bf16 %v3011_v10, %v3008_v4  ;;  %v5336_v15 = vpop.f32.mrb[139].mxu0  ;;  %v5719_v2 = vld [vmem:[%s6933_s7 + $0x230] sm:$0xff]   ;;  %v5720_v12 = vld [vmem:[%s6933_s7 + $0x238] sm:$0xff]  }
 0x60d   :  { %5015 = vmatprep.subr.bf16.mxu0 %v5697_v5  ;;  %5035 = vmatprep.subr.bf16.mxu1 %v5699_v6  ;;  %v5723_v15 = vld [vmem:[%s6934_s8 + $0x10] sm:$0xff]  }
 0x60f   :  { %3970 = vmatmul.mubr.bf16.gmra.mrb[152].mxu1 %v3262_v43 }
 0x610   :  { %5016 = vmatpush3.bf16.msra.mxu0 %v5698_v14  ;;  %5036 = vmatpush3.bf16.msra.mxu1 %v5700_v18  ;;  %v3229_v21 = vpop.f32.mrb[132].mxu1  ;;  %v5722_v14 = vld [vmem:[%s6934_s8 + $0x8] sm:$0xff]   ;;  %v5724_v18 = vld [vmem:[%s6934_s8 + $0x18] sm:$0xff]  }
 0x611   :  { %v3016_v22 = vpop.f32.mrb[140].mxu0  ;;  %5017 = vmatprep.subr.bf16.mxu0 %v5701_v19  ;;  %5037 = vmatprep.subr.bf16.mxu1 %v5703_v62  ;;  %v5377_v25 = vpop.f32.mrb[133].mxu1  ;;  %v5725_v19 = vld [vmem:[%s6934_s8 + $0x20] sm:$0xff]   ;;  %v5726_v62 = vld [vmem:[%s6934_s8 + $0x28] sm:$0xff]  }
 0x612   :  { %v5339_v26 = vpop.f32.mrb[141].mxu0  ;;  %v3232_v27 = vpop.f32.mrb[134].mxu1 }
 0x613   :  { %v3019_v28 = vpop.f32.mrb[142].mxu0  ;;  %v3265_v29 = vpack.c.bf16 %v3232_v27, %v3229_v21  ;;  %v5378_v30 = vpop.f32.mrb[135].mxu1 }
 0x614   :  { %v3052_v31 = vpack.c.bf16 %v3019_v28, %v3016_v22  ;;  %5018 = vmatpush3.bf16.msra.mxu0 %v5702_v17  ;;  %5038 = vmatpush3.bf16.msra.mxu1 %v5704_v20  ;;  %v5340_v33 = vpop.f32.mrb[143].mxu0  ;;  %v5727_v17 = vld [vmem:[%s6934_s8 + $0x30] sm:$0xff]   ;;  %v5728_v20 = vld [vmem:[%s6934_s8 + $0x38] sm:$0xff]  }
 0x615   :  { %5391 = vmatprep.subr.bf16.mxu0 %v5705_v23  ;;  %5039 = vmatprep.subr.bf16.mxu1 %v5706_v24  ;;  %v4538_v33 = vld [vmem:[%s6929_s9 + $0x3] ss:$0 sm:$0xff] }
 0x616   :  { %4010 = vmatprep.mubr.bf16.mxu0 %v3052_v31 }
 0x617   :  { %4011 = vmatmul.mubr.bf16.vlgmr.msra.gmra.mrb[164].mxu0 %v3051_v13  ;;  %v5721_v13 = vld [vmem:[%s6934_s8] sm:$0xff]  }
 0x618   :  { %5392 = vmatpush3.bf16.msra.mxu0 %v5705_v23  ;;  %5040 = vmatpush3.bf16.msra.mxu1 %v5707_v32  ;;  %v6847_v37 = vpop.f32.mrb[136].mxu1 }
 0x619   :  { %5393 = vmatprep.subr.bf16.mxu0 %v5708_v34  ;;  %5041 = vmatprep.subr.bf16.mxu1 %v5709_v35  ;;  %v3024_v38 = vpop.f32.mrb[144].mxu0  ;;  %v5381_v41 = vpop.f32.mrb[137].mxu1 }
 0x61a   :  { %v5343_v42 = vpop.f32.mrb[145].mxu0  ;;  %4018 = vmatprep.mubr.bf16.mxu0 %v3265_v29  ;;  %v3240_v43 = vpop.f32.mrb[138].mxu1 }
 0x61b   :  { %v3027_v44 = vpop.f32.mrb[146].mxu0  ;;  %v3266_v45 = vpack.c.bf16 %v3240_v43, %v6847_v37  ;;  %v5382_v46 = vpop.f32.mrb[139].mxu1 }
 0x61c   :  { %5394 = vmatpush3.bf16.msra.mxu0 %v5708_v34  ;;  %5042 = vmatpush3.bf16.msra.mxu1 %v5710_v36  ;;  %v3053_v47 = vpack.c.bf16 %v3027_v44, %v3024_v38  ;;  %v5344_v48 = vpop.f32.mrb[147].mxu0 }
 0x61d   :  { %5395 = vmatprep.subr.bf16.mxu0 %v5711_v39  ;;  %5043 = vmatprep.subr.bf16.mxu1 %v5712_v40 }
 0x61f   :  { %4019 = vmatmul.mubr.bf16.gmra.mrb[168].mxu0 %v3264_v11 }
 0x620   :  { %5396 = vmatpush3.bf16.msra.mxu0 %v5711_v39  ;;  %5044 = vmatpush3.bf16.msra.mxu1 %v5713_v49  ;;  %v3245_v53 = vpop.f32.mrb[140].mxu1 }
 0x621   :  { %v3032_v54 = vpop.f32.mrb[148].mxu0  ;;  %5397 = vmatprep.subr.bf16.mxu0 %v5714_v50  ;;  %5045 = vmatprep.subr.bf16.mxu1 %v5715_v51  ;;  %v5385_v56 = vpop.f32.mrb[141].mxu1 }
 0x622   :  { %v5347_v57 = vpop.f32.mrb[149].mxu0  ;;  %v3248_v58 = vpop.f32.mrb[142].mxu1 }
 0x623   :  { %v3035_v59 = vpop.f32.mrb[150].mxu0  ;;  %v3267_v60 = vpack.c.bf16 %v3248_v58, %v3245_v53  ;;  %v5386_v61 = vpop.f32.mrb[143].mxu1 }
 0x624   :  { %v3054_v16 = vpack.c.bf16 %v3035_v59, %v3032_v54  ;;  %5398 = vmatpush3.bf16.msra.mxu0 %v5714_v50  ;;  %5046 = vmatpush3.bf16.msra.mxu1 %v5716_v52  ;;  %v5348_v63 = vpop.f32.mrb[151].mxu0 }
 0x625   :  { %5399 = vmatprep.subr.bf16.mxu0 %v5717_v55  ;;  %5411 = vmatprep.subr.bf16.mxu1 %v5721_v13 }
 0x626   :  { %4059 = vmatprep.mubr.bf16.mxu1 %v3054_v16 }
 0x627   :  { %4060 = vmatmul.mubr.bf16.vlgmr.msra.gmra.mrb[156].mxu1 %v3053_v47 }
 0x628   :  { %5400 = vmatpush3.bf16.msra.mxu0 %v5717_v55  ;;  %4067 = vmatprep.mubr.bf16.mxu1 %v3267_v60  ;;  %v3253_v1 = vpop.f32.mrb[144].mxu1 }
 0x629   :  { %5401 = vmatprep.subr.bf16.mxu0 %v5718_v0  ;;  %v3040_v3 = vpop.f32.mrb[152].mxu0  ;;  %v5389_v4 = vpop.f32.mrb[145].mxu1  ;;  %5412 = vmatpush3.bf16.msra.mxu1 %v5721_v13 }
 0x62a   :  { %v5351_v5 = vpop.f32.mrb[153].mxu0  ;;  %v3256_v6 = vpop.f32.mrb[146].mxu1  ;;  %5413 = vmatprep.subr.bf16.mxu1 %v5722_v14 }
 0x62b   :  { %v3043_v7 = vpop.f32.mrb[154].mxu0  ;;  %v3268_v8 = vpack.c.bf16 %v3256_v6, %v3253_v1  ;;  %v5390_v9 = vpop.f32.mrb[147].mxu1 }
 0x62c   :  { %5402 = vmatpush3.bf16.msra.mxu0 %v5718_v0  ;;  %v3055_v10 = vpack.c.bf16 %v3043_v7, %v3040_v3  ;;  %v5352_v11 = vpop.f32.mrb[155].mxu0 }
 0x62d   :  { %5403 = vmatprep.subr.bf16.mxu0 %v5719_v2  ;;  %5414 = vmatpush3.bf16.msra.mxu1 %v5722_v14 }
 0x62e   :  { %5407 = vmatprep.mubr.bf16.mxu0 %v3055_v10  ;;  %5415 = vmatprep.subr.bf16.mxu1 %v5723_v15 }
 0x62f   :  { %4068 = vmatmul.mubr.bf16.gmra.mrb[160].mxu1 %v3266_v45 }
 0x630   :  { %5404 = vmatpush3.bf16.msra.mxu0 %v5719_v2 }
 0x631   :  { %5405 = vmatprep.subr.bf16.mxu0 %v5720_v12  ;;  %5416 = vmatpush3.bf16.msra.mxu1 %v5723_v15 }
 0x632   :  { %5417 = vmatprep.subr.bf16.mxu1 %v5724_v18 }
 0x634   :  { %5406 = vmatpush3.bf16.msra.mxu0 %v5720_v12 }
 0x635   :  { %5418 = vmatpush3.bf16.msra.mxu1 %v5724_v18 }
 0x636   :  { %5419 = vmatprep.subr.bf16.mxu1 %v5725_v19 }
 0x637   :  { %5408 = vmatmul.mubr.bf16.vlgmr.msra.gmra.mrb[172].mxu0 %v3268_v8 }
 0x639   :  { %5420 = vmatpush3.bf16.msra.mxu1 %v5725_v19 }
 0x63a   :  { %5421 = vmatprep.subr.bf16.mxu1 %v5726_v62 }
 0x63d   :  { %5422 = vmatpush3.bf16.msra.mxu1 %v5726_v62 }
 0x63e   :  { %5423 = vmatprep.subr.bf16.mxu1 %v5727_v17 }
 0x641   :  { %5424 = vmatpush3.bf16.msra.mxu1 %v5727_v17 }
 0x642   :  { %5425 = vmatprep.subr.bf16.mxu1 %v5728_v20 }
 0x645   :  { %5426 = vmatpush3.bf16.msra.mxu1 %v5728_v20 }
 0x6ca   :  { %v4963_v21 = vpop.f32.mrb[156].mxu0 }
 0x6cb   :  { %v4964_v22 = vpop.f32.mrb[157].mxu0 }
 0x6cc   :  { %v4965_v23 = vadd.f32 %v4964_v22, %v4963_v21  ;;  %v4966_v24 = vpop.f32.mrb[158].mxu0 }
 0x6cd   :  { %v4967_v25 = vpop.f32.mrb[159].mxu0 }
 0x6ce   :  { %v4968_v26 = vadd.f32 %v4967_v25, %v4966_v24  ;;  %v3915_v36 = vadd.f32 %v4965_v23, %v4538_v33 }
 0x6d0   :  { %v3918_v40 = vadd.f32 %v4968_v26, %v4538_v33 }
 0x6d2   :  { %v4969_v27 = vpop.f32.mrb[160].mxu0 }
 0x6d3   :  { %v4970_v28 = vpop.f32.mrb[161].mxu0 }
 0x6d4   :  { %v4971_v29 = vadd.f32 %v4970_v28, %v4969_v27  ;;  %v4972_v30 = vpop.f32.mrb[162].mxu0 }
 0x6d5   :  { %v4973_v31 = vpop.f32.mrb[163].mxu0 }
 0x6d6   :  { %v4974_v32 = vadd.f32 %v4973_v31, %v4972_v30  ;;  %v3923_v46 = vadd.f32 %v4971_v29, %v4538_v33 }
 0x6d8   :  { %v3926_v50 = vadd.f32 %v4974_v32, %v4538_v33 }
 0x6da   :  { %v4991_v34 = vpop.f32.mrb[148].mxu1 }
 0x6db   :  { %v4992_v35 = vpop.f32.mrb[149].mxu1 }
 0x6dc   :  { %v4993_v37 = vadd.f32 %v4992_v35, %v4991_v34  ;;  %v4994_v38 = vpop.f32.mrb[150].mxu1 }
 0x6dd   :  { %v4995_v39 = vpop.f32.mrb[151].mxu1 }
 0x6de   :  { %v3964_v41 = vadd.f32 %v4993_v37, %v3915_v36  ;;  %v4996_v42 = vadd.f32 %v4995_v39, %v4994_v38  ;;  %v4612_v36 = vld [vmem:[%s6929_s9 + $0x4] ss:$0 sm:$0xff] }
 0x6e0   :  { %v3967_v43 = vadd.f32 %v4996_v42, %v3918_v40 }
 0x6e2   :  { %v4997_v44 = vpop.f32.mrb[152].mxu1 }
 0x6e3   :  { %v4998_v45 = vpop.f32.mrb[153].mxu1 }
 0x6e4   :  { %v4999_v47 = vadd.f32 %v4998_v45, %v4997_v44  ;;  %v5000_v48 = vpop.f32.mrb[154].mxu1 }
 0x6e5   :  { %v5001_v49 = vpop.f32.mrb[155].mxu1 }
 0x6e6   :  { %v3972_v51 = vadd.f32 %v4999_v47, %v3923_v46  ;;  %v5002_v52 = vadd.f32 %v5001_v49, %v5000_v48 }
 0x6e8   :  { %v3975_v53 = vadd.f32 %v5002_v52, %v3926_v50 }
 0x6ea   :  { %v5019_v54 = vpop.f32.mrb[164].mxu0 }
 0x6eb   :  { %v5020_v55 = vpop.f32.mrb[165].mxu0 }
 0x6ec   :  { %v5021_v56 = vadd.f32 %v5020_v55, %v5019_v54  ;;  %v5022_v57 = vpop.f32.mrb[166].mxu0 }
 0x6ed   :  { %v5023_v58 = vpop.f32.mrb[167].mxu0 }
 0x6ee   :  { %v4013_v59 = vadd.f32 %v5021_v56, %v3964_v41  ;;  %v5024_v60 = vadd.f32 %v5023_v58, %v5022_v57 }
 0x6f0   :  { %v4016_v61 = vadd.f32 %v5024_v60, %v3967_v43 }
 0x6f2   :  { %v5025_v16 = vpop.f32.mrb[168].mxu0 }
 0x6f3   :  { %v5026_v63 = vpop.f32.mrb[169].mxu0 }
 0x6f4   :  { %v5027_v0 = vadd.f32 %v5026_v63, %v5025_v16  ;;  %v5028_v1 = vpop.f32.mrb[170].mxu0 }
 0x6f5   :  { %v5029_v2 = vpop.f32.mrb[171].mxu0 }
 0x6f6   :  { %v4021_v3 = vadd.f32 %v5027_v0, %v3972_v51  ;;  %v5030_v4 = vadd.f32 %v5029_v2, %v5028_v1 }
 0x6f8   :  { %v4024_v5 = vadd.f32 %v5030_v4, %v3975_v53 }
 0x6fa   :  { %v5047_v6 = vpop.f32.mrb[156].mxu1 }
 0x6fb   :  { %v5048_v7 = vpop.f32.mrb[157].mxu1 }
 0x6fc   :  { %v5049_v8 = vadd.f32 %v5048_v7, %v5047_v6  ;;  %v5050_v9 = vpop.f32.mrb[158].mxu1 }
 0x6fd   :  { %v5051_v10 = vpop.f32.mrb[159].mxu1 }
 0x6fe   :  { %v5052_v11 = vadd.f32 %v5051_v10, %v5050_v9  ;;  %v4062_v12 = vadd.f32 %v5049_v8, %v4013_v59 }
 0x700   :  { %v4065_v13 = vadd.f32 %v5052_v11, %v4016_v61 }
 0x702   :  { %v5053_v14 = vpop.f32.mrb[160].mxu1 }
 0x703   :  { %v5054_v15 = vpop.f32.mrb[161].mxu1 }
 0x704   :  { %v5055_v18 = vadd.f32 %v5054_v15, %v5053_v14  ;;  %v5056_v19 = vpop.f32.mrb[162].mxu1 }
 0x705   :  { %v5057_v62 = vpop.f32.mrb[163].mxu1 }
 0x706   :  { %v5058_v17 = vadd.f32 %v5057_v62, %v5056_v19  ;;  %v4070_v20 = vadd.f32 %v5055_v18, %v4021_v3 }
 0x708   :  { %v4073_v21 = vadd.f32 %v5058_v17, %v4024_v5 }
 0x70a   :  { %v5409_v22 = vpop.f32.mrb[172].mxu0 }
 0x70b   :  { %v4119_v23 = vadd.f32 %v5409_v22, %v4070_v20  ;;  %v4110_v24 = vpop.f32.mrb[173].mxu0 }
 0x70c   :  { %v4111_v25 = vadd.f32 %v4110_v24, %v4062_v12  ;;  %v5410_v26 = vpop.f32.mrb[174].mxu0 }
 0x70d   :  { %v4122_v27 = vadd.f32 %v5410_v26, %v4073_v21  ;;  %v4113_v28 = vpop.f32.mrb[175].mxu0  ;;  %v4127_v30 = vmax.f32 %v4119_v23, 0.0 }
 0x70e   :  { %v4114_v29 = vadd.f32 %v4113_v28, %v4065_v13  ;;  %v4125_v32 = vmax.f32 %v4111_v25, 0.0 }
 0x70f   :  { %v4128_v31 = vmax.f32 %v4122_v27, 0.0 }
 0x710   :  { %v4126_v33 = vmax.f32 %v4114_v29, 0.0 }
 0x711   :  { %v4130_v34 = vpack.c.bf16 %v4128_v31, %v4127_v30 }
 0x712   :  { %v4129_v35 = vpack.c.bf16 %v4126_v33, %v4125_v32 }
 0x714   :  { %5427 = vmatprep.mubr.bf16.mxu1 %v4129_v35 }
 0x715   :  { %5428 = vmatmul.mubr.bf16.vlgmr.msra.gmra.mrb[164].mxu1 %v4130_v34 }
 0x7e8   :  { %v5429_v37 = vpop.f32.mrb[164].mxu1 }
 0x7e9   :  { %v4246_v38 = vadd.f32 %v5429_v37, %v4612_v36  ;;  %v4237_v39 = vpop.f32.mrb[165].mxu1 }
 0x7ea   :  { %v4238_v40 = vadd.f32 %v4612_v36, %v4237_v39  ;;  %v5430_v41 = vpop.f32.mrb[166].mxu1 }
 0x7eb   :  { %v4254_v42 = vmax.f32 %v4246_v38, 0.0  ;;  %v4249_v43 = vadd.f32 %v5430_v41, %v4612_v36  ;;  %v4240_v44 = vpop.f32.mrb[167].mxu1 }
 0x7ec   :  { %v4252_v45 = vmax.f32 %v4238_v40, 0.0  ;;  %v4241_v46 = vadd.f32 %v4612_v36, %v4240_v44 }
 0x7ed   :  { %4258 = vst [vmem:[%s6935_s10 + $0x10] sm:$0xff] %v4254_v42  ;;  %v4255_v47 = vmax.f32 %v4249_v43, 0.0 }
 0x7ee   :  { %4256 = vst [vmem:[%s6935_s10] sm:$0xff] %v4252_v45  ;;  %v4253_v48 = vmax.f32 %v4241_v46, 0.0 }
 0x7ef   :  { %4259 = vst [vmem:[%s6935_s10 + $0x18] sm:$0xff] %v4255_v47 }
 0x7f0   :  { %4257 = vst [vmem:[%s6935_s10 + $0x8] sm:$0xff] %v4253_v48 }

</bundles_post_ra>
